<compile_context>
chip_gen: v5e
topology: v5e:2x2
jax: 0.10.0
libtpu: 0.0.40
codegen_flags: <defaults>
</compile_context>

<pallas_src>
import jax
import jax.numpy as jnp
from jax.experimental import pallas as pl
from jax.experimental.pallas import tpu as pltpu

_EPS = 1e-5
_SLOPE = 0.01                      # PyTorch nn.LeakyReLU default negative_slope
_VMEM_LIMIT = 32 * 1024 * 1024     # fits v5e/v6e/v7x scoped-VMEM budgets


def _ceil_to(v, m):
    return ((v + m - 1) // m) * m


def _pick_tile(dim, candidates):
    """Largest candidate tile that divides `dim` (dim is already 8/128-aligned)."""
    for t in candidates:
        if dim % t == 0:
            return t
    return candidates[-1]


# ---------------------------------------------------------------------------
# Pallas kernels
# ---------------------------------------------------------------------------
def _bn_stats_kernel(x_ref, sum_ref, sq_ref):
    # Row-tiled reduction; outputs are resident accumulators across the grid.
    @pl.when(pl.program_id(0) == 0)
    def _():
        sum_ref[...] = jnp.zeros_like(sum_ref)
        sq_ref[...] = jnp.zeros_like(sq_ref)

    x = x_ref[...]
    sum_ref[...] += jnp.sum(x, axis=0, keepdims=True)
    sq_ref[...] += jnp.sum(x * x, axis=0, keepdims=True)


def _bn_apply_lrelu_kernel(x_ref, s_ref, b_ref, o_ref):
    # f32 VPU math, bf16 output (cast only at the matmul boundary).
    y = x_ref[...] * s_ref[...] + b_ref[...]
    o_ref[...] = jnp.where(y > 0, y, _SLOPE * y).astype(o_ref.dtype)


def _mm_kernel(a_ref, b_ref, o_ref, acc_ref):
    @pl.when(pl.program_id(2) == 0)
    def _():
        acc_ref[...] = jnp.zeros_like(acc_ref)

    acc_ref[...] += jnp.dot(a_ref[...], b_ref[...],
                            preferred_element_type=jnp.float32)

    @pl.when(pl.program_id(2) == pl.num_programs(2) - 1)
    def _():
        o_ref[...] = acc_ref[...].astype(o_ref.dtype)


def _mm_res_kernel(a_ref, b_ref, r_ref, o_ref, acc_ref):
    @pl.when(pl.program_id(2) == 0)
    def _():
        acc_ref[...] = jnp.zeros_like(acc_ref)

    acc_ref[...] += jnp.dot(a_ref[...], b_ref[...],
                            preferred_element_type=jnp.float32)

    @pl.when(pl.program_id(2) == pl.num_programs(2) - 1)
    def _():
        o_ref[...] = (acc_ref[...] + r_ref[...].astype(jnp.float32)).astype(o_ref.dtype)


# ---------------------------------------------------------------------------
# Pallas wrappers
# ---------------------------------------------------------------------------
def batchnorm_lrelu(x2d, gamma_p, beta_p):
    """Training-mode BatchNorm (biased var) + LeakyReLU on a (M, Cp) f32 array.

    Tiled two-pass scheme: pass 1 reduces per-channel sum/sumsq over row tiles,
    pass 2 applies (x*scale + bias) + LeakyReLU per row tile and emits bf16.
    """
    M, Cp = x2d.shape
    Mp = _ceil_to(M, 8)
    tm = _pick_tile(Mp, (512, 256, 128, 64, 32, 16, 8))
    xp = jnp.pad(x2d, ((0, Mp - M), (0, 0)))   # padded rows are zero -> exact sums
    grid = (Mp // tm,)

    ssum, ssq = pl.pallas_call(
        _bn_stats_kernel,
        out_shape=(jax.ShapeDtypeStruct((1, Cp), jnp.float32),
                   jax.ShapeDtypeStruct((1, Cp), jnp.float32)),
        grid=grid,
        in_specs=[pl.BlockSpec((tm, Cp), lambda i: (i, 0))],
        out_specs=(pl.BlockSpec((1, Cp), lambda i: (0, 0)),
                   pl.BlockSpec((1, Cp), lambda i: (0, 0))),
        compiler_params=pltpu.CompilerParams(
            dimension_semantics=("arbitrary",),
            vmem_limit_bytes=_VMEM_LIMIT),
    )(xp)

    mean = ssum / M
    var = jnp.maximum(ssq / M - mean * mean, 0.0)          # biased (torch training mode)
    scale = gamma_p.reshape(1, Cp) * jax.lax.rsqrt(var + _EPS)
    bias = beta_p.reshape(1, Cp) - mean * scale

    y = pl.pallas_call(
        _bn_apply_lrelu_kernel,
        out_shape=jax.ShapeDtypeStruct((Mp, Cp), jnp.bfloat16),
        grid=grid,
        in_specs=[pl.BlockSpec((tm, Cp), lambda i: (i, 0)),
                  pl.BlockSpec((1, Cp), lambda i: (0, 0)),
                  pl.BlockSpec((1, Cp), lambda i: (0, 0))],
        out_specs=pl.BlockSpec((tm, Cp), lambda i: (i, 0)),
        compiler_params=pltpu.CompilerParams(
            dimension_semantics=("parallel",),
            vmem_limit_bytes=_VMEM_LIMIT),
    )(xp, scale, bias)
    return y[:M] if Mp != M else y


def conv_matmul(a, b, residual=None):
    """(M,K) @ (K,N) [+ residual(M,N)] with bf16 MXU operands and f32 accumulation."""
    M, K = a.shape
    _, N = b.shape
    Mp, Kp, Np = _ceil_to(M, 8), _ceil_to(K, 128), _ceil_to(N, 128)
    tm = _pick_tile(Mp, (256, 128, 64, 32, 16, 8))
    tk = _pick_tile(Kp, (512, 384, 256, 128))
    tn = _pick_tile(Np, (256, 128))

    ap = jnp.pad(a.astype(jnp.bfloat16), ((0, Mp - M), (0, Kp - K)))
    bp = jnp.pad(b.astype(jnp.bfloat16), ((0, Kp - K), (0, Np - N)))

    in_specs = [pl.BlockSpec((tm, tk), lambda i, j, k: (i, k)),
                pl.BlockSpec((tk, tn), lambda i, j, k: (k, j))]
    operands = [ap, bp]
    io_aliases = {}
    if residual is None:
        kernel = _mm_kernel
    else:
        kernel = _mm_res_kernel
        rp = jnp.pad(residual.astype(jnp.float32), ((0, Mp - M), (0, Np - N)))
        in_specs.append(pl.BlockSpec((tm, tn), lambda i, j, k: (i, j)))
        operands.append(rp)
        io_aliases = {2: 0}          # alias residual buffer to the output buffer

    out = pl.pallas_call(
        kernel,
        out_shape=jax.ShapeDtypeStruct((Mp, Np), jnp.float32),
        grid_spec=pltpu.PrefetchScalarGridSpec(
            num_scalar_prefetch=0,
            grid=(Mp // tm, Np // tn, Kp // tk),
            in_specs=in_specs,
            out_specs=pl.BlockSpec((tm, tn), lambda i, j, k: (i, j)),
            scratch_shapes=[pltpu.VMEM((tm, tn), jnp.float32)]),
        compiler_params=pltpu.CompilerParams(
            dimension_semantics=("parallel", "parallel", "arbitrary"),
            vmem_limit_bytes=_VMEM_LIMIT),
        input_output_aliases=io_aliases,
    )(*operands)

    if Mp != M or Np != N:
        out = out[:M, :N]
    return out


# ---------------------------------------------------------------------------
# Glue: im2col patch extraction (bf16) and weight flattening (channel-padded)
# ---------------------------------------------------------------------------
def extract_patches_3x3(x, stride):
    # x: (N, H, W, Cp) bf16 ; returns (N*Ho*Wo, 9*Cp) bf16 patches (tap-major columns).
    N, H, W, C = x.shape
    xp = jnp.pad(x, ((0, 0), (1, 1), (1, 1), (0, 0)))
    Ho = (H + 2 - 3) // stride + 1
    Wo = (W + 2 - 3) // stride + 1
    cols = []
    for dy in range(3):
        for dx in range(3):
            sl = xp[:, dy:dy + (Ho - 1) * stride + 1:stride,
                       dx:dx + (Wo - 1) * stride + 1:stride, :]
            cols.append(sl.reshape(N * Ho * Wo, C))
    return jnp.concatenate(cols, axis=1), Ho, Wo


def _flatten_w3x3(w, cp_in, cp_out):   # OIHW (c_out,c_in,3,3) -> (9*cp_in, cp_out)
    c_out, c_in = w.shape[0], w.shape[1]
    wp = jnp.pad(w, ((0, cp_out - c_out), (0, cp_in - c_in), (0, 0), (0, 0)))
    return jnp.transpose(wp, (2, 3, 1, 0)).reshape(9 * cp_in, cp_out)


def _flatten_w1x1(w, cp_in, cp_out):   # (c_out,c_in,1,1) -> (cp_in, cp_out)
    c_out, c_in = w.shape[0], w.shape[1]
    wp = jnp.pad(w, ((0, cp_out - c_out), (0, cp_in - c_in), (0, 0), (0, 0)))
    return wp[:, :, 0, 0].T


# ---------------------------------------------------------------------------
# ResNetBlock forward (NHWC activations)
# ---------------------------------------------------------------------------
def resnet_block_forward(x, params, downsample):
    N, H, W, C_in = x.shape
    C_out = params["w1"].shape[0]
    Cpi, Cpo = _ceil_to(C_in, 128), _ceil_to(C_out, 128)
    s = 2 if downsample else 1

    # Channel-pad once; padded channels stay exactly zero through the whole block.
    xp = jnp.pad(x, ((0, 0), (0, 0), (0, 0), (0, Cpi - C_in)))
    g1 = jnp.pad(params["g1"], (0, Cpi - C_in))
    b1 = jnp.pad(params["b1"], (0, Cpi - C_in))
    g2 = jnp.pad(params["g2"], (0, Cpo - C_out))
    b2 = jnp.pad(params["b2"], (0, Cpo - C_out))

    # ---- conv branch ----
    h1 = batchnorm_lrelu(xp.reshape(N * H * W, Cpi), g1, b1).reshape(N, H, W, Cpi)

    p1, Ho, Wo = extract_patches_3x3(h1, s)
    y1 = conv_matmul(p1, _flatten_w3x3(params["w1"], Cpi, Cpo))        # (N*Ho*Wo, Cpo) f32

    h2 = batchnorm_lrelu(y1, g2, b2).reshape(N, Ho, Wo, Cpo)

    # ---- skip branch ----
    if downsample:
        xs = xp[:, ::2, ::2, :].reshape(N * Ho * Wo, Cpi)
        skip = conv_matmul(xs, _flatten_w1x1(params["wskip"], Cpi, Cpo))
    elif C_in != C_out:
        skip = conv_matmul(xp.reshape(N * H * W, Cpi),
                           _flatten_w1x1(params["wskip"], Cpi, Cpo))
    else:
        skip = xp.reshape(N * H * W, Cpi)                               # Cpi == Cpo

    # ---- second conv with the residual add fused into the matmul epilogue ----
    p2, Ho2, Wo2 = extract_patches_3x3(h2, 1)
    out = conv_matmul(p2, _flatten_w3x3(params["w2"], Cpo, Cpo), residual=skip)
    return out.reshape(N, Ho2, Wo2, Cpo)[..., :C_out]


# ---------------------------------------------------------------------------
# Pure-JAX reference (bf16-rounded conv operands, exact accumulation)
# ---------------------------------------------------------------------------
def _bf16_round(v):
    return v.astype(jnp.bfloat16).astype(jnp.float32)


def ref_forward(x, params, downsample):
    def bn_lrelu(h, g, b):
        mean = h.mean(axis=(0, 1, 2), keepdims=True)
        var = ((h - mean) ** 2).mean(axis=(0, 1, 2), keepdims=True)
        y = (h - mean) * jax.lax.rsqrt(var + _EPS) * g + b
        return jnp.where(y > 0, y, _SLOPE * y)

    def conv(h, w, stride, pad):
        return jax.lax.conv_general_dilated(
            _bf16_round(h), _bf16_round(jnp.transpose(w, (2, 3, 1, 0))),
            window_strides=(stride, stride), padding=((pad, pad), (pad, pad)),
            dimension_numbers=("NHWC", "HWIO", "NHWC"),
            precision=jax.lax.Precision.HIGHEST)

    C_in, C_out = x.shape[-1], params["w1"].shape[0]
    s = 2 if downsample else 1
    h = bn_lrelu(x, params["g1"], params["b1"])
    h = conv(h, params["w1"], s, 1)
    h = bn_lrelu(h, params["g2"], params["b2"])
    h = conv(h, params["w2"], 1, 1)
    if downsample:
        sk = conv(x, params["wskip"], 2, 0)
    elif C_in != C_out:
        sk = conv(x, params["wskip"], 1, 0)
    else:
        sk = x
    return h + sk


# ---------------------------------------------------------------------------
# Deterministic parameter init (matches the PyTorch module's shapes)
# ---------------------------------------------------------------------------
def init_params(key, c_in, c_out, downsample):
    k1, k2, k3 = jax.random.split(key, 3)
    p = {
        "g1": jnp.ones((c_in,), jnp.float32),    # BatchNorm2d defaults
        "b1": jnp.zeros((c_in,), jnp.float32),
        "w1": 0.1 * jax.random.normal(k1, (c_out, c_in, 3, 3), jnp.float32),
        "g2": jnp.ones((c_out,), jnp.float32),
        "b2": jnp.zeros((c_out,), jnp.float32),
        "w2": 0.1 * jax.random.normal(k2, (c_out, c_out, 3, 3), jnp.float32),
        "wskip": None,
    }
    if downsample or c_in != c_out:
        p["wskip"] = 0.1 * jax.random.normal(k3, (c_out, c_in, 1, 1), jnp.float32)
    return p


if __name__ == "__main__":
    key = jax.random.PRNGKey(0)
    kx, kp1, kp2 = jax.random.split(key, 3)

    x_nchw = jax.random.normal(kx, (2, 4, 16, 16), jnp.float32)   # PyTorch NCHW input
    x = jnp.transpose(x_nchw, (0, 2, 3, 1))                        # -> NHWC for the kernels

    fwd = jax.jit(resnet_block_forward, static_argnums=(2,))

    ok = True
    # case 1: downsample (conv1x1 stride-2 skip), case 2: identity skip
    for c_in, c_out, ds, kp in [(4, 8, True, kp1), (4, 4, False, kp2)]:
        params = init_params(kp, c_in, c_out, ds)
        out = jax.block_until_ready(fwd(x, params, ds))
        ref = ref_forward(x, params, ds)
        err = float(jnp.max(jnp.abs(out - ref)))
        if not (err < 1e-2):
            ok = False
            print(f"mismatch (c_in={c_in}, c_out={c_out}, ds={ds}): max abs err = {err}")

    if ok:
        print("KERNEL_OK")
</pallas_src>

<mosaic_0001>
module attributes {stable_mosaic.version = 11 : i64} {
  func.func @_bn_stats_kernel(%arg0: i32, %arg1: memref<512x128xf32, #tpu.memory_space<vmem>>, %arg2: memref<1x128xf32, #tpu.memory_space<vmem>>, %arg3: memref<1x128xf32, #tpu.memory_space<vmem>>) attributes {dimension_semantics = [#tpu.dimension_semantics<arbitrary>], iteration_bounds = array<i64: 1>, scalar_prefetch = 0 : i64, scratch_operands = 0 : i64, tpu.core_type = #tpu.core_type<tc>, window_params = [{transform_indices = @transform_0, window_bounds = array<i64: 512, 128>}, {pipeline_mode = #tpu.pipeline_mode<synchronous>, transform_indices = @transform_1, window_bounds = array<i64: 1, 128>}, {pipeline_mode = #tpu.pipeline_mode<synchronous>, transform_indices = @transform_2, window_bounds = array<i64: 1, 128>}]} {
    %c0_i32 = arith.constant 0 : i32
    %0 = arith.cmpi eq, %arg0, %c0_i32 : i32
    %1 = arith.extui %0 : i1 to i32
    %c0_i32_0 = arith.constant 0 : i32
    %2 = arith.cmpi ne, %1, %c0_i32_0 : i32
    scf.if %2 {
      %cst_11 = arith.constant 0.000000e+00 : f32
      %15 = vector.broadcast %cst_11 : f32 to vector<1x128xf32>
      %c0_12 = arith.constant 0 : index
      %c0_13 = arith.constant 0 : index
      %16 = vector.load %arg2[%c0_12, %c0_13] : memref<1x128xf32, #tpu.memory_space<vmem>>, vector<1x128xf32>
      tpu.vector_store %arg2[%c0_12, %c0_13], %15 {strides = array<i32>} : memref<1x128xf32, #tpu.memory_space<vmem>>, vector<1x128xf32>,
      %cst_14 = arith.constant 0.000000e+00 : f32
      %17 = vector.broadcast %cst_14 : f32 to vector<1x128xf32>
      %c0_15 = arith.constant 0 : index
      %c0_16 = arith.constant 0 : index
      %18 = vector.load %arg3[%c0_15, %c0_16] : memref<1x128xf32, #tpu.memory_space<vmem>>, vector<1x128xf32>
      tpu.vector_store %arg3[%c0_15, %c0_16], %17 {strides = array<i32>} : memref<1x128xf32, #tpu.memory_space<vmem>>, vector<1x128xf32>,
    } else {
    }
    %c0 = arith.constant 0 : index
    %c0_1 = arith.constant 0 : index
    %3 = vector.load %arg1[%c0, %c0_1] : memref<512x128xf32, #tpu.memory_space<vmem>>, vector<512x128xf32>
    %c0_2 = arith.constant 0 : index
    %c0_3 = arith.constant 0 : index
    %4 = vector.load %arg2[%c0_2, %c0_3] : memref<1x128xf32, #tpu.memory_space<vmem>>, vector<1x128xf32>
    %cst = arith.constant dense<0.000000e+00> : vector<128xf32>
    %5 = vector.multi_reduction <add>, %3, %cst [0] : vector<512x128xf32> to vector<128xf32>
    %6 = vector.shape_cast %5 : vector<128xf32> to vector<1x128xf32>
    %7 = arith.addf %4, %6 : vector<1x128xf32>
    %c0_4 = arith.constant 0 : index
    %c0_5 = arith.constant 0 : index
    %8 = vector.load %arg2[%c0_4, %c0_5] : memref<1x128xf32, #tpu.memory_space<vmem>>, vector<1x128xf32>
    tpu.vector_store %arg2[%c0_4, %c0_5], %7 {strides = array<i32>} : memref<1x128xf32, #tpu.memory_space<vmem>>, vector<1x128xf32>,
    %c0_6 = arith.constant 0 : index
    %c0_7 = arith.constant 0 : index
    %9 = vector.load %arg3[%c0_6, %c0_7] : memref<1x128xf32, #tpu.memory_space<vmem>>, vector<1x128xf32>
    %10 = arith.mulf %3, %3 : vector<512x128xf32>
    %cst_8 = arith.constant dense<0.000000e+00> : vector<128xf32>
    %11 = vector.multi_reduction <add>, %10, %cst_8 [0] : vector<512x128xf32> to vector<128xf32>
    %12 = vector.shape_cast %11 : vector<128xf32> to vector<1x128xf32>
    %13 = arith.addf %9, %12 : vector<1x128xf32>
    %c0_9 = arith.constant 0 : index
    %c0_10 = arith.constant 0 : index
    %14 = vector.load %arg3[%c0_9, %c0_10] : memref<1x128xf32, #tpu.memory_space<vmem>>, vector<1x128xf32>
    tpu.vector_store %arg3[%c0_9, %c0_10], %13 {strides = array<i32>} : memref<1x128xf32, #tpu.memory_space<vmem>>, vector<1x128xf32>,
    return
  }
  func.func @transform_0(%arg0: i32) -> (i32, i32) {
    %c0_i32 = arith.constant 0 : i32
    %c0_i32_0 = arith.constant 0 : i32
    return %arg0, %c0_i32 : i32, i32
  }
  func.func @transform_1(%arg0: i32) -> (i32, i32) {
    %c0_i32 = arith.constant 0 : i32
    %c0_i32_0 = arith.constant 0 : i32
    %c0_i32_1 = arith.constant 0 : i32
    return %c0_i32, %c0_i32_0 : i32, i32
  }
  func.func @transform_2(%arg0: i32) -> (i32, i32) {
    %c0_i32 = arith.constant 0 : i32
    %c0_i32_0 = arith.constant 0 : i32
    %c0_i32_1 = arith.constant 0 : i32
    return %c0_i32, %c0_i32_0 : i32, i32
  }
}

module attributes {stable_mosaic.version = 11 : i64} {
  func.func @_bn_apply_lrelu_kernel(%arg0: i32, %arg1: memref<512x128xf32, #tpu.memory_space<vmem>>, %arg2: memref<1x128xf32, #tpu.memory_space<vmem>>, %arg3: memref<1x128xf32, #tpu.memory_space<vmem>>, %arg4: memref<512x128xbf16, #tpu.memory_space<vmem>>) attributes {dimension_semantics = [#tpu.dimension_semantics<parallel>], iteration_bounds = array<i64: 1>, scalar_prefetch = 0 : i64, scratch_operands = 0 : i64, tpu.core_type = #tpu.core_type<tc>, window_params = [{transform_indices = @transform_0, window_bounds = array<i64: 512, 128>}, {pipeline_mode = #tpu.pipeline_mode<synchronous>, transform_indices = @transform_1, window_bounds = array<i64: 1, 128>}, {pipeline_mode = #tpu.pipeline_mode<synchronous>, transform_indices = @transform_2, window_bounds = array<i64: 1, 128>}, {transform_indices = @transform_3, window_bounds = array<i64: 512, 128>}]} {
    %c0 = arith.constant 0 : index
    %c0_0 = arith.constant 0 : index
    %0 = vector.load %arg1[%c0, %c0_0] : memref<512x128xf32, #tpu.memory_space<vmem>>, vector<512x128xf32>
    %c0_1 = arith.constant 0 : index
    %c0_2 = arith.constant 0 : index
    %1 = vector.load %arg2[%c0_1, %c0_2] : memref<1x128xf32, #tpu.memory_space<vmem>>, vector<1x128xf32>
    %2 = vector.broadcast %1 : vector<1x128xf32> to vector<512x128xf32>
    %3 = arith.mulf %0, %2 : vector<512x128xf32>
    %c0_3 = arith.constant 0 : index
    %c0_4 = arith.constant 0 : index
    %4 = vector.load %arg3[%c0_3, %c0_4] : memref<1x128xf32, #tpu.memory_space<vmem>>, vector<1x128xf32>
    %5 = vector.broadcast %4 : vector<1x128xf32> to vector<512x128xf32>
    %6 = arith.addf %3, %5 : vector<512x128xf32>
    %cst = arith.constant 0.000000e+00 : f32
    %7 = vector.broadcast %cst : f32 to vector<512x128xf32>
    %8 = arith.cmpf ogt, %6, %7 : vector<512x128xf32>
    %cst_5 = arith.constant 0.00999999977 : f32
    %9 = vector.broadcast %cst_5 : f32 to vector<512x128xf32>
    %10 = arith.mulf %9, %6 : vector<512x128xf32>
    %11 = arith.select %8, %6, %10 : vector<512x128xi1>, vector<512x128xf32>
    %12 = arith.truncf %11 : vector<512x128xf32> to vector<512x128xbf16>
    %c0_6 = arith.constant 0 : index
    %c0_7 = arith.constant 0 : index
    %13 = vector.load %arg4[%c0_6, %c0_7] : memref<512x128xbf16, #tpu.memory_space<vmem>>, vector<512x128xbf16>
    tpu.vector_store %arg4[%c0_6, %c0_7], %12 {strides = array<i32>} : memref<512x128xbf16, #tpu.memory_space<vmem>>, vector<512x128xbf16>,
    return
  }
  func.func @transform_0(%arg0: i32) -> (i32, i32) {
    %c0_i32 = arith.constant 0 : i32
    %c0_i32_0 = arith.constant 0 : i32
    return %arg0, %c0_i32 : i32, i32
  }
  func.func @transform_1(%arg0: i32) -> (i32, i32) {
    %c0_i32 = arith.constant 0 : i32
    %c0_i32_0 = arith.constant 0 : i32
    %c0_i32_1 = arith.constant 0 : i32
    return %c0_i32, %c0_i32_0 : i32, i32
  }
  func.func @transform_2(%arg0: i32) -> (i32, i32) {
    %c0_i32 = arith.constant 0 : i32
    %c0_i32_0 = arith.constant 0 : i32
    %c0_i32_1 = arith.constant 0 : i32
    return %c0_i32, %c0_i32_0 : i32, i32
  }
  func.func @transform_3(%arg0: i32) -> (i32, i32) {
    %c0_i32 = arith.constant 0 : i32
    %c0_i32_0 = arith.constant 0 : i32
    return %arg0, %c0_i32 : i32, i32
  }
}

module attributes {stable_mosaic.version = 11 : i64} {
  func.func @_mm_kernel(%arg0: i32, %arg1: i32, %arg2: i32, %arg3: memref<128x384xbf16, #tpu.memory_space<vmem>>, %arg4: memref<384x128xbf16, #tpu.memory_space<vmem>>, %arg5: memref<128x128xf32, #tpu.memory_space<vmem>>, %arg6: memref<128x128xf32, #tpu.memory_space<vmem>>) attributes {dimension_semantics = [#tpu.dimension_semantics<parallel>, #tpu.dimension_semantics<parallel>, #tpu.dimension_semantics<arbitrary>], iteration_bounds = array<i64: 1, 1, 3>, scalar_prefetch = 0 : i64, scratch_operands = 1 : i64, tpu.core_type = #tpu.core_type<tc>, window_params = [{transform_indices = @transform_0, window_bounds = array<i64: 128, 384>}, {transform_indices = @transform_1, window_bounds = array<i64: 384, 128>}, {transform_indices = @transform_2, window_bounds = array<i64: 128, 128>}]} {
    %c0_i32 = arith.constant 0 : i32
    %0 = arith.cmpi eq, %arg2, %c0_i32 : i32
    %1 = arith.extui %0 : i1 to i32
    %c0_i32_0 = arith.constant 0 : i32
    %2 = arith.cmpi ne, %1, %c0_i32_0 : i32
    scf.if %2 {
      %cst_9 = arith.constant 0.000000e+00 : f32
      %12 = vector.broadcast %cst_9 : f32 to vector<128x128xf32>
      %c0_10 = arith.constant 0 : index
      %c0_11 = arith.constant 0 : index
      %13 = vector.load %arg6[%c0_10, %c0_11] : memref<128x128xf32, #tpu.memory_space<vmem>>, vector<128x128xf32>
      tpu.vector_store %arg6[%c0_10, %c0_11], %12 {strides = array<i32>} : memref<128x128xf32, #tpu.memory_space<vmem>>, vector<128x128xf32>,
    } else {
    }
    %c0 = arith.constant 0 : index
    %c0_1 = arith.constant 0 : index
    %3 = vector.load %arg6[%c0, %c0_1] : memref<128x128xf32, #tpu.memory_space<vmem>>, vector<128x128xf32>
    %c0_2 = arith.constant 0 : index
    %c0_3 = arith.constant 0 : index
    %4 = vector.load %arg3[%c0_2, %c0_3] : memref<128x384xbf16, #tpu.memory_space<vmem>>, vector<128x384xbf16>
    %c0_4 = arith.constant 0 : index
    %c0_5 = arith.constant 0 : index
    %5 = vector.load %arg4[%c0_4, %c0_5] : memref<384x128xbf16, #tpu.memory_space<vmem>>, vector<384x128xbf16>
    %cst = arith.constant dense<0.000000e+00> : vector<128x128xf32>
    %6 = tpu.matmul %4, %5, %cst {dimension_numbers = #tpu.dot_dimension_numbers<[1], [0], [0], [1], [0, 0, 1, 1], [], []>} : vector<128x384xbf16>, vector<384x128xbf16>, vector<128x128xf32> -> vector<128x128xf32>
    %7 = arith.addf %3, %6 : vector<128x128xf32>
    %c0_6 = arith.constant 0 : index
    %c0_7 = arith.constant 0 : index
    %8 = vector.load %arg6[%c0_6, %c0_7] : memref<128x128xf32, #tpu.memory_space<vmem>>, vector<128x128xf32>
    tpu.vector_store %arg6[%c0_6, %c0_7], %7 {strides = array<i32>} : memref<128x128xf32, #tpu.memory_space<vmem>>, vector<128x128xf32>,
    %c2_i32 = arith.constant 2 : i32
    %9 = arith.cmpi eq, %arg2, %c2_i32 : i32
    %10 = arith.extui %9 : i1 to i32
    %c0_i32_8 = arith.constant 0 : i32
    %11 = arith.cmpi ne, %10, %c0_i32_8 : i32
    scf.if %11 {
      %c0_9 = arith.constant 0 : index
      %c0_10 = arith.constant 0 : index
      %12 = vector.load %arg6[%c0_9, %c0_10] : memref<128x128xf32, #tpu.memory_space<vmem>>, vector<128x128xf32>
      %c0_11 = arith.constant 0 : index
      %c0_12 = arith.constant 0 : index
      %13 = vector.load %arg5[%c0_11, %c0_12] : memref<128x128xf32, #tpu.memory_space<vmem>>, vector<128x128xf32>
      tpu.vector_store %arg5[%c0_11, %c0_12], %12 {strides = array<i32>} : memref<128x128xf32, #tpu.memory_space<vmem>>, vector<128x128xf32>,
    } else {
    }
    return
  }
  func.func @transform_0(%arg0: i32, %arg1: i32, %arg2: i32) -> (i32, i32) {
    %c0_i32 = arith.constant 0 : i32
    return %arg0, %arg2 : i32, i32
  }
  func.func @transform_1(%arg0: i32, %arg1: i32, %arg2: i32) -> (i32, i32) {
    %c0_i32 = arith.constant 0 : i32
    return %arg2, %arg1 : i32, i32
  }
  func.func @transform_2(%arg0: i32, %arg1: i32, %arg2: i32) -> (i32, i32) {
    %c0_i32 = arith.constant 0 : i32
    return %arg0, %arg1 : i32, i32
  }
}

module attributes {stable_mosaic.version = 11 : i64} {
  func.func @_bn_stats_kernel(%arg0: i32, %arg1: memref<128x128xf32, #tpu.memory_space<vmem>>, %arg2: memref<1x128xf32, #tpu.memory_space<vmem>>, %arg3: memref<1x128xf32, #tpu.memory_space<vmem>>) attributes {dimension_semantics = [#tpu.dimension_semantics<arbitrary>], iteration_bounds = array<i64: 1>, scalar_prefetch = 0 : i64, scratch_operands = 0 : i64, tpu.core_type = #tpu.core_type<tc>, window_params = [{transform_indices = @transform_0, window_bounds = array<i64: 128, 128>}, {pipeline_mode = #tpu.pipeline_mode<synchronous>, transform_indices = @transform_1, window_bounds = array<i64: 1, 128>}, {pipeline_mode = #tpu.pipeline_mode<synchronous>, transform_indices = @transform_2, window_bounds = array<i64: 1, 128>}]} {
    %c0_i32 = arith.constant 0 : i32
    %0 = arith.cmpi eq, %arg0, %c0_i32 : i32
    %1 = arith.extui %0 : i1 to i32
    %c0_i32_0 = arith.constant 0 : i32
    %2 = arith.cmpi ne, %1, %c0_i32_0 : i32
    scf.if %2 {
      %cst_11 = arith.constant 0.000000e+00 : f32
      %15 = vector.broadcast %cst_11 : f32 to vector<1x128xf32>
      %c0_12 = arith.constant 0 : index
      %c0_13 = arith.constant 0 : index
      %16 = vector.load %arg2[%c0_12, %c0_13] : memref<1x128xf32, #tpu.memory_space<vmem>>, vector<1x128xf32>
      tpu.vector_store %arg2[%c0_12, %c0_13], %15 {strides = array<i32>} : memref<1x128xf32, #tpu.memory_space<vmem>>, vector<1x128xf32>,
      %cst_14 = arith.constant 0.000000e+00 : f32
      %17 = vector.broadcast %cst_14 : f32 to vector<1x128xf32>
      %c0_15 = arith.constant 0 : index
      %c0_16 = arith.constant 0 : index
      %18 = vector.load %arg3[%c0_15, %c0_16] : memref<1x128xf32, #tpu.memory_space<vmem>>, vector<1x128xf32>
      tpu.vector_store %arg3[%c0_15, %c0_16], %17 {strides = array<i32>} : memref<1x128xf32, #tpu.memory_space<vmem>>, vector<1x128xf32>,
    } else {
    }
    %c0 = arith.constant 0 : index
    %c0_1 = arith.constant 0 : index
    %3 = vector.load %arg1[%c0, %c0_1] : memref<128x128xf32, #tpu.memory_space<vmem>>, vector<128x128xf32>
    %c0_2 = arith.constant 0 : index
    %c0_3 = arith.constant 0 : index
    %4 = vector.load %arg2[%c0_2, %c0_3] : memref<1x128xf32, #tpu.memory_space<vmem>>, vector<1x128xf32>
    %cst = arith.constant dense<0.000000e+00> : vector<128xf32>
    %5 = vector.multi_reduction <add>, %3, %cst [0] : vector<128x128xf32> to vector<128xf32>
    %6 = vector.shape_cast %5 : vector<128xf32> to vector<1x128xf32>
    %7 = arith.addf %4, %6 : vector<1x128xf32>
    %c0_4 = arith.constant 0 : index
    %c0_5 = arith.constant 0 : index
    %8 = vector.load %arg2[%c0_4, %c0_5] : memref<1x128xf32, #tpu.memory_space<vmem>>, vector<1x128xf32>
    tpu.vector_store %arg2[%c0_4, %c0_5], %7 {strides = array<i32>} : memref<1x128xf32, #tpu.memory_space<vmem>>, vector<1x128xf32>,
    %c0_6 = arith.constant 0 : index
    %c0_7 = arith.constant 0 : index
    %9 = vector.load %arg3[%c0_6, %c0_7] : memref<1x128xf32, #tpu.memory_space<vmem>>, vector<1x128xf32>
    %10 = arith.mulf %3, %3 : vector<128x128xf32>
    %cst_8 = arith.constant dense<0.000000e+00> : vector<128xf32>
    %11 = vector.multi_reduction <add>, %10, %cst_8 [0] : vector<128x128xf32> to vector<128xf32>
    %12 = vector.shape_cast %11 : vector<128xf32> to vector<1x128xf32>
    %13 = arith.addf %9, %12 : vector<1x128xf32>
    %c0_9 = arith.constant 0 : index
    %c0_10 = arith.constant 0 : index
    %14 = vector.load %arg3[%c0_9, %c0_10] : memref<1x128xf32, #tpu.memory_space<vmem>>, vector<1x128xf32>
    tpu.vector_store %arg3[%c0_9, %c0_10], %13 {strides = array<i32>} : memref<1x128xf32, #tpu.memory_space<vmem>>, vector<1x128xf32>,
    return
  }
  func.func @transform_0(%arg0: i32) -> (i32, i32) {
    %c0_i32 = arith.constant 0 : i32
    %c0_i32_0 = arith.constant 0 : i32
    return %arg0, %c0_i32 : i32, i32
  }
  func.func @transform_1(%arg0: i32) -> (i32, i32) {
    %c0_i32 = arith.constant 0 : i32
    %c0_i32_0 = arith.constant 0 : i32
    %c0_i32_1 = arith.constant 0 : i32
    return %c0_i32, %c0_i32_0 : i32, i32
  }
  func.func @transform_2(%arg0: i32) -> (i32, i32) {
    %c0_i32 = arith.constant 0 : i32
    %c0_i32_0 = arith.constant 0 : i32
    %c0_i32_1 = arith.constant 0 : i32
    return %c0_i32, %c0_i32_0 : i32, i32
  }
}

module attributes {stable_mosaic.version = 11 : i64} {
  func.func @_bn_apply_lrelu_kernel(%arg0: i32, %arg1: memref<128x128xf32, #tpu.memory_space<vmem>>, %arg2: memref<1x128xf32, #tpu.memory_space<vmem>>, %arg3: memref<1x128xf32, #tpu.memory_space<vmem>>, %arg4: memref<128x128xbf16, #tpu.memory_space<vmem>>) attributes {dimension_semantics = [#tpu.dimension_semantics<parallel>], iteration_bounds = array<i64: 1>, scalar_prefetch = 0 : i64, scratch_operands = 0 : i64, tpu.core_type = #tpu.core_type<tc>, window_params = [{transform_indices = @transform_0, window_bounds = array<i64: 128, 128>}, {pipeline_mode = #tpu.pipeline_mode<synchronous>, transform_indices = @transform_1, window_bounds = array<i64: 1, 128>}, {pipeline_mode = #tpu.pipeline_mode<synchronous>, transform_indices = @transform_2, window_bounds = array<i64: 1, 128>}, {transform_indices = @transform_3, window_bounds = array<i64: 128, 128>}]} {
    %c0 = arith.constant 0 : index
    %c0_0 = arith.constant 0 : index
    %0 = vector.load %arg1[%c0, %c0_0] : memref<128x128xf32, #tpu.memory_space<vmem>>, vector<128x128xf32>
    %c0_1 = arith.constant 0 : index
    %c0_2 = arith.constant 0 : index
    %1 = vector.load %arg2[%c0_1, %c0_2] : memref<1x128xf32, #tpu.memory_space<vmem>>, vector<1x128xf32>
    %2 = vector.broadcast %1 : vector<1x128xf32> to vector<128x128xf32>
    %3 = arith.mulf %0, %2 : vector<128x128xf32>
    %c0_3 = arith.constant 0 : index
    %c0_4 = arith.constant 0 : index
    %4 = vector.load %arg3[%c0_3, %c0_4] : memref<1x128xf32, #tpu.memory_space<vmem>>, vector<1x128xf32>
    %5 = vector.broadcast %4 : vector<1x128xf32> to vector<128x128xf32>
    %6 = arith.addf %3, %5 : vector<128x128xf32>
    %cst = arith.constant 0.000000e+00 : f32
    %7 = vector.broadcast %cst : f32 to vector<128x128xf32>
    %8 = arith.cmpf ogt, %6, %7 : vector<128x128xf32>
    %cst_5 = arith.constant 0.00999999977 : f32
    %9 = vector.broadcast %cst_5 : f32 to vector<128x128xf32>
    %10 = arith.mulf %9, %6 : vector<128x128xf32>
    %11 = arith.select %8, %6, %10 : vector<128x128xi1>, vector<128x128xf32>
    %12 = arith.truncf %11 : vector<128x128xf32> to vector<128x128xbf16>
    %c0_6 = arith.constant 0 : index
    %c0_7 = arith.constant 0 : index
    %13 = vector.load %arg4[%c0_6, %c0_7] : memref<128x128xbf16, #tpu.memory_space<vmem>>, vector<128x128xbf16>
    tpu.vector_store %arg4[%c0_6, %c0_7], %12 {strides = array<i32>} : memref<128x128xbf16, #tpu.memory_space<vmem>>, vector<128x128xbf16>,
    return
  }
  func.func @transform_0(%arg0: i32) -> (i32, i32) {
    %c0_i32 = arith.constant 0 : i32
    %c0_i32_0 = arith.constant 0 : i32
    return %arg0, %c0_i32 : i32, i32
  }
  func.func @transform_1(%arg0: i32) -> (i32, i32) {
    %c0_i32 = arith.constant 0 : i32
    %c0_i32_0 = arith.constant 0 : i32
    %c0_i32_1 = arith.constant 0 : i32
    return %c0_i32, %c0_i32_0 : i32, i32
  }
  func.func @transform_2(%arg0: i32) -> (i32, i32) {
    %c0_i32 = arith.constant 0 : i32
    %c0_i32_0 = arith.constant 0 : i32
    %c0_i32_1 = arith.constant 0 : i32
    return %c0_i32, %c0_i32_0 : i32, i32
  }
  func.func @transform_3(%arg0: i32) -> (i32, i32) {
    %c0_i32 = arith.constant 0 : i32
    %c0_i32_0 = arith.constant 0 : i32
    return %arg0, %c0_i32 : i32, i32
  }
}

module attributes {stable_mosaic.version = 11 : i64} {
  func.func @_mm_kernel(%arg0: i32, %arg1: i32, %arg2: i32, %arg3: memref<128x128xbf16, #tpu.memory_space<vmem>>, %arg4: memref<128x128xbf16, #tpu.memory_space<vmem>>, %arg5: memref<128x128xf32, #tpu.memory_space<vmem>>, %arg6: memref<128x128xf32, #tpu.memory_space<vmem>>) attributes {dimension_semantics = [#tpu.dimension_semantics<parallel>, #tpu.dimension_semantics<parallel>, #tpu.dimension_semantics<arbitrary>], iteration_bounds = array<i64: 1, 1, 1>, scalar_prefetch = 0 : i64, scratch_operands = 1 : i64, tpu.core_type = #tpu.core_type<tc>, window_params = [{transform_indices = @transform_0, window_bounds = array<i64: 128, 128>}, {transform_indices = @transform_1, window_bounds = array<i64: 128, 128>}, {transform_indices = @transform_2, window_bounds = array<i64: 128, 128>}]} {
    %c0_i32 = arith.constant 0 : i32
    %0 = arith.cmpi eq, %arg2, %c0_i32 : i32
    %1 = arith.extui %0 : i1 to i32
    %c0_i32_0 = arith.constant 0 : i32
    %2 = arith.cmpi ne, %1, %c0_i32_0 : i32
    scf.if %2 {
      %cst_10 = arith.constant 0.000000e+00 : f32
      %12 = vector.broadcast %cst_10 : f32 to vector<128x128xf32>
      %c0_11 = arith.constant 0 : index
      %c0_12 = arith.constant 0 : index
      %13 = vector.load %arg6[%c0_11, %c0_12] : memref<128x128xf32, #tpu.memory_space<vmem>>, vector<128x128xf32>
      tpu.vector_store %arg6[%c0_11, %c0_12], %12 {strides = array<i32>} : memref<128x128xf32, #tpu.memory_space<vmem>>, vector<128x128xf32>,
    } else {
    }
    %c0 = arith.constant 0 : index
    %c0_1 = arith.constant 0 : index
    %3 = vector.load %arg6[%c0, %c0_1] : memref<128x128xf32, #tpu.memory_space<vmem>>, vector<128x128xf32>
    %c0_2 = arith.constant 0 : index
    %c0_3 = arith.constant 0 : index
    %4 = vector.load %arg3[%c0_2, %c0_3] : memref<128x128xbf16, #tpu.memory_space<vmem>>, vector<128x128xbf16>
    %c0_4 = arith.constant 0 : index
    %c0_5 = arith.constant 0 : index
    %5 = vector.load %arg4[%c0_4, %c0_5] : memref<128x128xbf16, #tpu.memory_space<vmem>>, vector<128x128xbf16>
    %cst = arith.constant dense<0.000000e+00> : vector<128x128xf32>
    %6 = tpu.matmul %4, %5, %cst {dimension_numbers = #tpu.dot_dimension_numbers<[1], [0], [0], [1], [0, 0, 1, 1], [], []>} : vector<128x128xbf16>, vector<128x128xbf16>, vector<128x128xf32> -> vector<128x128xf32>
    %7 = arith.addf %3, %6 : vector<128x128xf32>
    %c0_6 = arith.constant 0 : index
    %c0_7 = arith.constant 0 : index
    %8 = vector.load %arg6[%c0_6, %c0_7] : memref<128x128xf32, #tpu.memory_space<vmem>>, vector<128x128xf32>
    tpu.vector_store %arg6[%c0_6, %c0_7], %7 {strides = array<i32>} : memref<128x128xf32, #tpu.memory_space<vmem>>, vector<128x128xf32>,
    %c0_i32_8 = arith.constant 0 : i32
    %9 = arith.cmpi eq, %arg2, %c0_i32_8 : i32
    %10 = arith.extui %9 : i1 to i32
    %c0_i32_9 = arith.constant 0 : i32
    %11 = arith.cmpi ne, %10, %c0_i32_9 : i32
    scf.if %11 {
      %c0_10 = arith.constant 0 : index
      %c0_11 = arith.constant 0 : index
      %12 = vector.load %arg6[%c0_10, %c0_11] : memref<128x128xf32, #tpu.memory_space<vmem>>, vector<128x128xf32>
      %c0_12 = arith.constant 0 : index
      %c0_13 = arith.constant 0 : index
      %13 = vector.load %arg5[%c0_12, %c0_13] : memref<128x128xf32, #tpu.memory_space<vmem>>, vector<128x128xf32>
      tpu.vector_store %arg5[%c0_12, %c0_13], %12 {strides = array<i32>} : memref<128x128xf32, #tpu.memory_space<vmem>>, vector<128x128xf32>,
    } else {
    }
    return
  }
  func.func @transform_0(%arg0: i32, %arg1: i32, %arg2: i32) -> (i32, i32) {
    %c0_i32 = arith.constant 0 : i32
    return %arg0, %arg2 : i32, i32
  }
  func.func @transform_1(%arg0: i32, %arg1: i32, %arg2: i32) -> (i32, i32) {
    %c0_i32 = arith.constant 0 : i32
    return %arg2, %arg1 : i32, i32
  }
  func.func @transform_2(%arg0: i32, %arg1: i32, %arg2: i32) -> (i32, i32) {
    %c0_i32 = arith.constant 0 : i32
    return %arg0, %arg1 : i32, i32
  }
}

module attributes {stable_mosaic.version = 11 : i64} {
  func.func @_mm_res_kernel(%arg0: i32, %arg1: i32, %arg2: i32, %arg3: memref<128x384xbf16, #tpu.memory_space<vmem>>, %arg4: memref<384x128xbf16, #tpu.memory_space<vmem>>, %arg5: memref<128x128xf32, #tpu.memory_space<vmem>>, %arg6: memref<128x128xf32, #tpu.memory_space<vmem>>, %arg7: memref<128x128xf32, #tpu.memory_space<vmem>>) attributes {dimension_semantics = [#tpu.dimension_semantics<parallel>, #tpu.dimension_semantics<parallel>, #tpu.dimension_semantics<arbitrary>], iteration_bounds = array<i64: 1, 1, 3>, scalar_prefetch = 0 : i64, scratch_operands = 1 : i64, tpu.core_type = #tpu.core_type<tc>, window_params = [{transform_indices = @transform_0, window_bounds = array<i64: 128, 384>}, {transform_indices = @transform_1, window_bounds = array<i64: 384, 128>}, {transform_indices = @transform_2, window_bounds = array<i64: 128, 128>}, {transform_indices = @transform_3, window_bounds = array<i64: 128, 128>}]} {
    %c0_i32 = arith.constant 0 : i32
    %0 = arith.cmpi eq, %arg2, %c0_i32 : i32
    %1 = arith.extui %0 : i1 to i32
    %c0_i32_0 = arith.constant 0 : i32
    %2 = arith.cmpi ne, %1, %c0_i32_0 : i32
    scf.if %2 {
      %cst_9 = arith.constant 0.000000e+00 : f32
      %12 = vector.broadcast %cst_9 : f32 to vector<128x128xf32>
      %c0_10 = arith.constant 0 : index
      %c0_11 = arith.constant 0 : index
      %13 = vector.load %arg7[%c0_10, %c0_11] : memref<128x128xf32, #tpu.memory_space<vmem>>, vector<128x128xf32>
      tpu.vector_store %arg7[%c0_10, %c0_11], %12 {strides = array<i32>} : memref<128x128xf32, #tpu.memory_space<vmem>>, vector<128x128xf32>,
    } else {
    }
    %c0 = arith.constant 0 : index
    %c0_1 = arith.constant 0 : index
    %3 = vector.load %arg7[%c0, %c0_1] : memref<128x128xf32, #tpu.memory_space<vmem>>, vector<128x128xf32>
    %c0_2 = arith.constant 0 : index
    %c0_3 = arith.constant 0 : index
    %4 = vector.load %arg3[%c0_2, %c0_3] : memref<128x384xbf16, #tpu.memory_space<vmem>>, vector<128x384xbf16>
    %c0_4 = arith.constant 0 : index
    %c0_5 = arith.constant 0 : index
    %5 = vector.load %arg4[%c0_4, %c0_5] : memref<384x128xbf16, #tpu.memory_space<vmem>>, vector<384x128xbf16>
    %cst = arith.constant dense<0.000000e+00> : vector<128x128xf32>
    %6 = tpu.matmul %4, %5, %cst {dimension_numbers = #tpu.dot_dimension_numbers<[1], [0], [0], [1], [0, 0, 1, 1], [], []>} : vector<128x384xbf16>, vector<384x128xbf16>, vector<128x128xf32> -> vector<128x128xf32>
    %7 = arith.addf %3, %6 : vector<128x128xf32>
    %c0_6 = arith.constant 0 : index
    %c0_7 = arith.constant 0 : index
    %8 = vector.load %arg7[%c0_6, %c0_7] : memref<128x128xf32, #tpu.memory_space<vmem>>, vector<128x128xf32>
    tpu.vector_store %arg7[%c0_6, %c0_7], %7 {strides = array<i32>} : memref<128x128xf32, #tpu.memory_space<vmem>>, vector<128x128xf32>,
    %c2_i32 = arith.constant 2 : i32
    %9 = arith.cmpi eq, %arg2, %c2_i32 : i32
    %10 = arith.extui %9 : i1 to i32
    %c0_i32_8 = arith.constant 0 : i32
    %11 = arith.cmpi ne, %10, %c0_i32_8 : i32
    scf.if %11 {
      %c0_9 = arith.constant 0 : index
      %c0_10 = arith.constant 0 : index
      %12 = vector.load %arg7[%c0_9, %c0_10] : memref<128x128xf32, #tpu.memory_space<vmem>>, vector<128x128xf32>
      %c0_11 = arith.constant 0 : index
      %c0_12 = arith.constant 0 : index
      %13 = vector.load %arg5[%c0_11, %c0_12] : memref<128x128xf32, #tpu.memory_space<vmem>>, vector<128x128xf32>
      %14 = arith.addf %12, %13 : vector<128x128xf32>
      %c0_13 = arith.constant 0 : index
      %c0_14 = arith.constant 0 : index
      %15 = vector.load %arg6[%c0_13, %c0_14] : memref<128x128xf32, #tpu.memory_space<vmem>>, vector<128x128xf32>
      tpu.vector_store %arg6[%c0_13, %c0_14], %14 {strides = array<i32>} : memref<128x128xf32, #tpu.memory_space<vmem>>, vector<128x128xf32>,
    } else {
    }
    return
  }
  func.func @transform_0(%arg0: i32, %arg1: i32, %arg2: i32) -> (i32, i32) {
    %c0_i32 = arith.constant 0 : i32
    return %arg0, %arg2 : i32, i32
  }
  func.func @transform_1(%arg0: i32, %arg1: i32, %arg2: i32) -> (i32, i32) {
    %c0_i32 = arith.constant 0 : i32
    return %arg2, %arg1 : i32, i32
  }
  func.func @transform_2(%arg0: i32, %arg1: i32, %arg2: i32) -> (i32, i32) {
    %c0_i32 = arith.constant 0 : i32
    return %arg0, %arg1 : i32, i32
  }
  func.func @transform_3(%arg0: i32, %arg1: i32, %arg2: i32) -> (i32, i32) {
    %c0_i32 = arith.constant 0 : i32
    return %arg0, %arg1 : i32, i32
  }
}

</mosaic_0001>

<bundles_post_ra>
// kernel: resnet_block_forward.7
= control target key start
LH: loop header
LB: loop body
LE: loop exit
PB: predicated region body
PF: predicated region fallthrough
CT: control target
= control target key end

     0   :  { %v297_v0 = vmov 0.0   ;;  %s523_s0 = inlined_call_operand.vmem [shape: f32[512,128], index: 0, kind: input, shape index: {}]   ;;  %s524_s1 = inlined_call_operand.vmem [shape: f32[1,128], index: 1, kind: output, shape index: {0}]   ;;  %s525_s2 = inlined_call_operand.vmem [shape: f32[1,128], index: 2, kind: output, shape index: {1}]  }
   0x1   :  { %14 = vst [vmem:[%s524_s1] sm:$0x1] %v297_v0  ;;  %v16_v1 = vld [vmem:[%s523_s0] sm:$0xff]  ;;  %v17_v2 = vld [vmem:[%s523_s0 + $0x8] sm:$0xff]  ;;  %v18_v3 = vld [vmem:[%s523_s0 + $0x10] sm:$0xff] }
   0x2   :  { %15 = vst [vmem:[%s525_s2] sm:$0x1] %v297_v0  ;;  %v19_v4 = vld [vmem:[%s523_s0 + $0x18] sm:$0xff]  ;;  %v81_v5 = vadd.f32 %v17_v2, %v16_v1  ;;  %v153_v6 = vmul.f32 %v16_v1, %v16_v1  ;;  %v154_v7 = vmul.f32 %v17_v2, %v17_v2  ;;  %v155_v8 = vmul.f32 %v18_v3, %v18_v3  ;;  %v20_v9 = vld [vmem:[%s523_s0 + $0x20] sm:$0xff]  ;;  %v21_v13 = vld [vmem:[%s523_s0 + $0x28] sm:$0xff] }
   0x3   :  { %v156_v11 = vmul.f32 %v19_v4, %v19_v4  ;;  %v157_v15 = vmul.f32 %v20_v9, %v20_v9  ;;  %v22_v17 = vld [vmem:[%s523_s0 + $0x30] sm:$0xff]  ;;  %v158_v19 = vmul.f32 %v21_v13, %v21_v13  ;;  %v23_v21 = vld [vmem:[%s523_s0 + $0x38] sm:$0xff]  ;;  %v24_v25 = vld [vmem:[%s523_s0 + $0x40] sm:$0xff] }
   0x4   :  { %v82_v10 = vadd.f32 %v81_v5, %v18_v3  ;;  %v217_v12 = vadd.f32 %v154_v7, %v153_v6  ;;  %v159_v23 = vmul.f32 %v22_v17, %v22_v17  ;;  %v160_v27 = vmul.f32 %v23_v21, %v23_v21  ;;  %v25_v29 = vld [vmem:[%s523_s0 + $0x48] sm:$0xff]  ;;  %v26_v33 = vld [vmem:[%s523_s0 + $0x50] sm:$0xff]  ;;  %v27_v37 = vld [vmem:[%s523_s0 + $0x58] sm:$0xff] }
   0x5   :  { %v161_v31 = vmul.f32 %v24_v25, %v24_v25  ;;  %v162_v35 = vmul.f32 %v25_v29, %v25_v29  ;;  %v163_v39 = vmul.f32 %v26_v33, %v26_v33  ;;  %v28_v41 = vld [vmem:[%s523_s0 + $0x60] sm:$0xff]  ;;  %v164_v43 = vmul.f32 %v27_v37, %v27_v37  ;;  %v29_v45 = vld [vmem:[%s523_s0 + $0x68] sm:$0xff]  ;;  %v30_v49 = vld [vmem:[%s523_s0 + $0x70] sm:$0xff] }
   0x6   :  { %v83_v14 = vadd.f32 %v82_v10, %v19_v4  ;;  %v218_v16 = vadd.f32 %v217_v12, %v155_v8  ;;  %v165_v47 = vmul.f32 %v28_v41, %v28_v41  ;;  %v166_v51 = vmul.f32 %v29_v45, %v29_v45  ;;  %v31_v53 = vld [vmem:[%s523_s0 + $0x78] sm:$0xff]  ;;  %v32_v57 = vld [vmem:[%s523_s0 + $0x80] sm:$0xff]  ;;  %v33_v61 = vld [vmem:[%s523_s0 + $0x88] sm:$0xff] }
   0x7   :  { %v167_v55 = vmul.f32 %v30_v49, %v30_v49  ;;  %v168_v59 = vmul.f32 %v31_v53, %v31_v53  ;;  %v169_v63 = vmul.f32 %v32_v57, %v32_v57  ;;  %v34_v1 = vld [vmem:[%s523_s0 + $0x90] sm:$0xff]  ;;  %v170_v3 = vmul.f32 %v33_v61, %v33_v61  ;;  %v35_v5 = vld [vmem:[%s523_s0 + $0x98] sm:$0xff] }
   0x8   :  { %v84_v18 = vadd.f32 %v83_v14, %v20_v9  ;;  %v219_v20 = vadd.f32 %v218_v16, %v156_v11  ;;  %v171_v7 = vmul.f32 %v34_v1, %v34_v1  ;;  %v36_v9 = vld [vmem:[%s523_s0 + $0xa0] sm:$0xff]  ;;  %v172_v11 = vmul.f32 %v35_v5, %v35_v5 }
   0xa   :  { %v85_v22 = vadd.f32 %v84_v18, %v21_v13  ;;  %v220_v24 = vadd.f32 %v219_v20, %v157_v15  ;;  %v37_v13 = vld [vmem:[%s523_s0 + $0xa8] sm:$0xff]  ;;  %v173_v15 = vmul.f32 %v36_v9, %v36_v9 }
   0xc   :  { %v86_v26 = vadd.f32 %v85_v22, %v22_v17  ;;  %v221_v28 = vadd.f32 %v220_v24, %v158_v19  ;;  %v38_v17 = vld [vmem:[%s523_s0 + $0xb0] sm:$0xff]  ;;  %v174_v19 = vmul.f32 %v37_v13, %v37_v13 }
   0xe   :  { %v87_v30 = vadd.f32 %v86_v26, %v23_v21  ;;  %v222_v32 = vadd.f32 %v221_v28, %v159_v23  ;;  %v39_v21 = vld [vmem:[%s523_s0 + $0xb8] sm:$0xff]  ;;  %v175_v23 = vmul.f32 %v38_v17, %v38_v17 }
  0x10   :  { %v88_v34 = vadd.f32 %v87_v30, %v24_v25  ;;  %v223_v36 = vadd.f32 %v222_v32, %v160_v27  ;;  %v40_v25 = vld [vmem:[%s523_s0 + $0xc0] sm:$0xff]  ;;  %v176_v27 = vmul.f32 %v39_v21, %v39_v21 }
  0x12   :  { %v89_v38 = vadd.f32 %v88_v34, %v25_v29  ;;  %v224_v40 = vadd.f32 %v223_v36, %v161_v31  ;;  %v41_v29 = vld [vmem:[%s523_s0 + $0xc8] sm:$0xff]  ;;  %v177_v31 = vmul.f32 %v40_v25, %v40_v25 }
  0x14   :  { %v90_v42 = vadd.f32 %v89_v38, %v26_v33  ;;  %v225_v44 = vadd.f32 %v224_v40, %v162_v35  ;;  %v42_v33 = vld [vmem:[%s523_s0 + $0xd0] sm:$0xff]  ;;  %v178_v35 = vmul.f32 %v41_v29, %v41_v29 }
  0x16   :  { %v91_v46 = vadd.f32 %v90_v42, %v27_v37  ;;  %v226_v48 = vadd.f32 %v225_v44, %v163_v39  ;;  %v43_v37 = vld [vmem:[%s523_s0 + $0xd8] sm:$0xff]  ;;  %v179_v39 = vmul.f32 %v42_v33, %v42_v33 }
  0x18   :  { %v92_v50 = vadd.f32 %v91_v46, %v28_v41  ;;  %v227_v52 = vadd.f32 %v226_v48, %v164_v43  ;;  %v44_v41 = vld [vmem:[%s523_s0 + $0xe0] sm:$0xff]  ;;  %v180_v43 = vmul.f32 %v43_v37, %v43_v37 }
  0x1a   :  { %v93_v54 = vadd.f32 %v92_v50, %v29_v45  ;;  %v228_v56 = vadd.f32 %v227_v52, %v165_v47  ;;  %v45_v45 = vld [vmem:[%s523_s0 + $0xe8] sm:$0xff]  ;;  %v181_v47 = vmul.f32 %v44_v41, %v44_v41 }
  0x1c   :  { %v94_v58 = vadd.f32 %v93_v54, %v30_v49  ;;  %v229_v60 = vadd.f32 %v228_v56, %v166_v51  ;;  %v46_v49 = vld [vmem:[%s523_s0 + $0xf0] sm:$0xff]  ;;  %v182_v51 = vmul.f32 %v45_v45, %v45_v45 }
  0x1e   :  { %v95_v62 = vadd.f32 %v94_v58, %v31_v53  ;;  %v230_v0 = vadd.f32 %v229_v60, %v167_v55  ;;  %v47_v53 = vld [vmem:[%s523_s0 + $0xf8] sm:$0xff]  ;;  %v183_v55 = vmul.f32 %v46_v49, %v46_v49 }
  0x20   :  { %v96_v2 = vadd.f32 %v95_v62, %v32_v57  ;;  %v231_v4 = vadd.f32 %v230_v0, %v168_v59  ;;  %v48_v57 = vld [vmem:[%s523_s0 + $0x100] sm:$0xff]  ;;  %v184_v59 = vmul.f32 %v47_v53, %v47_v53 }
  0x22   :  { %v97_v6 = vadd.f32 %v96_v2, %v33_v61  ;;  %v232_v8 = vadd.f32 %v231_v4, %v169_v63  ;;  %v49_v61 = vld [vmem:[%s523_s0 + $0x108] sm:$0xff]  ;;  %v185_v63 = vmul.f32 %v48_v57, %v48_v57 }
  0x24   :  { %v98_v10 = vadd.f32 %v97_v6, %v34_v1  ;;  %v233_v12 = vadd.f32 %v232_v8, %v170_v3  ;;  %v50_v1 = vld [vmem:[%s523_s0 + $0x110] sm:$0xff]  ;;  %v186_v3 = vmul.f32 %v49_v61, %v49_v61 }
  0x26   :  { %v99_v14 = vadd.f32 %v98_v10, %v35_v5  ;;  %v234_v16 = vadd.f32 %v233_v12, %v171_v7  ;;  %v51_v5 = vld [vmem:[%s523_s0 + $0x118] sm:$0xff]  ;;  %v187_v7 = vmul.f32 %v50_v1, %v50_v1 }
  0x28   :  { %v100_v18 = vadd.f32 %v99_v14, %v36_v9  ;;  %v235_v20 = vadd.f32 %v234_v16, %v172_v11  ;;  %v52_v9 = vld [vmem:[%s523_s0 + $0x120] sm:$0xff]  ;;  %v188_v11 = vmul.f32 %v51_v5, %v51_v5 }
  0x2a   :  { %v101_v22 = vadd.f32 %v100_v18, %v37_v13  ;;  %v236_v24 = vadd.f32 %v235_v20, %v173_v15  ;;  %v53_v13 = vld [vmem:[%s523_s0 + $0x128] sm:$0xff]  ;;  %v189_v15 = vmul.f32 %v52_v9, %v52_v9 }
  0x2c   :  { %v102_v26 = vadd.f32 %v101_v22, %v38_v17  ;;  %v237_v28 = vadd.f32 %v236_v24, %v174_v19  ;;  %v54_v17 = vld [vmem:[%s523_s0 + $0x130] sm:$0xff]  ;;  %v190_v19 = vmul.f32 %v53_v13, %v53_v13 }
  0x2e   :  { %v103_v30 = vadd.f32 %v102_v26, %v39_v21  ;;  %v238_v32 = vadd.f32 %v237_v28, %v175_v23  ;;  %v55_v21 = vld [vmem:[%s523_s0 + $0x138] sm:$0xff]  ;;  %v191_v23 = vmul.f32 %v54_v17, %v54_v17 }
  0x30   :  { %v104_v34 = vadd.f32 %v103_v30, %v40_v25  ;;  %v239_v36 = vadd.f32 %v238_v32, %v176_v27  ;;  %v56_v25 = vld [vmem:[%s523_s0 + $0x140] sm:$0xff]  ;;  %v192_v27 = vmul.f32 %v55_v21, %v55_v21 }
  0x32   :  { %v105_v38 = vadd.f32 %v104_v34, %v41_v29  ;;  %v240_v40 = vadd.f32 %v239_v36, %v177_v31  ;;  %v57_v29 = vld [vmem:[%s523_s0 + $0x148] sm:$0xff]  ;;  %v193_v31 = vmul.f32 %v56_v25, %v56_v25 }
  0x34   :  { %v106_v42 = vadd.f32 %v105_v38, %v42_v33  ;;  %v241_v44 = vadd.f32 %v240_v40, %v178_v35  ;;  %v58_v33 = vld [vmem:[%s523_s0 + $0x150] sm:$0xff]  ;;  %v194_v35 = vmul.f32 %v57_v29, %v57_v29 }
  0x36   :  { %v107_v46 = vadd.f32 %v106_v42, %v43_v37  ;;  %v242_v48 = vadd.f32 %v241_v44, %v179_v39  ;;  %v59_v37 = vld [vmem:[%s523_s0 + $0x158] sm:$0xff]  ;;  %v195_v39 = vmul.f32 %v58_v33, %v58_v33 }
  0x38   :  { %v108_v50 = vadd.f32 %v107_v46, %v44_v41  ;;  %v243_v52 = vadd.f32 %v242_v48, %v180_v43  ;;  %v60_v41 = vld [vmem:[%s523_s0 + $0x160] sm:$0xff]  ;;  %v196_v43 = vmul.f32 %v59_v37, %v59_v37 }
  0x3a   :  { %v109_v54 = vadd.f32 %v108_v50, %v45_v45  ;;  %v244_v56 = vadd.f32 %v243_v52, %v181_v47  ;;  %v61_v45 = vld [vmem:[%s523_s0 + $0x168] sm:$0xff]  ;;  %v197_v47 = vmul.f32 %v60_v41, %v60_v41 }
  0x3c   :  { %v110_v58 = vadd.f32 %v109_v54, %v46_v49  ;;  %v245_v60 = vadd.f32 %v244_v56, %v182_v51  ;;  %v62_v49 = vld [vmem:[%s523_s0 + $0x170] sm:$0xff]  ;;  %v198_v51 = vmul.f32 %v61_v45, %v61_v45 }
  0x3e   :  { %v111_v62 = vadd.f32 %v110_v58, %v47_v53  ;;  %v246_v0 = vadd.f32 %v245_v60, %v183_v55  ;;  %v63_v53 = vld [vmem:[%s523_s0 + $0x178] sm:$0xff]  ;;  %v199_v55 = vmul.f32 %v62_v49, %v62_v49 }
  0x40   :  { %v112_v2 = vadd.f32 %v111_v62, %v48_v57  ;;  %v247_v4 = vadd.f32 %v246_v0, %v184_v59  ;;  %v64_v57 = vld [vmem:[%s523_s0 + $0x180] sm:$0xff]  ;;  %v200_v59 = vmul.f32 %v63_v53, %v63_v53 }
  0x42   :  { %v113_v6 = vadd.f32 %v112_v2, %v49_v61  ;;  %v248_v8 = vadd.f32 %v247_v4, %v185_v63  ;;  %v65_v61 = vld [vmem:[%s523_s0 + $0x188] sm:$0xff]  ;;  %v201_v63 = vmul.f32 %v64_v57, %v64_v57 }
  0x44   :  { %v114_v10 = vadd.f32 %v113_v6, %v50_v1  ;;  %v249_v12 = vadd.f32 %v248_v8, %v186_v3  ;;  %v66_v1 = vld [vmem:[%s523_s0 + $0x190] sm:$0xff]  ;;  %v202_v3 = vmul.f32 %v65_v61, %v65_v61 }
  0x46   :  { %v115_v14 = vadd.f32 %v114_v10, %v51_v5  ;;  %v250_v16 = vadd.f32 %v249_v12, %v187_v7  ;;  %v67_v5 = vld [vmem:[%s523_s0 + $0x198] sm:$0xff]  ;;  %v203_v7 = vmul.f32 %v66_v1, %v66_v1 }
  0x48   :  { %v116_v18 = vadd.f32 %v115_v14, %v52_v9  ;;  %v251_v20 = vadd.f32 %v250_v16, %v188_v11  ;;  %v68_v9 = vld [vmem:[%s523_s0 + $0x1a0] sm:$0xff]  ;;  %v204_v11 = vmul.f32 %v67_v5, %v67_v5 }
  0x4a   :  { %v117_v22 = vadd.f32 %v116_v18, %v53_v13  ;;  %v252_v24 = vadd.f32 %v251_v20, %v189_v15  ;;  %v69_v13 = vld [vmem:[%s523_s0 + $0x1a8] sm:$0xff]  ;;  %v205_v15 = vmul.f32 %v68_v9, %v68_v9 }
  0x4c   :  { %v118_v26 = vadd.f32 %v117_v22, %v54_v17  ;;  %v253_v28 = vadd.f32 %v252_v24, %v190_v19  ;;  %v70_v17 = vld [vmem:[%s523_s0 + $0x1b0] sm:$0xff]  ;;  %v206_v19 = vmul.f32 %v69_v13, %v69_v13 }
  0x4e   :  { %v119_v30 = vadd.f32 %v118_v26, %v55_v21  ;;  %v254_v32 = vadd.f32 %v253_v28, %v191_v23  ;;  %v71_v21 = vld [vmem:[%s523_s0 + $0x1b8] sm:$0xff]  ;;  %v207_v23 = vmul.f32 %v70_v17, %v70_v17 }
  0x50   :  { %v120_v34 = vadd.f32 %v119_v30, %v56_v25  ;;  %v255_v36 = vadd.f32 %v254_v32, %v192_v27  ;;  %v72_v25 = vld [vmem:[%s523_s0 + $0x1c0] sm:$0xff]  ;;  %v208_v27 = vmul.f32 %v71_v21, %v71_v21 }
  0x52   :  { %v121_v38 = vadd.f32 %v120_v34, %v57_v29  ;;  %v256_v40 = vadd.f32 %v255_v36, %v193_v31  ;;  %v73_v29 = vld [vmem:[%s523_s0 + $0x1c8] sm:$0xff]  ;;  %v209_v31 = vmul.f32 %v72_v25, %v72_v25 }
  0x54   :  { %v122_v42 = vadd.f32 %v121_v38, %v58_v33  ;;  %v257_v44 = vadd.f32 %v256_v40, %v194_v35  ;;  %v74_v33 = vld [vmem:[%s523_s0 + $0x1d0] sm:$0xff]  ;;  %v210_v35 = vmul.f32 %v73_v29, %v73_v29 }
  0x56   :  { %v123_v46 = vadd.f32 %v122_v42, %v59_v37  ;;  %v258_v48 = vadd.f32 %v257_v44, %v195_v39  ;;  %v75_v37 = vld [vmem:[%s523_s0 + $0x1d8] sm:$0xff]  ;;  %v211_v39 = vmul.f32 %v74_v33, %v74_v33 }
  0x58   :  { %v124_v50 = vadd.f32 %v123_v46, %v60_v41  ;;  %v259_v52 = vadd.f32 %v258_v48, %v196_v43  ;;  %v76_v41 = vld [vmem:[%s523_s0 + $0x1e0] sm:$0xff]  ;;  %v212_v43 = vmul.f32 %v75_v37, %v75_v37 }
  0x5a   :  { %v125_v54 = vadd.f32 %v124_v50, %v61_v45  ;;  %v260_v56 = vadd.f32 %v259_v52, %v197_v47  ;;  %v77_v45 = vld [vmem:[%s523_s0 + $0x1e8] sm:$0xff]  ;;  %v213_v47 = vmul.f32 %v76_v41, %v76_v41 }
  0x5c   :  { %v126_v58 = vadd.f32 %v125_v54, %v62_v49  ;;  %v261_v60 = vadd.f32 %v260_v56, %v198_v51  ;;  %v78_v49 = vld [vmem:[%s523_s0 + $0x1f0] sm:$0xff]  ;;  %v214_v51 = vmul.f32 %v77_v45, %v77_v45 }
  0x5e   :  { %v127_v62 = vadd.f32 %v126_v58, %v63_v53  ;;  %v262_v0 = vadd.f32 %v261_v60, %v199_v55  ;;  %v79_v53 = vld [vmem:[%s523_s0 + $0x1f8] sm:$0xff]  ;;  %v215_v55 = vmul.f32 %v78_v49, %v78_v49 }
  0x5f   :  { %v216_v58 = vmul.f32 %v79_v53, %v79_v53 }
  0x60   :  { %v128_v2 = vadd.f32 %v127_v62, %v64_v57  ;;  %v263_v4 = vadd.f32 %v262_v0, %v200_v59 }
  0x62   :  { %v129_v6 = vadd.f32 %v128_v2, %v65_v61  ;;  %v264_v8 = vadd.f32 %v263_v4, %v201_v63 }
  0x64   :  { %v130_v10 = vadd.f32 %v129_v6, %v66_v1  ;;  %v265_v12 = vadd.f32 %v264_v8, %v202_v3 }
  0x66   :  { %v131_v14 = vadd.f32 %v130_v10, %v67_v5  ;;  %v266_v16 = vadd.f32 %v265_v12, %v203_v7  ;;  %v80_v7 = vld [vmem:[%s524_s1] sm:$0x1] }
  0x67   :  { %v152_v12 = vld [vmem:[%s525_s2] sm:$0x1] }
  0x68   :  { %v132_v18 = vadd.f32 %v131_v14, %v68_v9  ;;  %v267_v20 = vadd.f32 %v266_v16, %v204_v11 }
  0x6a   :  { %v133_v22 = vadd.f32 %v132_v18, %v69_v13  ;;  %v268_v24 = vadd.f32 %v267_v20, %v205_v15 }
  0x6c   :  { %v134_v26 = vadd.f32 %v133_v22, %v70_v17  ;;  %v269_v28 = vadd.f32 %v268_v24, %v206_v19 }
  0x6e   :  { %v135_v30 = vadd.f32 %v134_v26, %v71_v21  ;;  %v270_v32 = vadd.f32 %v269_v28, %v207_v23 }
  0x70   :  { %v136_v34 = vadd.f32 %v135_v30, %v72_v25  ;;  %v271_v36 = vadd.f32 %v270_v32, %v208_v27 }
  0x72   :  { %v137_v38 = vadd.f32 %v136_v34, %v73_v29  ;;  %v272_v40 = vadd.f32 %v271_v36, %v209_v31 }
  0x74   :  { %v138_v42 = vadd.f32 %v137_v38, %v74_v33  ;;  %v273_v44 = vadd.f32 %v272_v40, %v210_v35 }
  0x76   :  { %v139_v46 = vadd.f32 %v138_v42, %v75_v37  ;;  %v274_v48 = vadd.f32 %v273_v44, %v211_v39 }
  0x78   :  { %v140_v50 = vadd.f32 %v139_v46, %v76_v41  ;;  %v275_v52 = vadd.f32 %v274_v48, %v212_v43 }
  0x7a   :  { %v141_v54 = vadd.f32 %v140_v50, %v77_v45  ;;  %v276_v56 = vadd.f32 %v275_v52, %v213_v47 }
  0x7c   :  { %v142_v57 = vadd.f32 %v141_v54, %v78_v49  ;;  %v277_v59 = vadd.f32 %v276_v56, %v214_v51 }
  0x7e   :  { %v143_v60 = vadd.f32 %v142_v57, %v79_v53  ;;  %v278_v61 = vadd.f32 %v277_v59, %v215_v55 }
  0x80   :  { %v144_v62 = vrot.slane %v143_v60, 4  ;;  %v279_v63 = vadd.f32 %v278_v61, %v216_v58 }
  0x82   :  { %v145_v0 = vadd.f32 %v144_v62, %v143_v60  ;;  %v280_v1 = vrot.slane %v279_v63, 4 }
  0x84   :  { %v146_v2 = vrot.slane %v145_v0, 2  ;;  %v281_v3 = vadd.f32 %v280_v1, %v279_v63 }
  0x86   :  { %v147_v4 = vadd.f32 %v146_v2, %v145_v0  ;;  %v282_v5 = vrot.slane %v281_v3, 2 }
  0x88   :  { %v148_v6 = vrot.slane %v147_v4, 1  ;;  %v283_v8 = vadd.f32 %v282_v5, %v281_v3 }
  0x8a   :  { %v149_v9 = vadd.f32 %v148_v6, %v147_v4  ;;  %v284_v10 = vrot.slane %v283_v8, 1 }
  0x8c   :  { %v150_v11 = vadd.f32 %v149_v9, %v80_v7  ;;  %v285_v13 = vadd.f32 %v284_v10, %v283_v8 }
  0x8e   :  { %151 = vst [vmem:[%s524_s1] sm:$0x1] %v150_v11  ;;  %v286_v14 = vadd.f32 %v285_v13, %v152_v12 }
  0x90   :  { %287 = vst [vmem:[%s525_s2] sm:$0x1] %v286_v14 }

// kernel: resnet_block_forward.8
= control target key start
LH: loop header
LB: loop body
LE: loop exit
PB: predicated region body
PF: predicated region fallthrough
CT: control target
= control target key end

     0   :  { %s1178_s0 = inlined_call_operand.vmem [shape: f32[512,128], index: 0, kind: input, shape index: {}]   ;;  %s1179_s1 = inlined_call_operand.vmem [shape: f32[1,128], index: 1, kind: input, shape index: {}]   ;;  %s1180_s2 = inlined_call_operand.vmem [shape: f32[1,128], index: 2, kind: input, shape index: {}]   ;;  %s1181_s3 = inlined_call_operand.vmem [shape: bf16[512,128], index: 3, kind: output, shape index: {}]  }
   0x1   :  { %v14_v0 = vld [vmem:[%s1178_s0] sm:$0xff]  ;;  %v15_v1 = vld [vmem:[%s1178_s0 + $0x8] sm:$0xff]  ;;  %v16_v4 = vld [vmem:[%s1178_s0 + $0x10] sm:$0xff] }
   0x2   :  { %v760_v2 = vld [vmem:[%s1179_s1] ss:$0 sm:$0xff]  ;;  %v17_v5 = vld [vmem:[%s1178_s0 + $0x18] sm:$0xff]  ;;  %v19_v11 = vld [vmem:[%s1178_s0 + $0x28] sm:$0xff] }
   0x3   :  { %v765_v3 = vld [vmem:[%s1180_s2] ss:$0 sm:$0xff]  ;;  %v82_v7 = vmul.f32 %v760_v2, %v14_v0  ;;  %v83_v8 = vmul.f32 %v760_v2, %v15_v1  ;;  %v84_v9 = vmul.f32 %v760_v2, %v16_v4  ;;  %v85_v10 = vmul.f32 %v760_v2, %v17_v5  ;;  %v20_v12 = vld [vmem:[%s1178_s0 + $0x30] sm:$0xff]  ;;  %v21_v13 = vld [vmem:[%s1178_s0 + $0x38] sm:$0xff] }
   0x4   :  { %v18_v6 = vld [vmem:[%s1178_s0 + $0x20] sm:$0xff]  ;;  %v87_v15 = vmul.f32 %v760_v2, %v19_v11  ;;  %v88_v16 = vmul.f32 %v760_v2, %v20_v12  ;;  %v89_v17 = vmul.f32 %v760_v2, %v21_v13  ;;  %v23_v37 = vld [vmem:[%s1178_s0 + $0x48] sm:$0xff]  ;;  %v24_v38 = vld [vmem:[%s1178_s0 + $0x50] sm:$0xff] }
   0x5   :  { %v86_v14 = vmul.f32 %v760_v2, %v18_v6  ;;  %v150_v18 = vadd.f32 %v765_v3, %v82_v7  ;;  %v151_v19 = vadd.f32 %v765_v3, %v83_v8  ;;  %v152_v20 = vadd.f32 %v765_v3, %v84_v9  ;;  %v22_v32 = vld [vmem:[%s1178_s0 + $0x40] sm:$0xff]  ;;  %v25_v39 = vld [vmem:[%s1178_s0 + $0x58] sm:$0xff]  ;;  %v27_v51 = vld [vmem:[%s1178_s0 + $0x68] sm:$0xff] }
   0x6   :  { %v153_v21 = vadd.f32 %v765_v3, %v85_v10  ;;  %v155_v23 = vadd.f32 %v765_v3, %v87_v15  ;;  %v156_v24 = vadd.f32 %v765_v3, %v88_v16  ;;  %v157_v25 = vadd.f32 %v765_v3, %v89_v17  ;;  %v26_v50 = vld [vmem:[%s1178_s0 + $0x60] sm:$0xff]  ;;  %v28_v63 = vld [vmem:[%s1178_s0 + $0x70] sm:$0xff]  ;;  %v29_v0 = vld [vmem:[%s1178_s0 + $0x78] sm:$0xff] }
   0x7   :  { %v154_v22 = vadd.f32 %v765_v3, %v86_v14  ;;  %vm214_vm0 = vcmp.gt.f32.partialorder %v150_v18, 0.0  ;;  %vm215_vm1 = vcmp.gt.f32.partialorder %v151_v19, 0.0  ;;  %v278_v26 = vmul.f32 0.01, %v150_v18  ;;  %v30_v12 = vld [vmem:[%s1178_s0 + $0x80] sm:$0xff]  ;;  %v31_v13 = vld [vmem:[%s1178_s0 + $0x88] sm:$0xff] }
   0x8   :  { %v279_v27 = vmul.f32 0.01, %v151_v19  ;;  %vm216_vm2 = vcmp.gt.f32.partialorder %v152_v20, 0.0  ;;  %vm217_vm3 = vcmp.gt.f32.partialorder %v153_v21, 0.0  ;;  %v280_v28 = vmul.f32 0.01, %v152_v20 }
   0x9   :  { %v281_v29 = vmul.f32 0.01, %v153_v21  ;;  %v342_v30 = vsel %vm214_vm0, %v150_v18, %v278_v26  ;;  %vm218_vm4 = vcmp.gt.f32.partialorder %v154_v22, 0.0  ;;  %vm219_vm5 = vcmp.gt.f32.partialorder %v155_v23, 0.0  ;;  %v32_v17 = vld [vmem:[%s1178_s0 + $0x90] sm:$0xff]  ;;  %v33_v18 = vld [vmem:[%s1178_s0 + $0x98] sm:$0xff] }
   0xa   :  { %v343_v31 = vsel %vm215_vm1, %v151_v19, %v279_v27  ;;  %v344_v34 = vsel %vm216_vm2, %v152_v20, %v280_v28  ;;  %v282_v36 = vmul.f32 0.01, %v154_v22  ;;  %v283_v41 = vmul.f32 0.01, %v155_v23 }
   0xb   :  { %v541_v33 = vpack.c.bf16 %v343_v31, %v342_v30  ;;  %v345_v35 = vsel %vm217_vm3, %v153_v21, %v281_v29  ;;  %vm220_vm6 = vcmp.gt.f32.partialorder %v156_v24, 0.0  ;;  %vm221_vm7 = vcmp.gt.f32.partialorder %v157_v25, 0.0  ;;  %v34_v30 = vld [vmem:[%s1178_s0 + $0xa0] sm:$0xff]  ;;  %v35_v31 = vld [vmem:[%s1178_s0 + $0xa8] sm:$0xff] }
   0xc   :  { %v546_v40 = vpack.c.bf16 %v345_v35, %v344_v34  ;;  %v346_v42 = vsel %vm218_vm4, %v154_v22, %v282_v36  ;;  %v284_v43 = vmul.f32 0.01, %v156_v24  ;;  %v285_v44 = vmul.f32 0.01, %v157_v25 }
   0xd   :  { %542 = vst [vmem:[%s1181_s3] sm:$0xff] %v541_v33   ;;  %v90_v45 = vmul.f32 %v760_v2, %v22_v32  ;;  %v347_v46 = vsel %vm219_vm5, %v155_v23, %v283_v41  ;;  %v91_v47 = vmul.f32 %v760_v2, %v23_v37  ;;  %v92_v48 = vmul.f32 %v760_v2, %v24_v38 }
   0xe   :  { %698 = vst [vmem:[%s1181_s3 + $0x8] sm:$0xff] %v546_v40   ;;  %v93_v49 = vmul.f32 %v760_v2, %v25_v39  ;;  %v551_v52 = vpack.c.bf16 %v347_v46, %v346_v42  ;;  %v348_v53 = vsel %vm220_vm6, %v156_v24, %v284_v43  ;;  %v349_v54 = vsel %vm221_vm7, %v157_v25, %v285_v44  ;;  %v36_v44 = vld [vmem:[%s1178_s0 + $0xb0] sm:$0xff] }
   0xf   :  { %v158_v55 = vadd.f32 %v765_v3, %v90_v45  ;;  %v556_v56 = vpack.c.bf16 %v349_v54, %v348_v53  ;;  %v159_v57 = vadd.f32 %v765_v3, %v91_v47  ;;  %v160_v58 = vadd.f32 %v765_v3, %v92_v48  ;;  %v37_v45 = vld [vmem:[%s1178_s0 + $0xb8] sm:$0xff] }
  0x10   :  { %v161_v59 = vadd.f32 %v765_v3, %v93_v49  ;;  %699 = vst [vmem:[%s1181_s3 + $0x10] sm:$0xff] %v551_v52   ;;  %v94_v61 = vmul.f32 %v760_v2, %v26_v50  ;;  %v95_v62 = vmul.f32 %v760_v2, %v27_v51  ;;  %v96_v10 = vmul.f32 %v760_v2, %v28_v63 }
  0x11   :  { %vm222_vm8 = vcmp.gt.f32.partialorder %v158_v55, 0.0  ;;  %v286_v60 = vmul.f32 0.01, %v158_v55  ;;  %700 = vst [vmem:[%s1181_s3 + $0x18] sm:$0xff] %v556_v56   ;;  %vm223_vm9 = vcmp.gt.f32.partialorder %v159_v57, 0.0  ;;  %vm224_vm10 = vcmp.gt.f32.partialorder %v160_v58, 0.0 }
  0x12   :  { %v287_v1 = vmul.f32 0.01, %v159_v57  ;;  %vm225_vm11 = vcmp.gt.f32.partialorder %v161_v59, 0.0  ;;  %v288_v5 = vmul.f32 0.01, %v160_v58  ;;  %v162_v7 = vadd.f32 %v765_v3, %v94_v61  ;;  %v38_v56 = vld [vmem:[%s1178_s0 + $0xc0] sm:$0xff] }
  0x13   :  { %v350_v4 = vsel %vm222_vm8, %v158_v55, %v286_v60  ;;  %v289_v6 = vmul.f32 0.01, %v161_v59  ;;  %v163_v9 = vadd.f32 %v765_v3, %v95_v62  ;;  %v97_v11 = vmul.f32 %v760_v2, %v29_v0  ;;  %v40_v61 = vld [vmem:[%s1178_s0 + $0xd0] sm:$0xff]  ;;  %v41_v62 = vld [vmem:[%s1178_s0 + $0xd8] sm:$0xff] }
  0x14   :  { %v351_v8 = vsel %vm223_vm9, %v159_v57, %v287_v1  ;;  %v352_v15 = vsel %vm224_vm10, %v160_v58, %v288_v5  ;;  %vm226_vm12 = vcmp.gt.f32.partialorder %v162_v7, 0.0  ;;  %v290_v20 = vmul.f32 0.01, %v162_v7  ;;  %v39_v57 = vld [vmem:[%s1178_s0 + $0xc8] sm:$0xff] }
  0x15   :  { %v561_v14 = vpack.c.bf16 %v351_v8, %v350_v4  ;;  %v353_v16 = vsel %vm225_vm11, %v161_v59, %v289_v6  ;;  %vm227_vm13 = vcmp.gt.f32.partialorder %v163_v9, 0.0  ;;  %v291_v21 = vmul.f32 0.01, %v163_v9 }
  0x16   :  { %v566_v19 = vpack.c.bf16 %v353_v16, %v352_v15  ;;  %v164_v22 = vadd.f32 %v765_v3, %v96_v10  ;;  %v165_v23 = vadd.f32 %v765_v3, %v97_v11  ;;  %v98_v24 = vmul.f32 %v760_v2, %v30_v12  ;;  %v42_v12 = vld [vmem:[%s1178_s0 + $0xe0] sm:$0xff] }
  0x17   :  { %701 = vst [vmem:[%s1181_s3 + $0x20] sm:$0xff] %v561_v14   ;;  %v99_v25 = vmul.f32 %v760_v2, %v31_v13  ;;  %v354_v26 = vsel %vm226_vm12, %v162_v7, %v290_v20  ;;  %v355_v27 = vsel %vm227_vm13, %v163_v9, %v291_v21  ;;  %v100_v28 = vmul.f32 %v760_v2, %v32_v17  ;;  %v43_v13 = vld [vmem:[%s1178_s0 + $0xe8] sm:$0xff] }
  0x18   :  { %702 = vst [vmem:[%s1181_s3 + $0x28] sm:$0xff] %v566_v19   ;;  %v101_v29 = vmul.f32 %v760_v2, %v33_v18  ;;  %v571_v32 = vpack.c.bf16 %v355_v27, %v354_v26  ;;  %vm228_vm14 = vcmp.gt.f32.partialorder %v164_v22, 0.0  ;;  %vm229_vm15 = vcmp.gt.f32.partialorder %v165_v23, 0.0  ;;  %v44_v26 = vld [vmem:[%s1178_s0 + $0xf0] sm:$0xff]  ;;  %v45_v27 = vld [vmem:[%s1178_s0 + $0xf8] sm:$0xff] }
  0x19   :  { %v292_v33 = vmul.f32 0.01, %v164_v22  ;;  %v293_v34 = vmul.f32 0.01, %v165_v23  ;;  %v166_v35 = vadd.f32 %v765_v3, %v98_v24  ;;  %v167_v36 = vadd.f32 %v765_v3, %v99_v25 }
  0x1a   :  { %v168_v37 = vadd.f32 %v765_v3, %v100_v28  ;;  %703 = vst [vmem:[%s1181_s3 + $0x30] sm:$0xff] %v571_v32   ;;  %v169_v39 = vadd.f32 %v765_v3, %v101_v29  ;;  %v102_v40 = vmul.f32 %v760_v2, %v34_v30  ;;  %v103_v41 = vmul.f32 %v760_v2, %v35_v31 }
  0x1b   :  { %v356_v38 = vsel %vm228_vm14, %v164_v22, %v292_v33  ;;  %v357_v42 = vsel %vm229_vm15, %v165_v23, %v293_v34  ;;  %vm230_vm0 = vcmp.gt.f32.partialorder %v166_v35, 0.0  ;;  %vm231_vm1 = vcmp.gt.f32.partialorder %v167_v36, 0.0 }
  0x1c   :  { %v294_v43 = vmul.f32 0.01, %v166_v35  ;;  %v576_v46 = vpack.c.bf16 %v357_v42, %v356_v38  ;;  %v295_v47 = vmul.f32 0.01, %v167_v36  ;;  %vm232_vm2 = vcmp.gt.f32.partialorder %v168_v37, 0.0  ;;  %v46_v38 = vld [vmem:[%s1178_s0 + $0x100] sm:$0xff] }
  0x1d   :  { %vm233_vm3 = vcmp.gt.f32.partialorder %v169_v39, 0.0  ;;  %v296_v49 = vmul.f32 0.01, %v168_v37  ;;  %v297_v50 = vmul.f32 0.01, %v169_v39  ;;  %v170_v51 = vadd.f32 %v765_v3, %v102_v40 }
  0x1e   :  { %v358_v48 = vsel %vm230_vm0, %v166_v35, %v294_v43  ;;  %704 = vst [vmem:[%s1181_s3 + $0x38] sm:$0xff] %v576_v46   ;;  %v359_v52 = vsel %vm231_vm1, %v167_v36, %v295_v47  ;;  %v171_v53 = vadd.f32 %v765_v3, %v103_v41  ;;  %v104_v54 = vmul.f32 %v760_v2, %v36_v44  ;;  %v48_v43 = vld [vmem:[%s1178_s0 + $0x110] sm:$0xff]  ;;  %v49_v44 = vld [vmem:[%s1178_s0 + $0x118] sm:$0xff] }
  0x1f   :  { %v105_v55 = vmul.f32 %v760_v2, %v37_v45  ;;  %v581_v58 = vpack.c.bf16 %v359_v52, %v358_v48  ;;  %v360_v59 = vsel %vm232_vm2, %v168_v37, %v296_v49  ;;  %v361_v60 = vsel %vm233_vm3, %v169_v39, %v297_v50  ;;  %v47_v39 = vld [vmem:[%s1178_s0 + $0x108] sm:$0xff] }
  0x20   :  { %vm234_vm4 = vcmp.gt.f32.partialorder %v170_v51, 0.0  ;;  %v586_v63 = vpack.c.bf16 %v361_v60, %v360_v59  ;;  %vm235_vm5 = vcmp.gt.f32.partialorder %v171_v53, 0.0  ;;  %v298_v0 = vmul.f32 0.01, %v170_v51 }
  0x21   :  { %v299_v1 = vmul.f32 0.01, %v171_v53  ;;  %705 = vst [vmem:[%s1181_s3 + $0x40] sm:$0xff] %v581_v58   ;;  %v172_v4 = vadd.f32 %v765_v3, %v104_v54  ;;  %v173_v5 = vadd.f32 %v765_v3, %v105_v55  ;;  %v106_v6 = vmul.f32 %v760_v2, %v38_v56  ;;  %v50_v56 = vld [vmem:[%s1178_s0 + $0x120] sm:$0xff] }
  0x22   :  { %v107_v7 = vmul.f32 %v760_v2, %v39_v57  ;;  %706 = vst [vmem:[%s1181_s3 + $0x48] sm:$0xff] %v586_v63   ;;  %v362_v8 = vsel %vm234_vm4, %v170_v51, %v298_v0  ;;  %v108_v10 = vmul.f32 %v760_v2, %v40_v61  ;;  %v109_v11 = vmul.f32 %v760_v2, %v41_v62  ;;  %v51_v57 = vld [vmem:[%s1178_s0 + $0x128] sm:$0xff] }
  0x23   :  { %v363_v9 = vsel %vm235_vm5, %v171_v53, %v299_v1  ;;  %vm236_vm6 = vcmp.gt.f32.partialorder %v172_v4, 0.0  ;;  %vm237_vm7 = vcmp.gt.f32.partialorder %v173_v5, 0.0  ;;  %v300_v15 = vmul.f32 0.01, %v172_v4 }
  0x24   :  { %v591_v14 = vpack.c.bf16 %v363_v9, %v362_v8  ;;  %v301_v16 = vmul.f32 0.01, %v173_v5  ;;  %v174_v17 = vadd.f32 %v765_v3, %v106_v6  ;;  %v175_v18 = vadd.f32 %v765_v3, %v107_v7  ;;  %v52_v8 = vld [vmem:[%s1178_s0 + $0x130] sm:$0xff]  ;;  %v53_v9 = vld [vmem:[%s1178_s0 + $0x138] sm:$0xff] }
  0x25   :  { %v176_v19 = vadd.f32 %v765_v3, %v108_v10  ;;  %v364_v20 = vsel %vm236_vm6, %v172_v4, %v300_v15  ;;  %v177_v21 = vadd.f32 %v765_v3, %v109_v11  ;;  %v110_v22 = vmul.f32 %v760_v2, %v42_v12 }
  0x26   :  { %707 = vst [vmem:[%s1181_s3 + $0x50] sm:$0xff] %v591_v14   ;;  %v111_v23 = vmul.f32 %v760_v2, %v43_v13  ;;  %v365_v24 = vsel %vm237_vm7, %v173_v5, %v301_v16  ;;  %vm238_vm8 = vcmp.gt.f32.partialorder %v174_v17, 0.0  ;;  %vm239_vm9 = vcmp.gt.f32.partialorder %v175_v18, 0.0 }
  0x27   :  { %v302_v25 = vmul.f32 0.01, %v174_v17  ;;  %v596_v28 = vpack.c.bf16 %v365_v24, %v364_v20  ;;  %v303_v29 = vmul.f32 0.01, %v175_v18  ;;  %vm240_vm10 = vcmp.gt.f32.partialorder %v176_v19, 0.0  ;;  %v54_v20 = vld [vmem:[%s1178_s0 + $0x140] sm:$0xff] }
  0x28   :  { %vm241_vm11 = vcmp.gt.f32.partialorder %v177_v21, 0.0  ;;  %v304_v31 = vmul.f32 0.01, %v176_v19  ;;  %v305_v32 = vmul.f32 0.01, %v177_v21  ;;  %v178_v33 = vadd.f32 %v765_v3, %v110_v22 }
  0x29   :  { %v366_v30 = vsel %vm238_vm8, %v174_v17, %v302_v25  ;;  %708 = vst [vmem:[%s1181_s3 + $0x58] sm:$0xff] %v596_v28   ;;  %v367_v34 = vsel %vm239_vm9, %v175_v18, %v303_v29  ;;  %v179_v35 = vadd.f32 %v765_v3, %v111_v23  ;;  %v112_v36 = vmul.f32 %v760_v2, %v44_v26  ;;  %v56_v25 = vld [vmem:[%s1178_s0 + $0x150] sm:$0xff]  ;;  %v57_v26 = vld [vmem:[%s1178_s0 + $0x158] sm:$0xff] }
  0x2a   :  { %v113_v37 = vmul.f32 %v760_v2, %v45_v27  ;;  %v601_v40 = vpack.c.bf16 %v367_v34, %v366_v30  ;;  %v368_v41 = vsel %vm240_vm10, %v176_v19, %v304_v31  ;;  %v369_v42 = vsel %vm241_vm11, %v177_v21, %v305_v32  ;;  %v55_v21 = vld [vmem:[%s1178_s0 + $0x148] sm:$0xff] }
  0x2b   :  { %vm242_vm12 = vcmp.gt.f32.partialorder %v178_v33, 0.0  ;;  %v606_v45 = vpack.c.bf16 %v369_v42, %v368_v41  ;;  %vm243_vm13 = vcmp.gt.f32.partialorder %v179_v35, 0.0  ;;  %v306_v46 = vmul.f32 0.01, %v178_v33 }
  0x2c   :  { %v307_v47 = vmul.f32 0.01, %v179_v35  ;;  %709 = vst [vmem:[%s1181_s3 + $0x60] sm:$0xff] %v601_v40   ;;  %v180_v48 = vadd.f32 %v765_v3, %v112_v36  ;;  %v181_v49 = vadd.f32 %v765_v3, %v113_v37  ;;  %v114_v50 = vmul.f32 %v760_v2, %v46_v38  ;;  %v58_v38 = vld [vmem:[%s1178_s0 + $0x160] sm:$0xff] }
  0x2d   :  { %v115_v51 = vmul.f32 %v760_v2, %v47_v39  ;;  %710 = vst [vmem:[%s1181_s3 + $0x68] sm:$0xff] %v606_v45   ;;  %v370_v52 = vsel %vm242_vm12, %v178_v33, %v306_v46  ;;  %v116_v54 = vmul.f32 %v760_v2, %v48_v43  ;;  %v117_v55 = vmul.f32 %v760_v2, %v49_v44  ;;  %v59_v39 = vld [vmem:[%s1178_s0 + $0x168] sm:$0xff] }
  0x2e   :  { %v371_v53 = vsel %vm243_vm13, %v179_v35, %v307_v47  ;;  %vm244_vm14 = vcmp.gt.f32.partialorder %v180_v48, 0.0  ;;  %vm245_vm15 = vcmp.gt.f32.partialorder %v181_v49, 0.0  ;;  %v308_v59 = vmul.f32 0.01, %v180_v48 }
  0x2f   :  { %v611_v58 = vpack.c.bf16 %v371_v53, %v370_v52  ;;  %v309_v60 = vmul.f32 0.01, %v181_v49  ;;  %v182_v61 = vadd.f32 %v765_v3, %v114_v50  ;;  %v183_v62 = vadd.f32 %v765_v3, %v115_v51  ;;  %v60_v52 = vld [vmem:[%s1178_s0 + $0x170] sm:$0xff]  ;;  %v61_v53 = vld [vmem:[%s1178_s0 + $0x178] sm:$0xff] }
  0x30   :  { %v184_v63 = vadd.f32 %v765_v3, %v116_v54  ;;  %v372_v0 = vsel %vm244_vm14, %v180_v48, %v308_v59  ;;  %v185_v1 = vadd.f32 %v765_v3, %v117_v55  ;;  %v118_v4 = vmul.f32 %v760_v2, %v50_v56 }
  0x31   :  { %711 = vst [vmem:[%s1181_s3 + $0x70] sm:$0xff] %v611_v58   ;;  %v119_v5 = vmul.f32 %v760_v2, %v51_v57  ;;  %v373_v6 = vsel %vm245_vm15, %v181_v49, %v309_v60  ;;  %vm246_vm0 = vcmp.gt.f32.partialorder %v182_v61, 0.0  ;;  %vm247_vm1 = vcmp.gt.f32.partialorder %v183_v62, 0.0 }
  0x32   :  { %v310_v7 = vmul.f32 0.01, %v182_v61  ;;  %v616_v10 = vpack.c.bf16 %v373_v6, %v372_v0  ;;  %v311_v11 = vmul.f32 0.01, %v183_v62  ;;  %vm248_vm2 = vcmp.gt.f32.partialorder %v184_v63, 0.0  ;;  %v62_v0 = vld [vmem:[%s1178_s0 + $0x180] sm:$0xff] }
  0x33   :  { %vm249_vm3 = vcmp.gt.f32.partialorder %v185_v1, 0.0  ;;  %v312_v13 = vmul.f32 0.01, %v184_v63  ;;  %v313_v14 = vmul.f32 0.01, %v185_v1  ;;  %v186_v15 = vadd.f32 %v765_v3, %v118_v4 }
  0x34   :  { %v374_v12 = vsel %vm246_vm0, %v182_v61, %v310_v7  ;;  %712 = vst [vmem:[%s1181_s3 + $0x78] sm:$0xff] %v616_v10   ;;  %v375_v16 = vsel %vm247_vm1, %v183_v62, %v311_v11  ;;  %v187_v17 = vadd.f32 %v765_v3, %v119_v5  ;;  %v120_v18 = vmul.f32 %v760_v2, %v52_v8  ;;  %v64_v7 = vld [vmem:[%s1178_s0 + $0x190] sm:$0xff]  ;;  %v65_v8 = vld [vmem:[%s1178_s0 + $0x198] sm:$0xff] }
  0x35   :  { %v121_v19 = vmul.f32 %v760_v2, %v53_v9  ;;  %v621_v22 = vpack.c.bf16 %v375_v16, %v374_v12  ;;  %v376_v23 = vsel %vm248_vm2, %v184_v63, %v312_v13  ;;  %v377_v24 = vsel %vm249_vm3, %v185_v1, %v313_v14  ;;  %v63_v1 = vld [vmem:[%s1178_s0 + $0x188] sm:$0xff] }
  0x36   :  { %vm250_vm4 = vcmp.gt.f32.partialorder %v186_v15, 0.0  ;;  %v626_v27 = vpack.c.bf16 %v377_v24, %v376_v23  ;;  %vm251_vm5 = vcmp.gt.f32.partialorder %v187_v17, 0.0  ;;  %v314_v28 = vmul.f32 0.01, %v186_v15 }
  0x37   :  { %v315_v29 = vmul.f32 0.01, %v187_v17  ;;  %713 = vst [vmem:[%s1181_s3 + $0x80] sm:$0xff] %v621_v22   ;;  %v188_v30 = vadd.f32 %v765_v3, %v120_v18  ;;  %v189_v31 = vadd.f32 %v765_v3, %v121_v19  ;;  %v122_v32 = vmul.f32 %v760_v2, %v54_v20  ;;  %v66_v20 = vld [vmem:[%s1178_s0 + $0x1a0] sm:$0xff] }
  0x38   :  { %v123_v33 = vmul.f32 %v760_v2, %v55_v21  ;;  %714 = vst [vmem:[%s1181_s3 + $0x88] sm:$0xff] %v626_v27   ;;  %v378_v34 = vsel %vm250_vm4, %v186_v15, %v314_v28  ;;  %v124_v36 = vmul.f32 %v760_v2, %v56_v25  ;;  %v125_v37 = vmul.f32 %v760_v2, %v57_v26  ;;  %v67_v21 = vld [vmem:[%s1178_s0 + $0x1a8] sm:$0xff] }
  0x39   :  { %v379_v35 = vsel %vm251_vm5, %v187_v17, %v315_v29  ;;  %vm252_vm6 = vcmp.gt.f32.partialorder %v188_v30, 0.0  ;;  %vm253_vm7 = vcmp.gt.f32.partialorder %v189_v31, 0.0  ;;  %v316_v41 = vmul.f32 0.01, %v188_v30 }
  0x3a   :  { %v631_v40 = vpack.c.bf16 %v379_v35, %v378_v34  ;;  %v317_v42 = vmul.f32 0.01, %v189_v31  ;;  %v190_v43 = vadd.f32 %v765_v3, %v122_v32  ;;  %v191_v44 = vadd.f32 %v765_v3, %v123_v33  ;;  %v68_v34 = vld [vmem:[%s1178_s0 + $0x1b0] sm:$0xff]  ;;  %v69_v35 = vld [vmem:[%s1178_s0 + $0x1b8] sm:$0xff] }
  0x3b   :  { %v192_v45 = vadd.f32 %v765_v3, %v124_v36  ;;  %v380_v46 = vsel %vm252_vm6, %v188_v30, %v316_v41  ;;  %v193_v47 = vadd.f32 %v765_v3, %v125_v37  ;;  %v126_v48 = vmul.f32 %v760_v2, %v58_v38 }
  0x3c   :  { %715 = vst [vmem:[%s1181_s3 + $0x90] sm:$0xff] %v631_v40   ;;  %v127_v49 = vmul.f32 %v760_v2, %v59_v39  ;;  %v381_v50 = vsel %vm253_vm7, %v189_v31, %v317_v42  ;;  %vm254_vm8 = vcmp.gt.f32.partialorder %v190_v43, 0.0  ;;  %vm255_vm9 = vcmp.gt.f32.partialorder %v191_v44, 0.0 }
  0x3d   :  { %v318_v51 = vmul.f32 0.01, %v190_v43  ;;  %v636_v54 = vpack.c.bf16 %v381_v50, %v380_v46  ;;  %v319_v55 = vmul.f32 0.01, %v191_v44  ;;  %vm256_vm10 = vcmp.gt.f32.partialorder %v192_v45, 0.0  ;;  %v70_v46 = vld [vmem:[%s1178_s0 + $0x1c0] sm:$0xff] }
  0x3e   :  { %vm257_vm11 = vcmp.gt.f32.partialorder %v193_v47, 0.0  ;;  %v320_v57 = vmul.f32 0.01, %v192_v45  ;;  %v321_v58 = vmul.f32 0.01, %v193_v47  ;;  %v194_v59 = vadd.f32 %v765_v3, %v126_v48 }
  0x3f   :  { %v382_v56 = vsel %vm254_vm8, %v190_v43, %v318_v51  ;;  %716 = vst [vmem:[%s1181_s3 + $0x98] sm:$0xff] %v636_v54   ;;  %v383_v60 = vsel %vm255_vm9, %v191_v44, %v319_v55  ;;  %v195_v61 = vadd.f32 %v765_v3, %v127_v49  ;;  %v128_v62 = vmul.f32 %v760_v2, %v60_v52  ;;  %v72_v51 = vld [vmem:[%s1178_s0 + $0x1d0] sm:$0xff]  ;;  %v73_v52 = vld [vmem:[%s1178_s0 + $0x1d8] sm:$0xff] }
  0x40   :  { %v129_v63 = vmul.f32 %v760_v2, %v61_v53  ;;  %v641_v4 = vpack.c.bf16 %v383_v60, %v382_v56  ;;  %v384_v5 = vsel %vm256_vm10, %v192_v45, %v320_v57  ;;  %v385_v6 = vsel %vm257_vm11, %v193_v47, %v321_v58  ;;  %v71_v47 = vld [vmem:[%s1178_s0 + $0x1c8] sm:$0xff] }
  0x41   :  { %vm258_vm12 = vcmp.gt.f32.partialorder %v194_v59, 0.0  ;;  %v646_v9 = vpack.c.bf16 %v385_v6, %v384_v5  ;;  %vm259_vm13 = vcmp.gt.f32.partialorder %v195_v61, 0.0  ;;  %v322_v10 = vmul.f32 0.01, %v194_v59 }
  0x42   :  { %v323_v11 = vmul.f32 0.01, %v195_v61  ;;  %717 = vst [vmem:[%s1181_s3 + $0xa0] sm:$0xff] %v641_v4   ;;  %v196_v12 = vadd.f32 %v765_v3, %v128_v62  ;;  %v197_v13 = vadd.f32 %v765_v3, %v129_v63  ;;  %v130_v14 = vmul.f32 %v760_v2, %v62_v0  ;;  %v74_v0 = vld [vmem:[%s1178_s0 + $0x1e0] sm:$0xff] }
  0x43   :  { %v131_v15 = vmul.f32 %v760_v2, %v63_v1  ;;  %718 = vst [vmem:[%s1181_s3 + $0xa8] sm:$0xff] %v646_v9   ;;  %v386_v16 = vsel %vm258_vm12, %v194_v59, %v322_v10  ;;  %v132_v18 = vmul.f32 %v760_v2, %v64_v7  ;;  %v133_v19 = vmul.f32 %v760_v2, %v65_v8  ;;  %v75_v1 = vld [vmem:[%s1178_s0 + $0x1e8] sm:$0xff] }
  0x44   :  { %v387_v17 = vsel %vm259_vm13, %v195_v61, %v323_v11  ;;  %vm260_vm14 = vcmp.gt.f32.partialorder %v196_v12, 0.0  ;;  %vm261_vm15 = vcmp.gt.f32.partialorder %v197_v13, 0.0  ;;  %v324_v23 = vmul.f32 0.01, %v196_v12 }
  0x45   :  { %v651_v22 = vpack.c.bf16 %v387_v17, %v386_v16  ;;  %v325_v24 = vmul.f32 0.01, %v197_v13  ;;  %v198_v25 = vadd.f32 %v765_v3, %v130_v14  ;;  %v199_v26 = vadd.f32 %v765_v3, %v131_v15  ;;  %v76_v16 = vld [vmem:[%s1178_s0 + $0x1f0] sm:$0xff]  ;;  %v77_v17 = vld [vmem:[%s1178_s0 + $0x1f8] sm:$0xff] }
  0x46   :  { %v200_v27 = vadd.f32 %v765_v3, %v132_v18  ;;  %v388_v28 = vsel %vm260_vm14, %v196_v12, %v324_v23  ;;  %v201_v29 = vadd.f32 %v765_v3, %v133_v19  ;;  %v134_v30 = vmul.f32 %v760_v2, %v66_v20 }
  0x47   :  { %719 = vst [vmem:[%s1181_s3 + $0xb0] sm:$0xff] %v651_v22   ;;  %v135_v31 = vmul.f32 %v760_v2, %v67_v21  ;;  %v389_v32 = vsel %vm261_vm15, %v197_v13, %v325_v24  ;;  %vm262_vm0 = vcmp.gt.f32.partialorder %v198_v25, 0.0  ;;  %vm263_vm1 = vcmp.gt.f32.partialorder %v199_v26, 0.0 }
  0x48   :  { %v326_v33 = vmul.f32 0.01, %v198_v25  ;;  %v656_v36 = vpack.c.bf16 %v389_v32, %v388_v28  ;;  %v327_v37 = vmul.f32 0.01, %v199_v26  ;;  %vm264_vm2 = vcmp.gt.f32.partialorder %v200_v27, 0.0 }
  0x49   :  { %vm265_vm3 = vcmp.gt.f32.partialorder %v201_v29, 0.0  ;;  %v328_v39 = vmul.f32 0.01, %v200_v27  ;;  %v329_v40 = vmul.f32 0.01, %v201_v29  ;;  %v202_v41 = vadd.f32 %v765_v3, %v134_v30 }
  0x4a   :  { %v390_v38 = vsel %vm262_vm0, %v198_v25, %v326_v33  ;;  %720 = vst [vmem:[%s1181_s3 + $0xb8] sm:$0xff] %v656_v36   ;;  %v391_v42 = vsel %vm263_vm1, %v199_v26, %v327_v37  ;;  %v203_v43 = vadd.f32 %v765_v3, %v135_v31  ;;  %v136_v44 = vmul.f32 %v760_v2, %v68_v34 }
  0x4b   :  { %v137_v45 = vmul.f32 %v760_v2, %v69_v35  ;;  %v661_v48 = vpack.c.bf16 %v391_v42, %v390_v38  ;;  %v392_v49 = vsel %vm264_vm2, %v200_v27, %v328_v39  ;;  %v393_v50 = vsel %vm265_vm3, %v201_v29, %v329_v40 }
  0x4c   :  { %vm266_vm4 = vcmp.gt.f32.partialorder %v202_v41, 0.0  ;;  %v666_v53 = vpack.c.bf16 %v393_v50, %v392_v49  ;;  %vm267_vm5 = vcmp.gt.f32.partialorder %v203_v43, 0.0  ;;  %v330_v54 = vmul.f32 0.01, %v202_v41 }
  0x4d   :  { %v331_v55 = vmul.f32 0.01, %v203_v43  ;;  %721 = vst [vmem:[%s1181_s3 + $0xc0] sm:$0xff] %v661_v48   ;;  %v204_v56 = vadd.f32 %v765_v3, %v136_v44  ;;  %v205_v57 = vadd.f32 %v765_v3, %v137_v45  ;;  %v138_v58 = vmul.f32 %v760_v2, %v70_v46 }
  0x4e   :  { %v139_v59 = vmul.f32 %v760_v2, %v71_v47  ;;  %722 = vst [vmem:[%s1181_s3 + $0xc8] sm:$0xff] %v666_v53   ;;  %v394_v60 = vsel %vm266_vm4, %v202_v41, %v330_v54  ;;  %v140_v62 = vmul.f32 %v760_v2, %v72_v51  ;;  %v141_v63 = vmul.f32 %v760_v2, %v73_v52 }
  0x4f   :  { %v395_v61 = vsel %vm267_vm5, %v203_v43, %v331_v55  ;;  %vm268_vm6 = vcmp.gt.f32.partialorder %v204_v56, 0.0  ;;  %vm269_vm7 = vcmp.gt.f32.partialorder %v205_v57, 0.0  ;;  %v332_v5 = vmul.f32 0.01, %v204_v56 }
  0x50   :  { %v671_v4 = vpack.c.bf16 %v395_v61, %v394_v60  ;;  %v333_v6 = vmul.f32 0.01, %v205_v57  ;;  %v206_v7 = vadd.f32 %v765_v3, %v138_v58  ;;  %v207_v8 = vadd.f32 %v765_v3, %v139_v59 }
  0x51   :  { %v208_v9 = vadd.f32 %v765_v3, %v140_v62  ;;  %v396_v10 = vsel %vm268_vm6, %v204_v56, %v332_v5  ;;  %v209_v11 = vadd.f32 %v765_v3, %v141_v63  ;;  %v142_v12 = vmul.f32 %v760_v2, %v74_v0 }
  0x52   :  { %723 = vst [vmem:[%s1181_s3 + $0xd0] sm:$0xff] %v671_v4   ;;  %v143_v13 = vmul.f32 %v760_v2, %v75_v1  ;;  %v397_v14 = vsel %vm269_vm7, %v205_v57, %v333_v6  ;;  %vm270_vm8 = vcmp.gt.f32.partialorder %v206_v7, 0.0  ;;  %vm271_vm9 = vcmp.gt.f32.partialorder %v207_v8, 0.0 }
  0x53   :  { %v334_v15 = vmul.f32 0.01, %v206_v7  ;;  %v676_v18 = vpack.c.bf16 %v397_v14, %v396_v10  ;;  %v335_v19 = vmul.f32 0.01, %v207_v8  ;;  %vm272_vm10 = vcmp.gt.f32.partialorder %v208_v9, 0.0 }
  0x54   :  { %vm273_vm11 = vcmp.gt.f32.partialorder %v209_v11, 0.0  ;;  %v336_v21 = vmul.f32 0.01, %v208_v9  ;;  %v337_v22 = vmul.f32 0.01, %v209_v11  ;;  %v210_v23 = vadd.f32 %v765_v3, %v142_v12 }
  0x55   :  { %v398_v20 = vsel %vm270_vm8, %v206_v7, %v334_v15  ;;  %724 = vst [vmem:[%s1181_s3 + $0xd8] sm:$0xff] %v676_v18   ;;  %v399_v24 = vsel %vm271_vm9, %v207_v8, %v335_v19  ;;  %v211_v25 = vadd.f32 %v765_v3, %v143_v13  ;;  %v144_v26 = vmul.f32 %v760_v2, %v76_v16 }
  0x56   :  { %v145_v27 = vmul.f32 %v760_v2, %v77_v17  ;;  %v681_v28 = vpack.c.bf16 %v399_v24, %v398_v20  ;;  %v400_v29 = vsel %vm272_vm10, %v208_v9, %v336_v21  ;;  %v401_v30 = vsel %vm273_vm11, %v209_v11, %v337_v22 }
  0x57   :  { %vm274_vm12 = vcmp.gt.f32.partialorder %v210_v23, 0.0  ;;  %v686_v31 = vpack.c.bf16 %v401_v30, %v400_v29  ;;  %vm275_vm13 = vcmp.gt.f32.partialorder %v211_v25, 0.0  ;;  %v338_v32 = vmul.f32 0.01, %v210_v23 }
  0x58   :  { %v339_v33 = vmul.f32 0.01, %v211_v25  ;;  %725 = vst [vmem:[%s1181_s3 + $0xe0] sm:$0xff] %v681_v28   ;;  %v212_v34 = vadd.f32 %v765_v3, %v144_v26  ;;  %v213_v35 = vadd.f32 %v765_v3, %v145_v27 }
  0x59   :  { %726 = vst [vmem:[%s1181_s3 + $0xe8] sm:$0xff] %v686_v31   ;;  %v402_v2 = vsel %vm274_vm12, %v210_v23, %v338_v32 }
  0x5a   :  { %v403_v36 = vsel %vm275_vm13, %v211_v25, %v339_v33  ;;  %vm276_vm14 = vcmp.gt.f32.partialorder %v212_v34, 0.0  ;;  %vm277_vm15 = vcmp.gt.f32.partialorder %v213_v35, 0.0  ;;  %v340_v38 = vmul.f32 0.01, %v212_v34 }
  0x5b   :  { %v691_v37 = vpack.c.bf16 %v403_v36, %v402_v2  ;;  %v341_v39 = vmul.f32 0.01, %v213_v35 }
  0x5c   :  { %v404_v40 = vsel %vm276_vm14, %v212_v34, %v340_v38 }
  0x5d   :  { %727 = vst [vmem:[%s1181_s3 + $0xf0] sm:$0xff] %v691_v37   ;;  %v405_v41 = vsel %vm277_vm15, %v213_v35, %v341_v39 }
  0x5e   :  { %v696_v42 = vpack.c.bf16 %v405_v41, %v404_v40 }
  0x60   :  { %728 = vst [vmem:[%s1181_s3 + $0xf8] sm:$0xff] %v696_v42  }

// kernel: resnet_block_forward.10
= control target key start
LH: loop header
LB: loop body
LE: loop exit
PB: predicated region body
PF: predicated region fallthrough
CT: control target
= control target key end

     0   :  { %v105_v0 = vmov 0.0   ;;  %s187_s1 = inlined_call_operand.vmem [shape: f32[1,128], index: 1, kind: output, shape index: {0}]   ;;  %s188_s2 = inlined_call_operand.vmem [shape: f32[1,128], index: 2, kind: output, shape index: {1}]   ;;  %s189_s0 = inlined_call_operand.vmem [shape: f32[128,128], index: 0, kind: input, shape index: {}]  }
   0x1   :  { %14 = vst [vmem:[%s187_s1] sm:$0x1] %v105_v0  ;;  %v16_v1 = vld [vmem:[%s189_s0] sm:$0xff]  ;;  %v17_v2 = vld [vmem:[%s189_s0 + $0x8] sm:$0xff]  ;;  %v18_v3 = vld [vmem:[%s189_s0 + $0x10] sm:$0xff] }
   0x2   :  { %15 = vst [vmem:[%s188_s2] sm:$0x1] %v105_v0  ;;  %v19_v4 = vld [vmem:[%s189_s0 + $0x18] sm:$0xff]  ;;  %v33_v5 = vadd.f32 %v17_v2, %v16_v1  ;;  %v57_v6 = vmul.f32 %v16_v1, %v16_v1  ;;  %v58_v7 = vmul.f32 %v17_v2, %v17_v2  ;;  %v59_v8 = vmul.f32 %v18_v3, %v18_v3  ;;  %v20_v9 = vld [vmem:[%s189_s0 + $0x20] sm:$0xff]  ;;  %v21_v13 = vld [vmem:[%s189_s0 + $0x28] sm:$0xff] }
   0x3   :  { %v60_v11 = vmul.f32 %v19_v4, %v19_v4  ;;  %v61_v15 = vmul.f32 %v20_v9, %v20_v9  ;;  %v22_v17 = vld [vmem:[%s189_s0 + $0x30] sm:$0xff]  ;;  %v62_v19 = vmul.f32 %v21_v13, %v21_v13  ;;  %v23_v21 = vld [vmem:[%s189_s0 + $0x38] sm:$0xff]  ;;  %v24_v25 = vld [vmem:[%s189_s0 + $0x40] sm:$0xff] }
   0x4   :  { %v34_v10 = vadd.f32 %v33_v5, %v18_v3  ;;  %v73_v12 = vadd.f32 %v58_v7, %v57_v6  ;;  %v63_v23 = vmul.f32 %v22_v17, %v22_v17  ;;  %v64_v27 = vmul.f32 %v23_v21, %v23_v21  ;;  %v25_v29 = vld [vmem:[%s189_s0 + $0x48] sm:$0xff]  ;;  %v26_v33 = vld [vmem:[%s189_s0 + $0x50] sm:$0xff]  ;;  %v27_v37 = vld [vmem:[%s189_s0 + $0x58] sm:$0xff] }
   0x5   :  { %v65_v31 = vmul.f32 %v24_v25, %v24_v25  ;;  %v66_v35 = vmul.f32 %v25_v29, %v25_v29  ;;  %v67_v39 = vmul.f32 %v26_v33, %v26_v33  ;;  %v28_v41 = vld [vmem:[%s189_s0 + $0x60] sm:$0xff]  ;;  %v68_v43 = vmul.f32 %v27_v37, %v27_v37  ;;  %v29_v45 = vld [vmem:[%s189_s0 + $0x68] sm:$0xff]  ;;  %v30_v49 = vld [vmem:[%s189_s0 + $0x70] sm:$0xff] }
   0x6   :  { %v35_v14 = vadd.f32 %v34_v10, %v19_v4  ;;  %v74_v16 = vadd.f32 %v73_v12, %v59_v8  ;;  %v69_v47 = vmul.f32 %v28_v41, %v28_v41  ;;  %v70_v51 = vmul.f32 %v29_v45, %v29_v45  ;;  %v31_v53 = vld [vmem:[%s189_s0 + $0x78] sm:$0xff] }
   0x7   :  { %v71_v55 = vmul.f32 %v30_v49, %v30_v49  ;;  %v72_v58 = vmul.f32 %v31_v53, %v31_v53 }
   0x8   :  { %v36_v18 = vadd.f32 %v35_v14, %v20_v9  ;;  %v75_v20 = vadd.f32 %v74_v16, %v60_v11  ;;  %v32_v7 = vld [vmem:[%s187_s1] sm:$0x1] }
   0x9   :  { %v56_v12 = vld [vmem:[%s188_s2] sm:$0x1] }
   0xa   :  { %v37_v22 = vadd.f32 %v36_v18, %v21_v13  ;;  %v76_v24 = vadd.f32 %v75_v20, %v61_v15 }
   0xc   :  { %v38_v26 = vadd.f32 %v37_v22, %v22_v17  ;;  %v77_v28 = vadd.f32 %v76_v24, %v62_v19 }
   0xe   :  { %v39_v30 = vadd.f32 %v38_v26, %v23_v21  ;;  %v78_v32 = vadd.f32 %v77_v28, %v63_v23 }
  0x10   :  { %v40_v34 = vadd.f32 %v39_v30, %v24_v25  ;;  %v79_v36 = vadd.f32 %v78_v32, %v64_v27 }
  0x12   :  { %v41_v38 = vadd.f32 %v40_v34, %v25_v29  ;;  %v80_v40 = vadd.f32 %v79_v36, %v65_v31 }
  0x14   :  { %v42_v42 = vadd.f32 %v41_v38, %v26_v33  ;;  %v81_v44 = vadd.f32 %v80_v40, %v66_v35 }
  0x16   :  { %v43_v46 = vadd.f32 %v42_v42, %v27_v37  ;;  %v82_v48 = vadd.f32 %v81_v44, %v67_v39 }
  0x18   :  { %v44_v50 = vadd.f32 %v43_v46, %v28_v41  ;;  %v83_v52 = vadd.f32 %v82_v48, %v68_v43 }
  0x1a   :  { %v45_v54 = vadd.f32 %v44_v50, %v29_v45  ;;  %v84_v56 = vadd.f32 %v83_v52, %v69_v47 }
  0x1c   :  { %v46_v57 = vadd.f32 %v45_v54, %v30_v49  ;;  %v85_v59 = vadd.f32 %v84_v56, %v70_v51 }
  0x1e   :  { %v47_v60 = vadd.f32 %v46_v57, %v31_v53  ;;  %v86_v61 = vadd.f32 %v85_v59, %v71_v55 }
  0x20   :  { %v48_v62 = vrot.slane %v47_v60, 4  ;;  %v87_v63 = vadd.f32 %v86_v61, %v72_v58 }
  0x22   :  { %v49_v0 = vadd.f32 %v48_v62, %v47_v60  ;;  %v88_v1 = vrot.slane %v87_v63, 4 }
  0x24   :  { %v50_v2 = vrot.slane %v49_v0, 2  ;;  %v89_v3 = vadd.f32 %v88_v1, %v87_v63 }
  0x26   :  { %v51_v4 = vadd.f32 %v50_v2, %v49_v0  ;;  %v90_v5 = vrot.slane %v89_v3, 2 }
  0x28   :  { %v52_v6 = vrot.slane %v51_v4, 1  ;;  %v91_v8 = vadd.f32 %v90_v5, %v89_v3 }
  0x2a   :  { %v53_v9 = vadd.f32 %v52_v6, %v51_v4  ;;  %v92_v10 = vrot.slane %v91_v8, 1 }
  0x2c   :  { %v54_v11 = vadd.f32 %v53_v9, %v32_v7  ;;  %v93_v13 = vadd.f32 %v92_v10, %v91_v8 }
  0x2e   :  { %55 = vst [vmem:[%s187_s1] sm:$0x1] %v54_v11  ;;  %v94_v14 = vadd.f32 %v93_v13, %v56_v12 }
  0x30   :  { %95 = vst [vmem:[%s188_s2] sm:$0x1] %v94_v14 }

// kernel: resnet_block_forward.11
= control target key start
LH: loop header
LB: loop body
LE: loop exit
PB: predicated region body
PF: predicated region fallthrough
CT: control target
= control target key end

     0   :  { %s338_s0 = inlined_call_operand.vmem [shape: f32[128,128], index: 0, kind: input, shape index: {}]   ;;  %s339_s1 = inlined_call_operand.vmem [shape: f32[1,128], index: 1, kind: input, shape index: {}]   ;;  %s340_s2 = inlined_call_operand.vmem [shape: f32[1,128], index: 2, kind: input, shape index: {}]   ;;  %s341_s3 = inlined_call_operand.vmem [shape: bf16[128,128], index: 3, kind: output, shape index: {}]  }
   0x1   :  { %v14_v0 = vld [vmem:[%s338_s0] sm:$0xff]  ;;  %v15_v1 = vld [vmem:[%s338_s0 + $0x8] sm:$0xff]  ;;  %v16_v4 = vld [vmem:[%s338_s0 + $0x10] sm:$0xff] }
   0x2   :  { %v232_v2 = vld [vmem:[%s339_s1] ss:$0 sm:$0xff]  ;;  %v17_v5 = vld [vmem:[%s338_s0 + $0x18] sm:$0xff]  ;;  %v19_v11 = vld [vmem:[%s338_s0 + $0x28] sm:$0xff] }
   0x3   :  { %v237_v3 = vld [vmem:[%s340_s2] ss:$0 sm:$0xff]  ;;  %v34_v7 = vmul.f32 %v232_v2, %v14_v0  ;;  %v35_v8 = vmul.f32 %v232_v2, %v15_v1  ;;  %v36_v9 = vmul.f32 %v232_v2, %v16_v4  ;;  %v37_v10 = vmul.f32 %v232_v2, %v17_v5  ;;  %v20_v12 = vld [vmem:[%s338_s0 + $0x30] sm:$0xff]  ;;  %v21_v13 = vld [vmem:[%s338_s0 + $0x38] sm:$0xff] }
   0x4   :  { %v18_v6 = vld [vmem:[%s338_s0 + $0x20] sm:$0xff]  ;;  %v39_v15 = vmul.f32 %v232_v2, %v19_v11  ;;  %v40_v16 = vmul.f32 %v232_v2, %v20_v12  ;;  %v41_v17 = vmul.f32 %v232_v2, %v21_v13  ;;  %v23_v37 = vld [vmem:[%s338_s0 + $0x48] sm:$0xff]  ;;  %v24_v38 = vld [vmem:[%s338_s0 + $0x50] sm:$0xff] }
   0x5   :  { %v38_v14 = vmul.f32 %v232_v2, %v18_v6  ;;  %v54_v18 = vadd.f32 %v237_v3, %v34_v7  ;;  %v55_v19 = vadd.f32 %v237_v3, %v35_v8  ;;  %v56_v20 = vadd.f32 %v237_v3, %v36_v9  ;;  %v22_v32 = vld [vmem:[%s338_s0 + $0x40] sm:$0xff]  ;;  %v25_v39 = vld [vmem:[%s338_s0 + $0x58] sm:$0xff]  ;;  %v27_v51 = vld [vmem:[%s338_s0 + $0x68] sm:$0xff] }
   0x6   :  { %v57_v21 = vadd.f32 %v237_v3, %v37_v10  ;;  %v59_v23 = vadd.f32 %v237_v3, %v39_v15  ;;  %v60_v24 = vadd.f32 %v237_v3, %v40_v16  ;;  %v61_v25 = vadd.f32 %v237_v3, %v41_v17  ;;  %v26_v50 = vld [vmem:[%s338_s0 + $0x60] sm:$0xff]  ;;  %v28_v63 = vld [vmem:[%s338_s0 + $0x70] sm:$0xff]  ;;  %v29_v0 = vld [vmem:[%s338_s0 + $0x78] sm:$0xff] }
   0x7   :  { %v58_v22 = vadd.f32 %v237_v3, %v38_v14  ;;  %vm70_vm0 = vcmp.gt.f32.partialorder %v54_v18, 0.0  ;;  %vm71_vm1 = vcmp.gt.f32.partialorder %v55_v19, 0.0  ;;  %v86_v26 = vmul.f32 0.01, %v54_v18 }
   0x8   :  { %v87_v27 = vmul.f32 0.01, %v55_v19  ;;  %vm72_vm2 = vcmp.gt.f32.partialorder %v56_v20, 0.0  ;;  %vm73_vm3 = vcmp.gt.f32.partialorder %v57_v21, 0.0  ;;  %v88_v28 = vmul.f32 0.01, %v56_v20 }
   0x9   :  { %v89_v29 = vmul.f32 0.01, %v57_v21  ;;  %v102_v30 = vsel %vm70_vm0, %v54_v18, %v86_v26  ;;  %vm74_vm4 = vcmp.gt.f32.partialorder %v58_v22, 0.0  ;;  %vm75_vm5 = vcmp.gt.f32.partialorder %v59_v23, 0.0 }
   0xa   :  { %v103_v31 = vsel %vm71_vm1, %v55_v19, %v87_v27  ;;  %v104_v34 = vsel %vm72_vm2, %v56_v20, %v88_v28  ;;  %v90_v36 = vmul.f32 0.01, %v58_v22  ;;  %v91_v41 = vmul.f32 0.01, %v59_v23 }
   0xb   :  { %v157_v33 = vpack.c.bf16 %v103_v31, %v102_v30  ;;  %v105_v35 = vsel %vm73_vm3, %v57_v21, %v89_v29  ;;  %vm76_vm6 = vcmp.gt.f32.partialorder %v60_v24, 0.0  ;;  %vm77_vm7 = vcmp.gt.f32.partialorder %v61_v25, 0.0 }
   0xc   :  { %v162_v40 = vpack.c.bf16 %v105_v35, %v104_v34  ;;  %v106_v42 = vsel %vm74_vm4, %v58_v22, %v90_v36  ;;  %v92_v43 = vmul.f32 0.01, %v60_v24  ;;  %v93_v44 = vmul.f32 0.01, %v61_v25 }
   0xd   :  { %158 = vst [vmem:[%s341_s3] sm:$0xff] %v157_v33   ;;  %v42_v45 = vmul.f32 %v232_v2, %v22_v32  ;;  %v107_v46 = vsel %vm75_vm5, %v59_v23, %v91_v41  ;;  %v43_v47 = vmul.f32 %v232_v2, %v23_v37  ;;  %v44_v48 = vmul.f32 %v232_v2, %v24_v38 }
   0xe   :  { %194 = vst [vmem:[%s341_s3 + $0x8] sm:$0xff] %v162_v40   ;;  %v45_v49 = vmul.f32 %v232_v2, %v25_v39  ;;  %v167_v52 = vpack.c.bf16 %v107_v46, %v106_v42  ;;  %v108_v53 = vsel %vm76_vm6, %v60_v24, %v92_v43  ;;  %v109_v54 = vsel %vm77_vm7, %v61_v25, %v93_v44 }
   0xf   :  { %v62_v55 = vadd.f32 %v237_v3, %v42_v45  ;;  %v172_v56 = vpack.c.bf16 %v109_v54, %v108_v53  ;;  %v63_v57 = vadd.f32 %v237_v3, %v43_v47  ;;  %v64_v58 = vadd.f32 %v237_v3, %v44_v48 }
  0x10   :  { %v65_v59 = vadd.f32 %v237_v3, %v45_v49  ;;  %195 = vst [vmem:[%s341_s3 + $0x10] sm:$0xff] %v167_v52   ;;  %v46_v61 = vmul.f32 %v232_v2, %v26_v50  ;;  %v47_v62 = vmul.f32 %v232_v2, %v27_v51  ;;  %v48_v10 = vmul.f32 %v232_v2, %v28_v63 }
  0x11   :  { %vm78_vm8 = vcmp.gt.f32.partialorder %v62_v55, 0.0  ;;  %v94_v60 = vmul.f32 0.01, %v62_v55  ;;  %196 = vst [vmem:[%s341_s3 + $0x18] sm:$0xff] %v172_v56   ;;  %vm79_vm9 = vcmp.gt.f32.partialorder %v63_v57, 0.0  ;;  %vm80_vm10 = vcmp.gt.f32.partialorder %v64_v58, 0.0 }
  0x12   :  { %v95_v1 = vmul.f32 0.01, %v63_v57  ;;  %vm81_vm11 = vcmp.gt.f32.partialorder %v65_v59, 0.0  ;;  %v96_v5 = vmul.f32 0.01, %v64_v58  ;;  %v66_v7 = vadd.f32 %v237_v3, %v46_v61 }
  0x13   :  { %v110_v4 = vsel %vm78_vm8, %v62_v55, %v94_v60  ;;  %v97_v6 = vmul.f32 0.01, %v65_v59  ;;  %v67_v9 = vadd.f32 %v237_v3, %v47_v62  ;;  %v49_v11 = vmul.f32 %v232_v2, %v29_v0 }
  0x14   :  { %v111_v8 = vsel %vm79_vm9, %v63_v57, %v95_v1  ;;  %v112_v13 = vsel %vm80_vm10, %v64_v58, %v96_v5  ;;  %vm82_vm12 = vcmp.gt.f32.partialorder %v66_v7, 0.0  ;;  %v98_v16 = vmul.f32 0.01, %v66_v7 }
  0x15   :  { %v177_v12 = vpack.c.bf16 %v111_v8, %v110_v4  ;;  %v113_v14 = vsel %vm81_vm11, %v65_v59, %v97_v6  ;;  %vm83_vm13 = vcmp.gt.f32.partialorder %v67_v9, 0.0  ;;  %v99_v17 = vmul.f32 0.01, %v67_v9 }
  0x16   :  { %v182_v15 = vpack.c.bf16 %v113_v14, %v112_v13  ;;  %v68_v18 = vadd.f32 %v237_v3, %v48_v10  ;;  %v69_v19 = vadd.f32 %v237_v3, %v49_v11  ;;  %v114_v2 = vsel %vm82_vm12, %v66_v7, %v98_v16 }
  0x17   :  { %197 = vst [vmem:[%s341_s3 + $0x20] sm:$0xff] %v177_v12   ;;  %v115_v20 = vsel %vm83_vm13, %v67_v9, %v99_v17 }
  0x18   :  { %198 = vst [vmem:[%s341_s3 + $0x28] sm:$0xff] %v182_v15   ;;  %v187_v21 = vpack.c.bf16 %v115_v20, %v114_v2  ;;  %vm84_vm14 = vcmp.gt.f32.partialorder %v68_v18, 0.0  ;;  %vm85_vm15 = vcmp.gt.f32.partialorder %v69_v19, 0.0  ;;  %v100_v22 = vmul.f32 0.01, %v68_v18 }
  0x19   :  { %v101_v23 = vmul.f32 0.01, %v69_v19 }
  0x1a   :  { %199 = vst [vmem:[%s341_s3 + $0x30] sm:$0xff] %v187_v21   ;;  %v116_v24 = vsel %vm84_vm14, %v68_v18, %v100_v22 }
  0x1b   :  { %v117_v25 = vsel %vm85_vm15, %v69_v19, %v101_v23 }
  0x1c   :  { %v192_v26 = vpack.c.bf16 %v117_v25, %v116_v24 }
  0x1e   :  { %200 = vst [vmem:[%s341_s3 + $0x38] sm:$0xff] %v192_v26  }

// kernel: resnet_block_forward.9
= control target key start
LH: loop header
LB: loop body
LE: loop exit
PB: predicated region body
PF: predicated region fallthrough
CT: control target
= control target key end

     0   :  { %s1418_s9 = smov 0   ;;  %s1420_s10 = smov 0   ;;  %s1729_s0 = inlined_call_operand.vmem [shape: bf16[128,1152], index: 0, kind: input, shape index: {}]   ;;  %s1730_s1 = inlined_call_operand.vmem [shape: bf16[1152,128], index: 1, kind: input, shape index: {}]   ;;  %s1731_s2 = inlined_call_operand.vmem [shape: f32[128,128], index: 2, kind: output, shape index: {}]  }
   0x1   :  { %s1422_s11 = smov 0   ;;  %s1424_s12 = smov 0  }
   0x2   :  { %s1426_s13 = smov 0  }
   0x3 LB: > { %s24_s14 = sadd.s32 1, %s1396_s12  ;;  %p47_p1 = scmp.ne.s32.totalorder %s1388_s10, %s1384_s9  ;;  %s1400_s13 = sphi %s1426_s13, %s12_s13   ;;  %s1396_s12 = sphi %s1424_s12, %s1735_s12   ;;  %s1392_s11 = sphi %s1422_s11, %s1734_s11   ;;  %s1388_s10 = sphi %s1420_s10, %s1733_s10   ;;  %s1384_s9 = sphi %s1418_s9, %s1732_s9  }
   0x4   : > { %p25_p0 = scmp.ge.s32.totalorder %s24_s14, 3  ;;  %p48_p2 = scmp.eq.s32.totalorder %s1400_s13, 0 }
   0x5   : > { %s40_s16 = sadd.s32 1, %s1388_s10  ;;  %p1012_p5 = scmp.ge.s32.totalorder %s1400_s13, 3 }
   0x6   : > { %s1737_s14 = smov (%p25_p0, %s24_s14), 0  ;;  %p49_p3 = por %p48_p2, %p47_p1 }
   0x7   : > { %s36_s15 = ssub.s32 %s1396_s12, %s1737_s14  ;;  %129 = sbr.rel (%p1012_p5) target bundleno = 49 (0x31), region = 16 }
   0x8   : > { %p38_p4 = scmp.eq.s32.totalorder %s36_s15, 0 }
   0xa   : > { %s1453_s17 = scalar_select %p38_p4, %s1388_s10, %s40_s16  }
   0xc   : > { %132 = sbr.rel (!%p49_p3) target bundleno = 49 (0x31), region = 20  ;;  %s134_s18 = sand.u32 (%p49_p3), 1, %s1388_s10  }
   0xd   : > { %s1246_s19 = smul.u32 (%p49_p3), 12, %s1396_s12 }
   0xe   : > { %s1319_s20 = smul.u32 (%p49_p3), 192, %s134_s18 }
   0xf   : > { %s1461_s23 = scalar_lea.vmem (%p49_p3), %s1729_s0, %s1246_s19 }
  0x10   : > { %v157_v0 = vld [vmem:[%s1461_s23] sm:$0xff] (%p49_p3)  ;;  %v161_v2 = vld [vmem:[%s1461_s23 + $0x48] sm:$0xff] (%p49_p3)  ;;  %s1466_s24 = scalar_lea.vmem (%p49_p3), [#allocation3], %s1319_s20  ;;  %v165_v4 = vld [vmem:[%s1461_s23 + $0x90] sm:$0xff] (%p49_p3) }
  0x11   : > { %v159_v1 = vld [vmem:[%s1461_s23 + $0x24] sm:$0xff]  ;;  %158 = vst [vmem:[%s1466_s24] sm:$0xff] %v157_v0  ;;  %v163_v3 = vld [vmem:[%s1461_s23 + $0x6c] sm:$0xff]  ;;  %v167_v5 = vld [vmem:[%s1461_s23 + $0xb4] sm:$0xff] }
  0x12   : > { %160 = vst [vmem:[%s1466_s24 + $0xc] sm:$0xff] %v159_v1  ;;  %v169_v6 = vld [vmem:[%s1461_s23 + $0xd8] sm:$0xff]  ;;  %v173_v8 = vld [vmem:[%s1461_s23 + $0x120] sm:$0xff]  ;;  %v177_v10 = vld [vmem:[%s1461_s23 + $0x168] sm:$0xff] }
  0x13   : > { %162 = vst [vmem:[%s1466_s24 + $0x18] sm:$0xff] %v161_v2  ;;  %v171_v7 = vld [vmem:[%s1461_s23 + $0xfc] sm:$0xff]  ;;  %v175_v9 = vld [vmem:[%s1461_s23 + $0x144] sm:$0xff]  ;;  %v179_v11 = vld [vmem:[%s1461_s23 + $0x18c] sm:$0xff] }
  0x14   : > { %164 = vst [vmem:[%s1466_s24 + $0x24] sm:$0xff] %v163_v3  ;;  %v181_v12 = vld [vmem:[%s1461_s23 + $0x1b0] sm:$0xff]  ;;  %v185_v14 = vld [vmem:[%s1461_s23 + $0x1f8] sm:$0xff]  ;;  %v1014_v16 = vld [vmem:[%s1461_s23 + $0x8] sm:$0xf] }
  0x15   : > { %166 = vst [vmem:[%s1466_s24 + $0x30] sm:$0xff] %v165_v4  ;;  %v183_v13 = vld [vmem:[%s1461_s23 + $0x1d4] sm:$0xff]  ;;  %v187_v15 = vld [vmem:[%s1461_s23 + $0x21c] sm:$0xff]  ;;  %v1016_v17 = vld [vmem:[%s1461_s23 + $0x2c] sm:$0xf] }
  0x16   : > { %168 = vst [vmem:[%s1466_s24 + $0x3c] sm:$0xff] %v167_v5  ;;  %v1018_v18 = vld [vmem:[%s1461_s23 + $0x50] sm:$0xf]  ;;  %v1020_v19 = vld [vmem:[%s1461_s23 + $0x74] sm:$0xf] }
  0x17   : > { %170 = vst [vmem:[%s1466_s24 + $0x48] sm:$0xff] %v169_v6  ;;  %v1022_v20 = vld [vmem:[%s1461_s23 + $0x98] sm:$0xf]  ;;  %v1024_v21 = vld [vmem:[%s1461_s23 + $0xbc] sm:$0xf] }
  0x18   : > { %172 = vst [vmem:[%s1466_s24 + $0x54] sm:$0xff] %v171_v7  ;;  %v1026_v22 = vld [vmem:[%s1461_s23 + $0xe0] sm:$0xf]  ;;  %v1028_v23 = vld [vmem:[%s1461_s23 + $0x104] sm:$0xf] }
  0x19   : > { %174 = vst [vmem:[%s1466_s24 + $0x60] sm:$0xff] %v173_v8  ;;  %v1030_v24 = vld [vmem:[%s1461_s23 + $0x128] sm:$0xf]  ;;  %v1032_v25 = vld [vmem:[%s1461_s23 + $0x14c] sm:$0xf] }
  0x1a   : > { %176 = vst [vmem:[%s1466_s24 + $0x6c] sm:$0xff] %v175_v9  ;;  %v1034_v26 = vld [vmem:[%s1461_s23 + $0x170] sm:$0xf]  ;;  %v1036_v27 = vld [vmem:[%s1461_s23 + $0x194] sm:$0xf] }
  0x1b   : > { %178 = vst [vmem:[%s1466_s24 + $0x78] sm:$0xff] %v177_v10  ;;  %v1038_v28 = vld [vmem:[%s1461_s23 + $0x1b8] sm:$0xf]  ;;  %v1040_v29 = vld [vmem:[%s1461_s23 + $0x1dc] sm:$0xf] }
  0x1c   : > { %180 = vst [vmem:[%s1466_s24 + $0x84] sm:$0xff] %v179_v11  ;;  %v1042_v30 = vld [vmem:[%s1461_s23 + $0x200] sm:$0xf]  ;;  %v1044_v31 = vld [vmem:[%s1461_s23 + $0x224] sm:$0xf] }
  0x1d   : > { %182 = vst [vmem:[%s1466_s24 + $0x90] sm:$0xff] %v181_v12 }
  0x1e   : > { %184 = vst [vmem:[%s1466_s24 + $0x9c] sm:$0xff] %v183_v13 }
  0x1f   : > { %186 = vst [vmem:[%s1466_s24 + $0xa8] sm:$0xff] %v185_v14 }
  0x20   : > { %188 = vst [vmem:[%s1466_s24 + $0xb4] sm:$0xff] %v187_v15 }
  0x21   : > { %1015 = vst [vmem:[%s1466_s24 + $0x8] sm:$0xf] %v1014_v16 }
  0x22   : > { %1017 = vst [vmem:[%s1466_s24 + $0x14] sm:$0xf] %v1016_v17 }
  0x23   : > { %1019 = vst [vmem:[%s1466_s24 + $0x20] sm:$0xf] %v1018_v18 }
  0x24   : > { %1021 = vst [vmem:[%s1466_s24 + $0x2c] sm:$0xf] %v1020_v19 }
  0x25   : > { %1023 = vst [vmem:[%s1466_s24 + $0x38] sm:$0xf] %v1022_v20 }
  0x26   : > { %1025 = vst [vmem:[%s1466_s24 + $0x44] sm:$0xf] %v1024_v21 }
  0x27   : > { %1027 = vst [vmem:[%s1466_s24 + $0x50] sm:$0xf] %v1026_v22 }
  0x28   : > { %1029 = vst [vmem:[%s1466_s24 + $0x5c] sm:$0xf] %v1028_v23 }
  0x29   : > { %1031 = vst [vmem:[%s1466_s24 + $0x68] sm:$0xf] %v1030_v24 }
  0x2a   : > { %1033 = vst [vmem:[%s1466_s24 + $0x74] sm:$0xf] %v1032_v25 }
  0x2b   : > { %1035 = vst [vmem:[%s1466_s24 + $0x80] sm:$0xf] %v1034_v26 }
  0x2c   : > { %1037 = vst [vmem:[%s1466_s24 + $0x8c] sm:$0xf] %v1036_v27 }
  0x2d   : > { %1039 = vst [vmem:[%s1466_s24 + $0x98] sm:$0xf] %v1038_v28 }
  0x2e   : > { %1041 = vst [vmem:[%s1466_s24 + $0xa4] sm:$0xf] %v1040_v29 }
  0x2f   : > { %1043 = vst [vmem:[%s1466_s24 + $0xb0] sm:$0xf] %v1042_v30 }
  0x30   : > { %1045 = vst [vmem:[%s1466_s24 + $0xbc] sm:$0xf] %v1044_v31 }
  0x31 PF: > { %p1046_p6 = scmp.ge.s32.totalorder %s1400_s13, 1  ;;  %p245_p7 = scmp.lt.s32.totalorder %s1400_s13, 4 }
  0x33   : > { %p246_p8 = pnand %p1046_p6, %p245_p7 }
  0x34   : > { %s252_s25 = sand.u32 (!%p246_p8), 1, %s1384_s9   ;;  %s286_s26 = smul.u32 (!%p246_p8), 48, %s1392_s11 }
  0x35   : > { %249 = sbr.rel (%p246_p8) target bundleno = 356 (0x164), region = 50  ;;  %p1048_p10 = scmp.ne.s32.totalorder (!%p246_p8), %s1392_s11, 0 }
  0x36   : > { %s1320_s27 = smul.u32 (!%p246_p8), 192, %s252_s25  ;;  %p287_p9 = scmp.lt.s32.totalorder (!%p246_p8), %s286_s26, 143 }
  0x38   : > { %s1538_s4 = scalar_lea.vmem (!%p246_p8), [#allocation3], %s1320_s27 }
  0x3a   : > { %s1739_s26 = smov (!%p287_p9, %s286_s26), 143  ;;  %307 = sbr.rel (%p1048_p10) target bundleno = 80 (0x50), region = 58 }
  0x3b   : > { %s1047_s28 = sshll.u32 %s1739_s26, 2 }
  0x3c   : > { %s1536_s3 = scalar_lea.vmem %s1730_s1, %s1047_s28 }
  0x3f   : > { %v1402_v32 = vmov 0.0  }
  0x40   : > { %308 = vst [vmem:[#allocation2 + $0x30] sm:$0xff] %v1402_v32 }
  0x41   : > { %309 = vst [vmem:[#allocation2] sm:$0xff] %v1402_v32 }
  0x42   : > { %310 = vst [vmem:[#allocation2 + $0x58] sm:$0xff] %v1402_v32 }
  0x43   : > { %311 = vst [vmem:[#allocation2 + $0x18] sm:$0xff] %v1402_v32 }
  0x44   : > { %312 = vst [vmem:[#allocation2 + $0x50] sm:$0xff] %v1402_v32 }
  0x45   : > { %313 = vst [vmem:[#allocation2 + $0x68] sm:$0xff] %v1402_v32 }
  0x46   : > { %314 = vst [vmem:[#allocation2 + $0x8] sm:$0xff] %v1402_v32 }
  0x47   : > { %315 = vst [vmem:[#allocation2 + $0x48] sm:$0xff] %v1402_v32 }
  0x48   : > { %316 = vst [vmem:[#allocation2 + $0x40] sm:$0xff] %v1402_v32 }
  0x49   : > { %317 = vst [vmem:[#allocation2 + $0x20] sm:$0xff] %v1402_v32 }
  0x4a   : > { %318 = vst [vmem:[#allocation2 + $0x10] sm:$0xff] %v1402_v32 }
  0x4b   : > { %319 = vst [vmem:[#allocation2 + $0x38] sm:$0xff] %v1402_v32 }
  0x4c   : > { %320 = vst [vmem:[#allocation2 + $0x60] sm:$0xff] %v1402_v32 }
  0x4d   : > { %321 = vst [vmem:[#allocation2 + $0x70] sm:$0xff] %v1402_v32 }
  0x4e   : > { %322 = vst [vmem:[#allocation2 + $0x78] sm:$0xff] %v1402_v32 }
  0x4f   : > { %323 = vst [vmem:[#allocation2 + $0x28] sm:$0xff] %v1402_v32 }
  0x50 PF: > { %v1278_v33 = vld [vmem:[%s1536_s3 + $0x38] sm:$0xff]  ;;  %v1277_v36 = vld [vmem:[%s1536_s3 + $0x30] sm:$0xff]  ;;  %v1276_v39 = vld [vmem:[%s1536_s3 + $0x28] sm:$0xff]  ;;  %p1241_p11 = scmp.ne.s32.totalorder %s1392_s11, 2 }
  0x51   : > { %v1543_v34 = vld [vmem:[%s1536_s3 + $0x78] sm:$0xff]  ;;  %692 = vmatpush.bf16.msra.mxu0 %v1278_v33  ;;  %1295 = vmatpush.bf16.msra.mxu3 %v1278_v33  ;;  %v1552_v37 = vld [vmem:[%s1536_s3 + $0x70] sm:$0xff]  ;;  %v1284_v40 = vld [vmem:[%s1536_s3 + $0x68] sm:$0xff] }
  0x52   : > { %v1546_v35 = vld [vmem:[%s1536_s3 + $0xb8] sm:$0xff]  ;;  %741 = vmatpush.bf16.msra.mxu1 %v1543_v34  ;;  %v1555_v38 = vld [vmem:[%s1536_s3 + $0xb0] sm:$0xff]  ;;  %v1562_v41 = vld [vmem:[%s1536_s3 + $0xa8] sm:$0xff] }
  0x53   : > { %790 = vmatpush.bf16.msra.mxu2 %v1546_v35  ;;  %v1275_v42 = vld [vmem:[%s1536_s3 + $0x20] sm:$0xff]  ;;  %v1274_v45 = vld [vmem:[%s1536_s3 + $0x18] sm:$0xff]  ;;  %v1273_v48 = vld [vmem:[%s1536_s3 + $0x10] sm:$0xff] }
  0x54   : > { %v1283_v43 = vld [vmem:[%s1536_s3 + $0x60] sm:$0xff]  ;;  %v1282_v46 = vld [vmem:[%s1536_s3 + $0x58] sm:$0xff]  ;;  %v1281_v49 = vld [vmem:[%s1536_s3 + $0x50] sm:$0xff] }
  0x55   : > { %693 = vmatpush.bf16.msra.mxu0 %v1277_v36  ;;  %1296 = vmatpush.bf16.msra.mxu3 %v1277_v36  ;;  %v1568_v44 = vld [vmem:[%s1536_s3 + $0xa0] sm:$0xff]  ;;  %v1574_v47 = vld [vmem:[%s1536_s3 + $0x98] sm:$0xff]  ;;  %v1580_v50 = vld [vmem:[%s1536_s3 + $0x90] sm:$0xff] }
  0x56   : > { %742 = vmatpush.bf16.msra.mxu1 %v1552_v37  ;;  %v1272_v51 = vld [vmem:[%s1536_s3 + $0x8] sm:$0xff]  ;;  %v1271_v54 = vld [vmem:[%s1536_s3] sm:$0xff]  ;;  %v1123_v59 = vld [vmem:[%s1538_s4 + $0x90] sm:$0xf] }
  0x57   : > { %791 = vmatpush.bf16.msra.mxu2 %v1555_v38  ;;  %v1280_v52 = vld [vmem:[%s1536_s3 + $0x48] sm:$0xff]  ;;  %v1279_v55 = vld [vmem:[%s1536_s3 + $0x40] sm:$0xff]  ;;  %v1266_v60 = vld [vmem:[%s1538_s4 + $0x98] sm:$0xf0] }
  0x58   : > { %v1586_v53 = vld [vmem:[%s1536_s3 + $0x88] sm:$0xff]  ;;  %v1591_v56 = vld [vmem:[%s1536_s3 + $0x80] sm:$0xff]  ;;  %v1053_v62 = vld [vmem:[%s1538_s4 + $0xc] sm:$0xf0]  ;;  %v1124_v2 = vor.u32 %v1266_v60, %v1123_v59 }
  0x59   : > { %694 = vmatpush.bf16.msra.mxu0 %v1276_v39  ;;  %1297 = vmatpush.bf16.msra.mxu3 %v1276_v39  ;;  %v1051_v57 = vld [vmem:[%s1538_s4] sm:$0xf]  ;;  %v1248_v58 = vld [vmem:[%s1538_s4 + $0x8] sm:$0xf0]  ;;  %v1247_v61 = vld [vmem:[%s1538_s4 + $0x4] sm:$0xf] }
  0x5a   : > { %743 = vmatpush.bf16.msra.mxu1 %v1284_v40  ;;  %v1059_v63 = vld [vmem:[%s1538_s4 + $0x8] sm:$0xf]  ;;  %v1249_v0 = vld [vmem:[%s1538_s4 + $0x10] sm:$0xf0]  ;;  %v1052_v1 = vor.u32 %v1248_v58, %v1051_v57  ;;  %v1056_v3 = vor.u32 %v1247_v61, %v1053_v62  ;;  %v1063_v5 = vld [vmem:[%s1538_s4 + $0x18] sm:$0xf] }
  0x5b   : > { %792 = vmatpush.bf16.msra.mxu2 %v1562_v41  ;;  %v1060_v4 = vor.u32 %v1249_v0, %v1059_v63  ;;  %v1251_v6 = vld [vmem:[%s1538_s4 + $0x20] sm:$0xf0]  ;;  %v1135_v7 = vld [vmem:[%s1538_s4 + $0xa8] sm:$0xf]  ;;  %v1269_v8 = vld [vmem:[%s1538_s4 + $0xb0] sm:$0xf0] }
  0x5c   : > { %v1250_v9 = vld [vmem:[%s1538_s4 + $0x1c] sm:$0xf]  ;;  %v1065_v10 = vld [vmem:[%s1538_s4 + $0x24] sm:$0xf0]  ;;  %v1071_v11 = vld [vmem:[%s1538_s4 + $0x20] sm:$0xf]  ;;  %v1064_v13 = vor.u32 %v1251_v6, %v1063_v5  ;;  %v1136_v14 = vor.u32 %v1269_v8, %v1135_v7 }
  0x5d   : > { %695 = vmatpush.bf16.msra.mxu0 %v1275_v42  ;;  %1298 = vmatpush.bf16.msra.mxu3 %v1275_v42  ;;  %v1252_v12 = vld [vmem:[%s1538_s4 + $0x28] sm:$0xf0]  ;;  %v1068_v15 = vor.u32 %v1250_v9, %v1065_v10  ;;  %v1075_v17 = vld [vmem:[%s1538_s4 + $0x30] sm:$0xf]  ;;  %v1254_v18 = vld [vmem:[%s1538_s4 + $0x38] sm:$0xf0] }
  0x5e   : > { %744 = vmatpush.bf16.msra.mxu1 %v1283_v43  ;;  %v1072_v16 = vor.u32 %v1252_v12, %v1071_v11  ;;  %v1253_v19 = vld [vmem:[%s1538_s4 + $0x34] sm:$0xf]  ;;  %v1125_v21 = vld [vmem:[%s1538_s4 + $0x9c] sm:$0xf0]  ;;  %v1083_v23 = vld [vmem:[%s1538_s4 + $0x38] sm:$0xf]  ;;  %v1076_v25 = vor.u32 %v1254_v18, %v1075_v17 }
  0x5f   : > { %793 = vmatpush.bf16.msra.mxu2 %v1568_v44  ;;  %v1265_v20 = vld [vmem:[%s1538_s4 + $0x94] sm:$0xf]  ;;  %v1077_v22 = vld [vmem:[%s1538_s4 + $0x3c] sm:$0xf0]  ;;  %v1255_v24 = vld [vmem:[%s1538_s4 + $0x40] sm:$0xf0] }
  0x60   : > { %v1128_v26 = vor.u32 %v1265_v20, %v1125_v21  ;;  %v1080_v27 = vor.u32 %v1253_v19, %v1077_v22  ;;  %v1084_v28 = vor.u32 %v1255_v24, %v1083_v23  ;;  %v1087_v29 = vld [vmem:[%s1538_s4 + $0x48] sm:$0xf]  ;;  %v1257_v30 = vld [vmem:[%s1538_s4 + $0x50] sm:$0xf0]  ;;  %v1256_v31 = vld [vmem:[%s1538_s4 + $0x4c] sm:$0xf] }
  0x61   : > { %696 = vmatpush.bf16.msra.mxu0 %v1274_v45  ;;  %1299 = vmatpush.bf16.msra.mxu3 %v1274_v45  ;;  %v1268_v32 = vld [vmem:[%s1538_s4 + $0xac] sm:$0xf]  ;;  %v1137_v33 = vld [vmem:[%s1538_s4 + $0xb4] sm:$0xf0]  ;;  %v1258_v36 = vld [vmem:[%s1538_s4 + $0x58] sm:$0xf0] }
  0x62   : > { %745 = vmatpush.bf16.msra.mxu1 %v1282_v46  ;;  %v1140_v39 = vor.u32 %v1268_v32, %v1137_v33  ;;  %v1260_v42 = vld [vmem:[%s1538_s4 + $0x68] sm:$0xf0]  ;;  %v1267_v45 = vld [vmem:[%s1538_s4 + $0xa0] sm:$0xf0]  ;;  %v1143_v57 = vld [vmem:[%s1538_s4 + $0xb0] sm:$0xf] }
  0x63   : > { %794 = vmatpush.bf16.msra.mxu2 %v1574_v47  ;;  %v1113_v58 = vld [vmem:[%s1538_s4 + $0x84] sm:$0xf0]  ;;  %v1119_v59 = vld [vmem:[%s1538_s4 + $0x80] sm:$0xf]  ;;  %v1264_v60 = vld [vmem:[%s1538_s4 + $0x88] sm:$0xf0] }
  0x64   : > { %v1120_v0 = vor.u32 %v1264_v60, %v1119_v59  ;;  %v324_v5 = vld [vmem:[#allocation2 + $0x30] sm:$0xff]  ;;  %v326_v21 = vld [vmem:[#allocation2 + $0x58] sm:$0xff] }
  0x65   : > { %697 = vmatpush.bf16.msra.mxu0 %v1273_v48  ;;  %1300 = vmatpush.bf16.msra.mxu3 %v1273_v48  ;;  %v1261_v48 = vld [vmem:[%s1538_s4 + $0x70] sm:$0xf0] }
  0x66   : > { %746 = vmatpush.bf16.msra.mxu1 %v1281_v49 }
  0x67   : > { %795 = vmatpush.bf16.msra.mxu2 %v1580_v50 }
  0x69   : > { %698 = vmatpush.bf16.msra.mxu0 %v1272_v51  ;;  %1301 = vmatpush.bf16.msra.mxu3 %v1272_v51 }
  0x6a   : > { %747 = vmatpush.bf16.msra.mxu1 %v1280_v52 }
  0x6b   : > { %796 = vmatpush.bf16.msra.mxu2 %v1586_v53 }
  0x6d   : > { %699 = vmatpush.bf16.msra.mxu0 %v1271_v54  ;;  %1302 = vmatpush.bf16.msra.mxu3 %v1271_v54  ;;  %v1263_v54 = vld [vmem:[%s1538_s4 + $0x80] sm:$0xf0] }
  0x6e   : > { %748 = vmatpush.bf16.msra.mxu1 %v1279_v55 }
  0x6f   : > { %797 = vmatpush.bf16.msra.mxu2 %v1591_v56 }
  0x70   : > { %700 = vmatmul.bf16.vlgmr.msra.gmra.mxu0 %v1052_v1  ;;  %730 = vmatmul.bf16.vlgmr.msra.gmra.mxu3 %v1124_v2 }
  0x71   : > { %1303 = vmatpush.bf16.msrb.mxu3 %v1543_v34  ;;  %749 = vmatmul.bf16.vlgmr.msra.gmra.mxu1 %v1056_v3  ;;  %v1089_v34 = vld [vmem:[%s1538_s4 + $0x54] sm:$0xf0] }
  0x72   : > { %798 = vmatmul.bf16.vlgmr.msra.gmra.mxu2 %v1060_v4 }
  0x75   : > { %1304 = vmatpush.bf16.msrb.mxu3 %v1552_v37  ;;  %v1088_v37 = vor.u32 %v1257_v30, %v1087_v29  ;;  %v327_v29 = vld [vmem:[#allocation2 + $0x18] sm:$0xff] }
  0x79   : > { %1305 = vmatpush.bf16.msrb.mxu3 %v1284_v40 }
  0x7d   : > { %1306 = vmatpush.bf16.msrb.mxu3 %v1283_v43  ;;  %v1259_v43 = vld [vmem:[%s1538_s4 + $0x64] sm:$0xf] }
  0x80   : > { %705 = vmatmul.bf16.gmra.mxu0 %v1064_v13  ;;  %735 = vmatmul.bf16.gmra.mxu3 %v1136_v14  ;;  %v325_v13 = vld [vmem:[#allocation2] sm:$0xff] }
  0x81   : > { %1307 = vmatpush.bf16.msrb.mxu3 %v1282_v46  ;;  %754 = vmatmul.bf16.gmra.mxu1 %v1068_v15  ;;  %v1101_v46 = vld [vmem:[%s1538_s4 + $0x6c] sm:$0xf0] }
  0x82   : > { %803 = vmatmul.bf16.gmra.mxu2 %v1072_v16  ;;  %v1104_v51 = vor.u32 %v1259_v43, %v1101_v46 }
  0x85   : > { %1308 = vmatpush.bf16.msrb.mxu3 %v1281_v49 }
  0x89   : > { %1309 = vmatpush.bf16.msrb.mxu3 %v1280_v52 }
  0x8d   : > { %1310 = vmatpush.bf16.msrb.mxu3 %v1279_v55  ;;  %v1262_v55 = vld [vmem:[%s1538_s4 + $0x7c] sm:$0xf] }
  0x8e   : > { %v1116_v63 = vor.u32 %v1262_v55, %v1113_v58 }
  0x90   : > { %710 = vmatmul.bf16.gmra.mxu0 %v1076_v25  ;;  %779 = vmatmul.bf16.vlgmr.msrb.gmra.mxu3 %v1128_v26 }
  0x91   : > { %1311 = vmatpush.bf16.msra.mxu3 %v1546_v35  ;;  %759 = vmatmul.bf16.gmra.mxu1 %v1080_v27  ;;  %v1095_v35 = vld [vmem:[%s1538_s4 + $0x50] sm:$0xf] }
  0x92   : > { %808 = vmatmul.bf16.gmra.mxu2 %v1084_v28  ;;  %v1096_v40 = vor.u32 %v1258_v36, %v1095_v35 }
  0x95   : > { %1312 = vmatpush.bf16.msra.mxu3 %v1555_v38  ;;  %v1092_v38 = vor.u32 %v1256_v31, %v1089_v34 }
  0x99   : > { %1313 = vmatpush.bf16.msra.mxu3 %v1562_v41  ;;  %v1099_v41 = vld [vmem:[%s1538_s4 + $0x60] sm:$0xf] }
  0x9a   : > { %v1100_v49 = vor.u32 %v1260_v42, %v1099_v41 }
  0x9d   : > { %1314 = vmatpush.bf16.msra.mxu3 %v1568_v44  ;;  %v1131_v44 = vld [vmem:[%s1538_s4 + $0x98] sm:$0xf] }
  0xa0   : > { %715 = vmatmul.bf16.gmra.mxu0 %v1088_v37  ;;  %784 = vmatmul.bf16.gmra.mxu3 %v1140_v39  ;;  %v328_v37 = vld [vmem:[#allocation2 + $0x50] sm:$0xff] }
  0xa1   : > { %1315 = vmatpush.bf16.msra.mxu3 %v1574_v47  ;;  %764 = vmatmul.bf16.gmra.mxu1 %v1092_v38  ;;  %v1107_v47 = vld [vmem:[%s1538_s4 + $0x68] sm:$0xf] }
  0xa2   : > { %813 = vmatmul.bf16.gmra.mxu2 %v1096_v40  ;;  %v1108_v52 = vor.u32 %v1261_v48, %v1107_v47 }
  0xa5   : > { %1316 = vmatpush.bf16.msra.mxu3 %v1580_v50  ;;  %v1132_v50 = vor.u32 %v1267_v45, %v1131_v44  ;;  %v329_v45 = vld [vmem:[#allocation2 + $0x68] sm:$0xff] }
  0xa9   : > { %1317 = vmatpush.bf16.msra.mxu3 %v1586_v53  ;;  %v1111_v53 = vld [vmem:[%s1538_s4 + $0x78] sm:$0xf] }
  0xaa   : > { %v1112_v61 = vor.u32 %v1263_v54, %v1111_v53  ;;  %v330_v53 = vld [vmem:[#allocation2 + $0x8] sm:$0xff] }
  0xad   : > { %1318 = vmatpush.bf16.msra.mxu3 %v1591_v56  ;;  %v1270_v56 = vld [vmem:[%s1538_s4 + $0xb8] sm:$0xf0] }
  0xae   : > { %v1144_v62 = vor.u32 %v1270_v56, %v1143_v57 }
  0xb0   : > { %720 = vmatmul.bf16.gmra.mxu0 %v1100_v49  ;;  %828 = vmatmul.bf16.vlgmr.msra.gmra.mxu3 %v1132_v50 }
  0xb1   : > { %769 = vmatmul.bf16.gmra.mxu1 %v1104_v51 }
  0xb2   : > { %818 = vmatmul.bf16.gmra.mxu2 %v1108_v52 }
  0xc0   : > { %725 = vmatmul.bf16.gmra.mxu0 %v1112_v61  ;;  %833 = vmatmul.bf16.gmra.mxu3 %v1144_v62  ;;  %v331_v61 = vld [vmem:[#allocation2 + $0x48] sm:$0xff] }
  0xc1   : > { %774 = vmatmul.bf16.gmra.mxu1 %v1116_v63 }
  0xc2   : > { %823 = vmatmul.bf16.gmra.mxu2 %v1120_v0 }
  0xed   : > { %v701_v1 = vpop.f32.mrf.mxu0 }
  0xee   : > { %v750_v2 = vpop.f32.mrf.mxu1 }
  0xef   : > { %v751_v3 = vadd.f32 %v750_v2, %v701_v1 }
  0xf3   : > { %v1653_v4 = vpop.f32.mrf.mxu3 }
  0xf5   : > { %v799_v6 = vpop.f32.mrf.mxu2  ;;  %v703_v8 = vpop.f32.mrf.mxu0 }
  0xf6   : > { %v800_v7 = vadd.f32 %v799_v6, %v751_v3  ;;  %v752_v9 = vpop.f32.mrf.mxu1  ;;  %v336_v6 = vld [vmem:[#allocation2 + $0x60] sm:$0xff] }
  0xf7   : > { %v753_v11 = vadd.f32 %v752_v9, %v703_v8  ;;  %v332_v8 = vld [vmem:[#allocation2 + $0x40] sm:$0xff] }
  0xf8   : > { %v839_v10 = vadd.f32 %v800_v7, %v324_v5 }
  0xfa   : > { %855 = vst [vmem:[#allocation2 + $0x30] sm:$0xff] %v839_v10 }
  0xfb   : > { %v1655_v12 = vpop.f32.mrf.mxu3 }
  0xfd   : > { %v801_v14 = vpop.f32.mrf.mxu2  ;;  %v706_v16 = vpop.f32.mrf.mxu0 }
  0xfe   : > { %v802_v15 = vadd.f32 %v801_v14, %v753_v11  ;;  %v755_v17 = vpop.f32.mrf.mxu1 }
  0xff   : > { %v756_v19 = vadd.f32 %v755_v17, %v706_v16 }
 0x100   : > { %v840_v18 = vadd.f32 %v802_v15, %v325_v13 }
 0x102   : > { %856 = vst [vmem:[#allocation2] sm:$0xff] %v840_v18 }
 0x103   : > { %v1657_v20 = vpop.f32.mrf.mxu3 }
 0x105   : > { %v804_v22 = vpop.f32.mrf.mxu2  ;;  %v708_v24 = vpop.f32.mrf.mxu0 }
 0x106   : > { %v805_v23 = vadd.f32 %v804_v22, %v756_v19  ;;  %v757_v25 = vpop.f32.mrf.mxu1  ;;  %v337_v19 = vld [vmem:[#allocation2 + $0x70] sm:$0xff]  ;;  %v333_v22 = vld [vmem:[#allocation2 + $0x20] sm:$0xff] }
 0x107   : > { %v758_v27 = vadd.f32 %v757_v25, %v708_v24 }
 0x108   : > { %v841_v26 = vadd.f32 %v805_v23, %v326_v21 }
 0x10a   : > { %857 = vst [vmem:[#allocation2 + $0x58] sm:$0xff] %v841_v26 }
 0x10b   : > { %v1659_v28 = vpop.f32.mrf.mxu3 }
 0x10d   : > { %v806_v30 = vpop.f32.mrf.mxu2  ;;  %v711_v32 = vpop.f32.mrf.mxu0 }
 0x10e   : > { %v807_v31 = vadd.f32 %v806_v30, %v758_v27  ;;  %v760_v33 = vpop.f32.mrf.mxu1 }
 0x10f   : > { %v761_v35 = vadd.f32 %v760_v33, %v711_v32  ;;  %v338_v32 = vld [vmem:[#allocation2 + $0x78] sm:$0xff] }
 0x110   : > { %v842_v34 = vadd.f32 %v807_v31, %v327_v29 }
 0x112   : > { %858 = vst [vmem:[#allocation2 + $0x18] sm:$0xff] %v842_v34  ;;  %v334_v34 = vld [vmem:[#allocation2 + $0x10] sm:$0xff] }
 0x113   : > { %v780_v36 = vpop.f32.mrf.mxu3 }
 0x114   : > { %v781_v5 = vadd.f32 %v780_v36, %v1653_v4 }
 0x115   : > { %v809_v39 = vpop.f32.mrf.mxu2  ;;  %v713_v40 = vpop.f32.mrf.mxu0 }
 0x116   : > { %v810_v38 = vadd.f32 %v809_v39, %v761_v35  ;;  %v762_v41 = vpop.f32.mrf.mxu1 }
 0x117   : > { %v763_v43 = vadd.f32 %v762_v41, %v713_v40 }
 0x118   : > { %v843_v42 = vadd.f32 %v810_v38, %v328_v37 }
 0x11a   : > { %859 = vst [vmem:[#allocation2 + $0x50] sm:$0xff] %v843_v42 }
 0x11b   : > { %v782_v44 = vpop.f32.mrf.mxu3 }
 0x11c   : > { %v783_v17 = vadd.f32 %v782_v44, %v1655_v12 }
 0x11d   : > { %v811_v46 = vpop.f32.mrf.mxu2  ;;  %v716_v48 = vpop.f32.mrf.mxu0 }
 0x11e   : > { %v812_v47 = vadd.f32 %v811_v46, %v763_v43  ;;  %v765_v49 = vpop.f32.mrf.mxu1  ;;  %v339_v43 = vld [vmem:[#allocation2 + $0x28] sm:$0xff] }
 0x11f   : > { %v766_v51 = vadd.f32 %v765_v49, %v716_v48 }
 0x120   : > { %v844_v50 = vadd.f32 %v812_v47, %v329_v45  ;;  %v335_v45 = vld [vmem:[#allocation2 + $0x38] sm:$0xff] }
 0x122   : > { %860 = vst [vmem:[#allocation2 + $0x68] sm:$0xff] %v844_v50 }
 0x123   : > { %v785_v52 = vpop.f32.mrf.mxu3 }
 0x124   : > { %v786_v31 = vadd.f32 %v785_v52, %v1657_v20 }
 0x125   : > { %v814_v54 = vpop.f32.mrf.mxu2  ;;  %v718_v57 = vpop.f32.mrf.mxu0 }
 0x126   : > { %v815_v55 = vadd.f32 %v814_v54, %v766_v51  ;;  %v767_v56 = vpop.f32.mrf.mxu1 }
 0x127   : > { %v768_v59 = vadd.f32 %v767_v56, %v718_v57 }
 0x128   : > { %v845_v58 = vadd.f32 %v815_v55, %v330_v53 }
 0x12a   : > { %861 = vst [vmem:[#allocation2 + $0x8] sm:$0xff] %v845_v58 }
 0x12b   : > { %v787_v60 = vpop.f32.mrf.mxu3 }
 0x12c   : > { %v788_v41 = vadd.f32 %v787_v60, %v1659_v28 }
 0x12d   : > { %v816_v62 = vpop.f32.mrf.mxu2  ;;  %v721_v0 = vpop.f32.mrf.mxu0 }
 0x12e   : > { %v817_v63 = vadd.f32 %v816_v62, %v768_v59  ;;  %v770_v1 = vpop.f32.mrf.mxu1 }
 0x12f   : > { %v771_v3 = vadd.f32 %v770_v1, %v721_v0 }
 0x130   : > { %v846_v2 = vadd.f32 %v817_v63, %v331_v61 }
 0x132   : > { %862 = vst [vmem:[#allocation2 + $0x48] sm:$0xff] %v846_v2 }
 0x133   : > { %v829_v7 = vpop.f32.mrf.mxu3 }
 0x134   : > { %v830_v10 = vadd.f32 %v829_v7, %v781_v5 }
 0x135   : > { %v819_v9 = vpop.f32.mrf.mxu2  ;;  %v723_v13 = vpop.f32.mrf.mxu0 }
 0x136   : > { %v820_v11 = vadd.f32 %v819_v9, %v771_v3  ;;  %v851_v14 = vadd.f32 %v830_v10, %v336_v6  ;;  %v772_v15 = vpop.f32.mrf.mxu1 }
 0x137   : > { %v773_v18 = vadd.f32 %v772_v15, %v723_v13 }
 0x138   : > { %v847_v16 = vadd.f32 %v820_v11, %v332_v8  ;;  %867 = vst [vmem:[#allocation2 + $0x60] sm:$0xff] %v851_v14 }
 0x13a   : > { %863 = vst [vmem:[#allocation2 + $0x40] sm:$0xff] %v847_v16 }
 0x13b   : > { %v831_v21 = vpop.f32.mrf.mxu3 }
 0x13c   : > { %v832_v4 = vadd.f32 %v831_v21, %v783_v17 }
 0x13d   : > { %v821_v23 = vpop.f32.mrf.mxu2  ;;  %v726_v26 = vpop.f32.mrf.mxu0 }
 0x13e   : > { %v822_v24 = vadd.f32 %v821_v23, %v773_v18  ;;  %v852_v25 = vadd.f32 %v832_v4, %v337_v19  ;;  %v775_v27 = vpop.f32.mrf.mxu1 }
 0x13f   : > { %v776_v30 = vadd.f32 %v775_v27, %v726_v26 }
 0x140   : > { %v848_v29 = vadd.f32 %v822_v24, %v333_v22  ;;  %868 = vst [vmem:[#allocation2 + $0x70] sm:$0xff] %v852_v25 }
 0x142   : > { %864 = vst [vmem:[#allocation2 + $0x20] sm:$0xff] %v848_v29 }
 0x143   : > { %v834_v33 = vpop.f32.mrf.mxu3 }
 0x144   : > { %v835_v35 = vadd.f32 %v834_v33, %v786_v31 }
 0x145   : > { %v824_v12 = vpop.f32.mrf.mxu2  ;;  %v728_v38 = vpop.f32.mrf.mxu0 }
 0x146   : > { %v825_v36 = vadd.f32 %v824_v12, %v776_v30  ;;  %v853_v37 = vadd.f32 %v835_v35, %v338_v32  ;;  %v777_v40 = vpop.f32.mrf.mxu1 }
 0x147   : > { %v778_v42 = vadd.f32 %v777_v40, %v728_v38 }
 0x148   : > { %v849_v39 = vadd.f32 %v825_v36, %v334_v34  ;;  %869 = vst [vmem:[#allocation2 + $0x78] sm:$0xff] %v853_v37 }
 0x14a   : > { %865 = vst [vmem:[#allocation2 + $0x10] sm:$0xff] %v849_v39 }
 0x14b   : > { %v836_v44 = vpop.f32.mrf.mxu3 }
 0x14c   : > { %v837_v20 = vadd.f32 %v836_v44, %v788_v41 }
 0x14d   : > { %v826_v46 = vpop.f32.mrf.mxu2 }
 0x14e   : > { %v827_v47 = vadd.f32 %v826_v46, %v778_v42  ;;  %v854_v48 = vadd.f32 %v837_v20, %v339_v43  ;;  %874 = sbr.rel (%p1241_p11) target bundleno = 356 (0x164), region = 62 }
 0x150   : > { %v850_v49 = vadd.f32 %v827_v47, %v335_v45  ;;  %870 = vst [vmem:[#allocation2 + $0x28] sm:$0xff] %v854_v48 }
 0x152   : > { %866 = vst [vmem:[#allocation2 + $0x38] sm:$0xff] %v850_v49 }
 0x153   : > { %v875_v50 = vld [vmem:[#allocation2 + $0x30] sm:$0xff]  ;;  %v876_v51 = vld [vmem:[#allocation2] sm:$0xff]  ;;  %v877_v52 = vld [vmem:[#allocation2 + $0x58] sm:$0xff] }
 0x154   : > { %891 = vst [vmem:[%s1731_s2] sm:$0xff] %v875_v50  ;;  %v878_v28 = vld [vmem:[#allocation2 + $0x18] sm:$0xff]  ;;  %v879_v53 = vld [vmem:[#allocation2 + $0x50] sm:$0xff]  ;;  %v880_v54 = vld [vmem:[#allocation2 + $0x68] sm:$0xff] }
 0x155   : > { %892 = vst [vmem:[%s1731_s2 + $0x8] sm:$0xff] %v876_v51  ;;  %v881_v55 = vld [vmem:[#allocation2 + $0x8] sm:$0xff]  ;;  %v883_v56 = vld [vmem:[#allocation2 + $0x40] sm:$0xff]  ;;  %v885_v59 = vld [vmem:[#allocation2 + $0x10] sm:$0xff] }
 0x156   : > { %893 = vst [vmem:[%s1731_s2 + $0x10] sm:$0xff] %v877_v52  ;;  %v882_v57 = vld [vmem:[#allocation2 + $0x48] sm:$0xff]  ;;  %v884_v58 = vld [vmem:[#allocation2 + $0x20] sm:$0xff]  ;;  %v888_v62 = vld [vmem:[#allocation2 + $0x70] sm:$0xff] }
 0x157   : > { %894 = vst [vmem:[%s1731_s2 + $0x18] sm:$0xff] %v878_v28  ;;  %v887_v61 = vld [vmem:[#allocation2 + $0x60] sm:$0xff]  ;;  %v889_v63 = vld [vmem:[#allocation2 + $0x78] sm:$0xff]  ;;  %v890_v0 = vld [vmem:[#allocation2 + $0x28] sm:$0xff] }
 0x158   : > { %895 = vst [vmem:[%s1731_s2 + $0x20] sm:$0xff] %v879_v53 }
 0x159   : > { %896 = vst [vmem:[%s1731_s2 + $0x28] sm:$0xff] %v880_v54  ;;  %v886_v60 = vld [vmem:[#allocation2 + $0x38] sm:$0xff] }
 0x15a   : > { %897 = vst [vmem:[%s1731_s2 + $0x30] sm:$0xff] %v881_v55 }
 0x15b   : > { %898 = vst [vmem:[%s1731_s2 + $0x38] sm:$0xff] %v882_v57 }
 0x15c   : > { %899 = vst [vmem:[%s1731_s2 + $0x40] sm:$0xff] %v883_v56 }
 0x15d   : > { %900 = vst [vmem:[%s1731_s2 + $0x48] sm:$0xff] %v884_v58 }
 0x15e   : > { %901 = vst [vmem:[%s1731_s2 + $0x50] sm:$0xff] %v885_v59 }
 0x15f   : > { %902 = vst [vmem:[%s1731_s2 + $0x58] sm:$0xff] %v886_v60 }
 0x160   : > { %903 = vst [vmem:[%s1731_s2 + $0x60] sm:$0xff] %v887_v61 }
 0x161   : > { %904 = vst [vmem:[%s1731_s2 + $0x68] sm:$0xff] %v888_v62 }
 0x162   : > { %905 = vst [vmem:[%s1731_s2 + $0x70] sm:$0xff] %v889_v63 }
 0x163   : > { %906 = vst [vmem:[%s1731_s2 + $0x78] sm:$0xff] %v890_v0 }
 0x164 PF: > { %s12_s13 = sadd.s32 1, %s1400_s13   ;;  %s1732_s9 = smov %s1388_s10 }
 0x165   : > { %p9_p12 = scmp.ge.s32.totalorder %s12_s13, 5   ;;  %s1733_s10 = smov %s1453_s17 }
 0x166   : > { %s1734_s11 = smov %s1396_s12  ;;  %s1735_s12 = smov %s1737_s14 }
 0x167   :  { %11 = sbr.rel (!%p9_p12) target bundleno = 3 (0x3), region = 106 }

// kernel: resnet_block_forward.12
= control target key start
LH: loop header
LB: loop body
LE: loop exit
PB: predicated region body
PF: predicated region fallthrough
CT: control target
= control target key end

     0   :  { %s510_s1 = inlined_call_operand.vmem [shape: bf16[128,128], index: 1, kind: input, shape index: {}]   ;;  %s511_s0 = inlined_call_operand.vmem [shape: bf16[128,128], index: 0, kind: input, shape index: {}]   ;;  %s512_s2 = inlined_call_operand.vmem [shape: f32[128,128], index: 2, kind: output, shape index: {}]  }
   0x1   :  { %v374_v0 = vld [vmem:[%s510_s1 + $0x38] sm:$0xff]  ;;  %v373_v1 = vld [vmem:[%s510_s1 + $0x30] sm:$0xff]  ;;  %v372_v2 = vld [vmem:[%s510_s1 + $0x28] sm:$0xff] }
   0x2   :  { %175 = vmatpush.bf16.msra.mxu0 %v374_v0  ;;  %375 = vmatpush.bf16.msra.mxu1 %v374_v0  ;;  %v371_v3 = vld [vmem:[%s510_s1 + $0x20] sm:$0xff]  ;;  %v370_v4 = vld [vmem:[%s510_s1 + $0x18] sm:$0xff]  ;;  %v369_v5 = vld [vmem:[%s510_s1 + $0x10] sm:$0xff] }
   0x3   :  { %376 = vmatpush.bf16.msra.mxu2 %v374_v0  ;;  %377 = vmatpush.bf16.msra.mxu3 %v374_v0  ;;  %v368_v6 = vld [vmem:[%s510_s1 + $0x8] sm:$0xff]  ;;  %v367_v7 = vld [vmem:[%s510_s1] sm:$0xff]  ;;  %v361_v9 = vld [vmem:[%s511_s0 + $0x10] sm:$0xff] }
   0x4   :  { %v359_v8 = vld [vmem:[%s511_s0] sm:$0xff]  ;;  %v365_v11 = vld [vmem:[%s511_s0 + $0x30] sm:$0xff]  ;;  %v360_v12 = vld [vmem:[%s511_s0 + $0x8] sm:$0xff] }
   0x5   :  { %v363_v10 = vld [vmem:[%s511_s0 + $0x20] sm:$0xff]  ;;  %v362_v13 = vld [vmem:[%s511_s0 + $0x18] sm:$0xff]  ;;  %v364_v14 = vld [vmem:[%s511_s0 + $0x28] sm:$0xff] }
   0x6   :  { %176 = vmatpush.bf16.msra.mxu0 %v373_v1  ;;  %378 = vmatpush.bf16.msra.mxu1 %v373_v1  ;;  %v366_v15 = vld [vmem:[%s511_s0 + $0x38] sm:$0xff] }
   0x7   :  { %379 = vmatpush.bf16.msra.mxu2 %v373_v1  ;;  %380 = vmatpush.bf16.msra.mxu3 %v373_v1 }
   0xa   :  { %177 = vmatpush.bf16.msra.mxu0 %v372_v2  ;;  %381 = vmatpush.bf16.msra.mxu1 %v372_v2 }
   0xb   :  { %382 = vmatpush.bf16.msra.mxu2 %v372_v2  ;;  %383 = vmatpush.bf16.msra.mxu3 %v372_v2 }
   0xe   :  { %178 = vmatpush.bf16.msra.mxu0 %v371_v3  ;;  %384 = vmatpush.bf16.msra.mxu1 %v371_v3 }
   0xf   :  { %385 = vmatpush.bf16.msra.mxu2 %v371_v3  ;;  %386 = vmatpush.bf16.msra.mxu3 %v371_v3 }
  0x12   :  { %179 = vmatpush.bf16.msra.mxu0 %v370_v4  ;;  %387 = vmatpush.bf16.msra.mxu1 %v370_v4 }
  0x13   :  { %388 = vmatpush.bf16.msra.mxu2 %v370_v4  ;;  %389 = vmatpush.bf16.msra.mxu3 %v370_v4 }
  0x16   :  { %180 = vmatpush.bf16.msra.mxu0 %v369_v5  ;;  %390 = vmatpush.bf16.msra.mxu1 %v369_v5 }
  0x17   :  { %391 = vmatpush.bf16.msra.mxu2 %v369_v5  ;;  %392 = vmatpush.bf16.msra.mxu3 %v369_v5 }
  0x1a   :  { %181 = vmatpush.bf16.msra.mxu0 %v368_v6  ;;  %393 = vmatpush.bf16.msra.mxu1 %v368_v6 }
  0x1b   :  { %394 = vmatpush.bf16.msra.mxu2 %v368_v6  ;;  %395 = vmatpush.bf16.msra.mxu3 %v368_v6 }
  0x1e   :  { %182 = vmatpush.bf16.msra.mxu0 %v367_v7  ;;  %396 = vmatpush.bf16.msra.mxu1 %v367_v7 }
  0x1f   :  { %397 = vmatpush.bf16.msra.mxu2 %v367_v7  ;;  %398 = vmatpush.bf16.msra.mxu3 %v367_v7 }
  0x21   :  { %183 = vmatmul.bf16.vlgmr.msra.gmra.mxu0 %v359_v8  ;;  %193 = vmatmul.bf16.vlgmr.msra.gmra.mxu1 %v361_v9 }
  0x22   :  { %203 = vmatmul.bf16.vlgmr.msra.gmra.mxu2 %v363_v10  ;;  %213 = vmatmul.bf16.vlgmr.msra.gmra.mxu3 %v365_v11 }
  0x31   :  { %188 = vmatmul.bf16.gmra.mxu0 %v360_v12  ;;  %198 = vmatmul.bf16.gmra.mxu1 %v362_v13 }
  0x32   :  { %208 = vmatmul.bf16.gmra.mxu2 %v364_v14  ;;  %218 = vmatmul.bf16.gmra.mxu3 %v366_v15 }
  0x9e   :  { %v184_v16 = vpop.f32.mrf.mxu0  ;;  %v194_v17 = vpop.f32.mrf.mxu1 }
  0x9f   :  { %275 = vst [vmem:[%s512_s2] sm:$0xff] %v184_v16 }
  0xa0   :  { %279 = vst [vmem:[%s512_s2 + $0x20] sm:$0xff] %v194_v17 }
  0xa5   :  { %v204_v18 = vpop.f32.mrf.mxu2  ;;  %v214_v19 = vpop.f32.mrf.mxu3 }
  0xa6   :  { %283 = vst [vmem:[%s512_s2 + $0x40] sm:$0xff] %v204_v18  ;;  %v186_v20 = vpop.f32.mrf.mxu0  ;;  %v196_v21 = vpop.f32.mrf.mxu1 }
  0xa7   :  { %287 = vst [vmem:[%s512_s2 + $0x60] sm:$0xff] %v214_v19 }
  0xa8   :  { %276 = vst [vmem:[%s512_s2 + $0x8] sm:$0xff] %v186_v20 }
  0xa9   :  { %280 = vst [vmem:[%s512_s2 + $0x28] sm:$0xff] %v196_v21 }
  0xad   :  { %v206_v22 = vpop.f32.mrf.mxu2  ;;  %v216_v23 = vpop.f32.mrf.mxu3 }
  0xae   :  { %284 = vst [vmem:[%s512_s2 + $0x48] sm:$0xff] %v206_v22  ;;  %v189_v24 = vpop.f32.mrf.mxu0  ;;  %v199_v25 = vpop.f32.mrf.mxu1 }
  0xaf   :  { %288 = vst [vmem:[%s512_s2 + $0x68] sm:$0xff] %v216_v23 }
  0xb0   :  { %277 = vst [vmem:[%s512_s2 + $0x10] sm:$0xff] %v189_v24 }
  0xb1   :  { %281 = vst [vmem:[%s512_s2 + $0x30] sm:$0xff] %v199_v25 }
  0xb5   :  { %v209_v26 = vpop.f32.mrf.mxu2  ;;  %v219_v27 = vpop.f32.mrf.mxu3 }
  0xb6   :  { %285 = vst [vmem:[%s512_s2 + $0x50] sm:$0xff] %v209_v26  ;;  %v191_v28 = vpop.f32.mrf.mxu0  ;;  %v201_v29 = vpop.f32.mrf.mxu1 }
  0xb7   :  { %289 = vst [vmem:[%s512_s2 + $0x70] sm:$0xff] %v219_v27 }
  0xb8   :  { %278 = vst [vmem:[%s512_s2 + $0x18] sm:$0xff] %v191_v28 }
  0xb9   :  { %282 = vst [vmem:[%s512_s2 + $0x38] sm:$0xff] %v201_v29 }
  0xbd   :  { %v211_v30 = vpop.f32.mrf.mxu2  ;;  %v221_v31 = vpop.f32.mrf.mxu3 }
  0xbe   :  { %286 = vst [vmem:[%s512_s2 + $0x58] sm:$0xff] %v211_v30 }
  0xbf   :  { %290 = vst [vmem:[%s512_s2 + $0x78] sm:$0xff] %v221_v31 }

// kernel: resnet_block_forward.13
= control target key start
LH: loop header
LB: loop body
LE: loop exit
PB: predicated region body
PF: predicated region fallthrough
CT: control target
= control target key end

     0   :  { %s1534_s12 = smov 0   ;;  %s1536_s13 = smov 0   ;;  %s1893_s0 = inlined_call_operand.vmem [shape: bf16[128,1152], index: 0, kind: input, shape index: {}]   ;;  %s1894_s1 = inlined_call_operand.vmem [shape: bf16[1152,128], index: 1, kind: input, shape index: {}]   ;;  %s1895_s2 = inlined_call_operand.vmem [shape: f32[128,128], index: 2, kind: input, shape index: {}, may-alias: {2,3}]   ;;  %s1896_s3 = inlined_call_operand.vmem [shape: f32[128,128], index: 3, kind: output, shape index: {}, may-alias: {2,3}]  }
   0x1   :  { %s1538_s14 = smov 0   ;;  %s1540_s15 = smov 0  }
   0x2   :  { %s1542_s16 = smov 0  }
   0x3 LB: > { %s25_s17 = sadd.s32 1, %s1507_s15  ;;  %p48_p1 = scmp.ne.s32.totalorder %s1499_s13, %s1495_s12  ;;  %s1511_s16 = sphi %s1542_s16, %s13_s16   ;;  %s1507_s15 = sphi %s1540_s15, %s1900_s15   ;;  %s1503_s14 = sphi %s1538_s14, %s1899_s14   ;;  %s1499_s13 = sphi %s1536_s13, %s1898_s13   ;;  %s1495_s12 = sphi %s1534_s12, %s1897_s12  }
   0x4   : > { %p26_p0 = scmp.ge.s32.totalorder %s25_s17, 3  ;;  %p49_p2 = scmp.eq.s32.totalorder %s1511_s16, 0 }
   0x5   : > { %s41_s19 = sadd.s32 1, %s1499_s13  ;;  %p1123_p5 = scmp.ge.s32.totalorder %s1511_s16, 3 }
   0x6   : > { %s1902_s17 = smov (%p26_p0, %s25_s17), 0  ;;  %p50_p3 = por %p49_p2, %p48_p1 }
   0x7   : > { %s37_s18 = ssub.s32 %s1507_s15, %s1902_s17  ;;  %170 = sbr.rel (%p1123_p5) target bundleno = 49 (0x31), region = 20 }
   0x8   : > { %p39_p4 = scmp.eq.s32.totalorder %s37_s18, 0 }
   0xa   : > { %s1569_s20 = scalar_select %p39_p4, %s1499_s13, %s41_s19  }
   0xc   : > { %173 = sbr.rel (!%p50_p3) target bundleno = 49 (0x31), region = 24  ;;  %s175_s21 = sand.u32 (%p50_p3), 1, %s1499_s13  }
   0xd   : > { %s1357_s22 = smul.u32 (%p50_p3), 12, %s1507_s15 }
   0xe   : > { %s1430_s23 = smul.u32 (%p50_p3), 192, %s175_s21 }
   0xf   : > { %s1577_s26 = scalar_lea.vmem (%p50_p3), %s1893_s0, %s1357_s22 }
  0x10   : > { %v198_v0 = vld [vmem:[%s1577_s26] sm:$0xff] (%p50_p3)  ;;  %v202_v2 = vld [vmem:[%s1577_s26 + $0x48] sm:$0xff] (%p50_p3)  ;;  %s1582_s27 = scalar_lea.vmem (%p50_p3), [#allocation3], %s1430_s23  ;;  %v206_v4 = vld [vmem:[%s1577_s26 + $0x90] sm:$0xff] (%p50_p3) }
  0x11   : > { %v200_v1 = vld [vmem:[%s1577_s26 + $0x24] sm:$0xff]  ;;  %199 = vst [vmem:[%s1582_s27] sm:$0xff] %v198_v0  ;;  %v204_v3 = vld [vmem:[%s1577_s26 + $0x6c] sm:$0xff]  ;;  %v208_v5 = vld [vmem:[%s1577_s26 + $0xb4] sm:$0xff] }
  0x12   : > { %201 = vst [vmem:[%s1582_s27 + $0xc] sm:$0xff] %v200_v1  ;;  %v210_v6 = vld [vmem:[%s1577_s26 + $0xd8] sm:$0xff]  ;;  %v214_v8 = vld [vmem:[%s1577_s26 + $0x120] sm:$0xff]  ;;  %v218_v10 = vld [vmem:[%s1577_s26 + $0x168] sm:$0xff] }
  0x13   : > { %203 = vst [vmem:[%s1582_s27 + $0x18] sm:$0xff] %v202_v2  ;;  %v212_v7 = vld [vmem:[%s1577_s26 + $0xfc] sm:$0xff]  ;;  %v216_v9 = vld [vmem:[%s1577_s26 + $0x144] sm:$0xff]  ;;  %v220_v11 = vld [vmem:[%s1577_s26 + $0x18c] sm:$0xff] }
  0x14   : > { %205 = vst [vmem:[%s1582_s27 + $0x24] sm:$0xff] %v204_v3  ;;  %v222_v12 = vld [vmem:[%s1577_s26 + $0x1b0] sm:$0xff]  ;;  %v226_v14 = vld [vmem:[%s1577_s26 + $0x1f8] sm:$0xff]  ;;  %v1125_v16 = vld [vmem:[%s1577_s26 + $0x8] sm:$0xf] }
  0x15   : > { %207 = vst [vmem:[%s1582_s27 + $0x30] sm:$0xff] %v206_v4  ;;  %v224_v13 = vld [vmem:[%s1577_s26 + $0x1d4] sm:$0xff]  ;;  %v228_v15 = vld [vmem:[%s1577_s26 + $0x21c] sm:$0xff]  ;;  %v1127_v17 = vld [vmem:[%s1577_s26 + $0x2c] sm:$0xf] }
  0x16   : > { %209 = vst [vmem:[%s1582_s27 + $0x3c] sm:$0xff] %v208_v5  ;;  %v1129_v18 = vld [vmem:[%s1577_s26 + $0x50] sm:$0xf]  ;;  %v1131_v19 = vld [vmem:[%s1577_s26 + $0x74] sm:$0xf] }
  0x17   : > { %211 = vst [vmem:[%s1582_s27 + $0x48] sm:$0xff] %v210_v6  ;;  %v1133_v20 = vld [vmem:[%s1577_s26 + $0x98] sm:$0xf]  ;;  %v1135_v21 = vld [vmem:[%s1577_s26 + $0xbc] sm:$0xf] }
  0x18   : > { %213 = vst [vmem:[%s1582_s27 + $0x54] sm:$0xff] %v212_v7  ;;  %v1137_v22 = vld [vmem:[%s1577_s26 + $0xe0] sm:$0xf]  ;;  %v1139_v23 = vld [vmem:[%s1577_s26 + $0x104] sm:$0xf] }
  0x19   : > { %215 = vst [vmem:[%s1582_s27 + $0x60] sm:$0xff] %v214_v8  ;;  %v1141_v24 = vld [vmem:[%s1577_s26 + $0x128] sm:$0xf]  ;;  %v1143_v25 = vld [vmem:[%s1577_s26 + $0x14c] sm:$0xf] }
  0x1a   : > { %217 = vst [vmem:[%s1582_s27 + $0x6c] sm:$0xff] %v216_v9  ;;  %v1145_v26 = vld [vmem:[%s1577_s26 + $0x170] sm:$0xf]  ;;  %v1147_v27 = vld [vmem:[%s1577_s26 + $0x194] sm:$0xf] }
  0x1b   : > { %219 = vst [vmem:[%s1582_s27 + $0x78] sm:$0xff] %v218_v10  ;;  %v1149_v28 = vld [vmem:[%s1577_s26 + $0x1b8] sm:$0xf]  ;;  %v1151_v29 = vld [vmem:[%s1577_s26 + $0x1dc] sm:$0xf] }
  0x1c   : > { %221 = vst [vmem:[%s1582_s27 + $0x84] sm:$0xff] %v220_v11  ;;  %v1153_v30 = vld [vmem:[%s1577_s26 + $0x200] sm:$0xf]  ;;  %v1155_v31 = vld [vmem:[%s1577_s26 + $0x224] sm:$0xf] }
  0x1d   : > { %223 = vst [vmem:[%s1582_s27 + $0x90] sm:$0xff] %v222_v12 }
  0x1e   : > { %225 = vst [vmem:[%s1582_s27 + $0x9c] sm:$0xff] %v224_v13 }
  0x1f   : > { %227 = vst [vmem:[%s1582_s27 + $0xa8] sm:$0xff] %v226_v14 }
  0x20   : > { %229 = vst [vmem:[%s1582_s27 + $0xb4] sm:$0xff] %v228_v15 }
  0x21   : > { %1126 = vst [vmem:[%s1582_s27 + $0x8] sm:$0xf] %v1125_v16 }
  0x22   : > { %1128 = vst [vmem:[%s1582_s27 + $0x14] sm:$0xf] %v1127_v17 }
  0x23   : > { %1130 = vst [vmem:[%s1582_s27 + $0x20] sm:$0xf] %v1129_v18 }
  0x24   : > { %1132 = vst [vmem:[%s1582_s27 + $0x2c] sm:$0xf] %v1131_v19 }
  0x25   : > { %1134 = vst [vmem:[%s1582_s27 + $0x38] sm:$0xf] %v1133_v20 }
  0x26   : > { %1136 = vst [vmem:[%s1582_s27 + $0x44] sm:$0xf] %v1135_v21 }
  0x27   : > { %1138 = vst [vmem:[%s1582_s27 + $0x50] sm:$0xf] %v1137_v22 }
  0x28   : > { %1140 = vst [vmem:[%s1582_s27 + $0x5c] sm:$0xf] %v1139_v23 }
  0x29   : > { %1142 = vst [vmem:[%s1582_s27 + $0x68] sm:$0xf] %v1141_v24 }
  0x2a   : > { %1144 = vst [vmem:[%s1582_s27 + $0x74] sm:$0xf] %v1143_v25 }
  0x2b   : > { %1146 = vst [vmem:[%s1582_s27 + $0x80] sm:$0xf] %v1145_v26 }
  0x2c   : > { %1148 = vst [vmem:[%s1582_s27 + $0x8c] sm:$0xf] %v1147_v27 }
  0x2d   : > { %1150 = vst [vmem:[%s1582_s27 + $0x98] sm:$0xf] %v1149_v28 }
  0x2e   : > { %1152 = vst [vmem:[%s1582_s27 + $0xa4] sm:$0xf] %v1151_v29 }
  0x2f   : > { %1154 = vst [vmem:[%s1582_s27 + $0xb0] sm:$0xf] %v1153_v30 }
  0x30   : > { %1156 = vst [vmem:[%s1582_s27 + $0xbc] sm:$0xf] %v1155_v31 }
  0x31 PF: > { %p1157_p6 = scmp.ge.s32.totalorder %s1511_s16, 1  ;;  %p286_p7 = scmp.lt.s32.totalorder %s1511_s16, 4 }
  0x33   : > { %p287_p8 = pnand %p1157_p6, %p286_p7 }
  0x34   : > { %s293_s28 = sand.u32 (!%p287_p8), 1, %s1495_s12   ;;  %s337_s29 = smul.u32 (!%p287_p8), 48, %s1503_s14 }
  0x35   : > { %290 = sbr.rel (%p287_p8) target bundleno = 422 (0x1a6), region = 54  ;;  %p1159_p10 = scmp.ne.s32.totalorder (!%p287_p8), %s1503_s14, 0 }
  0x36   : > { %s1431_s30 = smul.u32 (!%p287_p8), 192, %s293_s28  ;;  %p338_p9 = scmp.lt.s32.totalorder (!%p287_p8), %s337_s29, 143 }
  0x38   : > { %s1654_s8 = scalar_lea.vmem (!%p287_p8), [#allocation3], %s1431_s30 }
  0x3a   : > { %s1904_s29 = smov (!%p338_p9, %s337_s29), 143  ;;  %367 = sbr.rel (%p1159_p10) target bundleno = 80 (0x50), region = 62 }
  0x3b   : > { %s1158_s4 = sshll.u32 %s1904_s29, 2 }
  0x3c   : > { %s1652_s7 = scalar_lea.vmem %s1894_s1, %s1158_s4 }
  0x3f   : > { %v1513_v32 = vmov 0.0  }
  0x40   : > { %368 = vst [vmem:[#allocation2 + $0x30] sm:$0xff] %v1513_v32 }
  0x41   : > { %369 = vst [vmem:[#allocation2] sm:$0xff] %v1513_v32 }
  0x42   : > { %370 = vst [vmem:[#allocation2 + $0x58] sm:$0xff] %v1513_v32 }
  0x43   : > { %371 = vst [vmem:[#allocation2 + $0x18] sm:$0xff] %v1513_v32 }
  0x44   : > { %372 = vst [vmem:[#allocation2 + $0x50] sm:$0xff] %v1513_v32 }
  0x45   : > { %373 = vst [vmem:[#allocation2 + $0x68] sm:$0xff] %v1513_v32 }
  0x46   : > { %374 = vst [vmem:[#allocation2 + $0x8] sm:$0xff] %v1513_v32 }
  0x47   : > { %375 = vst [vmem:[#allocation2 + $0x48] sm:$0xff] %v1513_v32 }
  0x48   : > { %376 = vst [vmem:[#allocation2 + $0x40] sm:$0xff] %v1513_v32 }
  0x49   : > { %377 = vst [vmem:[#allocation2 + $0x20] sm:$0xff] %v1513_v32 }
  0x4a   : > { %378 = vst [vmem:[#allocation2 + $0x10] sm:$0xff] %v1513_v32 }
  0x4b   : > { %379 = vst [vmem:[#allocation2 + $0x38] sm:$0xff] %v1513_v32 }
  0x4c   : > { %380 = vst [vmem:[#allocation2 + $0x60] sm:$0xff] %v1513_v32 }
  0x4d   : > { %381 = vst [vmem:[#allocation2 + $0x70] sm:$0xff] %v1513_v32 }
  0x4e   : > { %382 = vst [vmem:[#allocation2 + $0x78] sm:$0xff] %v1513_v32 }
  0x4f   : > { %383 = vst [vmem:[#allocation2 + $0x28] sm:$0xff] %v1513_v32 }
  0x50 PF: > { %v1389_v33 = vld [vmem:[%s1652_s7 + $0x38] sm:$0xff]  ;;  %v1388_v36 = vld [vmem:[%s1652_s7 + $0x30] sm:$0xff]  ;;  %v1387_v39 = vld [vmem:[%s1652_s7 + $0x28] sm:$0xff]  ;;  %p1352_p11 = scmp.ne.s32.totalorder %s1503_s14, 2 }
  0x51   : > { %v1659_v34 = vld [vmem:[%s1652_s7 + $0x78] sm:$0xff]  ;;  %752 = vmatpush.bf16.msra.mxu0 %v1389_v33  ;;  %1406 = vmatpush.bf16.msra.mxu3 %v1389_v33  ;;  %v1668_v37 = vld [vmem:[%s1652_s7 + $0x70] sm:$0xff]  ;;  %v1395_v40 = vld [vmem:[%s1652_s7 + $0x68] sm:$0xff] }
  0x52   : > { %v1662_v35 = vld [vmem:[%s1652_s7 + $0xb8] sm:$0xff]  ;;  %801 = vmatpush.bf16.msra.mxu1 %v1659_v34  ;;  %v1671_v38 = vld [vmem:[%s1652_s7 + $0xb0] sm:$0xff]  ;;  %v1678_v41 = vld [vmem:[%s1652_s7 + $0xa8] sm:$0xff] }
  0x53   : > { %850 = vmatpush.bf16.msra.mxu2 %v1662_v35  ;;  %v1386_v42 = vld [vmem:[%s1652_s7 + $0x20] sm:$0xff]  ;;  %v1385_v45 = vld [vmem:[%s1652_s7 + $0x18] sm:$0xff]  ;;  %v1384_v48 = vld [vmem:[%s1652_s7 + $0x10] sm:$0xff] }
  0x54   : > { %v1394_v43 = vld [vmem:[%s1652_s7 + $0x60] sm:$0xff]  ;;  %v1393_v46 = vld [vmem:[%s1652_s7 + $0x58] sm:$0xff]  ;;  %v1392_v49 = vld [vmem:[%s1652_s7 + $0x50] sm:$0xff] }
  0x55   : > { %753 = vmatpush.bf16.msra.mxu0 %v1388_v36  ;;  %1407 = vmatpush.bf16.msra.mxu3 %v1388_v36  ;;  %v1684_v44 = vld [vmem:[%s1652_s7 + $0xa0] sm:$0xff]  ;;  %v1690_v47 = vld [vmem:[%s1652_s7 + $0x98] sm:$0xff]  ;;  %v1696_v50 = vld [vmem:[%s1652_s7 + $0x90] sm:$0xff] }
  0x56   : > { %802 = vmatpush.bf16.msra.mxu1 %v1668_v37  ;;  %v1383_v51 = vld [vmem:[%s1652_s7 + $0x8] sm:$0xff]  ;;  %v1382_v54 = vld [vmem:[%s1652_s7] sm:$0xff]  ;;  %v1234_v59 = vld [vmem:[%s1654_s8 + $0x90] sm:$0xf] }
  0x57   : > { %851 = vmatpush.bf16.msra.mxu2 %v1671_v38  ;;  %v1391_v52 = vld [vmem:[%s1652_s7 + $0x48] sm:$0xff]  ;;  %v1390_v55 = vld [vmem:[%s1652_s7 + $0x40] sm:$0xff]  ;;  %v1377_v60 = vld [vmem:[%s1654_s8 + $0x98] sm:$0xf0] }
  0x58   : > { %v1702_v53 = vld [vmem:[%s1652_s7 + $0x88] sm:$0xff]  ;;  %v1707_v56 = vld [vmem:[%s1652_s7 + $0x80] sm:$0xff]  ;;  %v1164_v62 = vld [vmem:[%s1654_s8 + $0xc] sm:$0xf0]  ;;  %v1235_v2 = vor.u32 %v1377_v60, %v1234_v59 }
  0x59   : > { %754 = vmatpush.bf16.msra.mxu0 %v1387_v39  ;;  %1408 = vmatpush.bf16.msra.mxu3 %v1387_v39  ;;  %v1162_v57 = vld [vmem:[%s1654_s8] sm:$0xf]  ;;  %v1359_v58 = vld [vmem:[%s1654_s8 + $0x8] sm:$0xf0]  ;;  %v1358_v61 = vld [vmem:[%s1654_s8 + $0x4] sm:$0xf] }
  0x5a   : > { %803 = vmatpush.bf16.msra.mxu1 %v1395_v40  ;;  %v1170_v63 = vld [vmem:[%s1654_s8 + $0x8] sm:$0xf]  ;;  %v1360_v0 = vld [vmem:[%s1654_s8 + $0x10] sm:$0xf0]  ;;  %v1163_v1 = vor.u32 %v1359_v58, %v1162_v57  ;;  %v1167_v3 = vor.u32 %v1358_v61, %v1164_v62  ;;  %v1174_v5 = vld [vmem:[%s1654_s8 + $0x18] sm:$0xf] }
  0x5b   : > { %852 = vmatpush.bf16.msra.mxu2 %v1678_v41  ;;  %v1171_v4 = vor.u32 %v1360_v0, %v1170_v63  ;;  %v1362_v6 = vld [vmem:[%s1654_s8 + $0x20] sm:$0xf0]  ;;  %v1246_v7 = vld [vmem:[%s1654_s8 + $0xa8] sm:$0xf]  ;;  %v1380_v8 = vld [vmem:[%s1654_s8 + $0xb0] sm:$0xf0] }
  0x5c   : > { %v1361_v9 = vld [vmem:[%s1654_s8 + $0x1c] sm:$0xf]  ;;  %v1176_v10 = vld [vmem:[%s1654_s8 + $0x24] sm:$0xf0]  ;;  %v1182_v11 = vld [vmem:[%s1654_s8 + $0x20] sm:$0xf]  ;;  %v1175_v13 = vor.u32 %v1362_v6, %v1174_v5  ;;  %v1247_v14 = vor.u32 %v1380_v8, %v1246_v7 }
  0x5d   : > { %755 = vmatpush.bf16.msra.mxu0 %v1386_v42  ;;  %1409 = vmatpush.bf16.msra.mxu3 %v1386_v42  ;;  %v1363_v12 = vld [vmem:[%s1654_s8 + $0x28] sm:$0xf0]  ;;  %v1179_v15 = vor.u32 %v1361_v9, %v1176_v10  ;;  %v1186_v17 = vld [vmem:[%s1654_s8 + $0x30] sm:$0xf]  ;;  %v1365_v18 = vld [vmem:[%s1654_s8 + $0x38] sm:$0xf0] }
  0x5e   : > { %804 = vmatpush.bf16.msra.mxu1 %v1394_v43  ;;  %v1183_v16 = vor.u32 %v1363_v12, %v1182_v11  ;;  %v1364_v19 = vld [vmem:[%s1654_s8 + $0x34] sm:$0xf]  ;;  %v1236_v21 = vld [vmem:[%s1654_s8 + $0x9c] sm:$0xf0]  ;;  %v1194_v23 = vld [vmem:[%s1654_s8 + $0x38] sm:$0xf]  ;;  %v1187_v25 = vor.u32 %v1365_v18, %v1186_v17 }
  0x5f   : > { %853 = vmatpush.bf16.msra.mxu2 %v1684_v44  ;;  %v1376_v20 = vld [vmem:[%s1654_s8 + $0x94] sm:$0xf]  ;;  %v1188_v22 = vld [vmem:[%s1654_s8 + $0x3c] sm:$0xf0]  ;;  %v1366_v24 = vld [vmem:[%s1654_s8 + $0x40] sm:$0xf0] }
  0x60   : > { %v1239_v26 = vor.u32 %v1376_v20, %v1236_v21  ;;  %v1191_v27 = vor.u32 %v1364_v19, %v1188_v22  ;;  %v1195_v28 = vor.u32 %v1366_v24, %v1194_v23  ;;  %v1198_v29 = vld [vmem:[%s1654_s8 + $0x48] sm:$0xf]  ;;  %v1368_v30 = vld [vmem:[%s1654_s8 + $0x50] sm:$0xf0]  ;;  %v1367_v31 = vld [vmem:[%s1654_s8 + $0x4c] sm:$0xf] }
  0x61   : > { %756 = vmatpush.bf16.msra.mxu0 %v1385_v45  ;;  %1410 = vmatpush.bf16.msra.mxu3 %v1385_v45  ;;  %v1379_v32 = vld [vmem:[%s1654_s8 + $0xac] sm:$0xf]  ;;  %v1248_v33 = vld [vmem:[%s1654_s8 + $0xb4] sm:$0xf0]  ;;  %v1369_v36 = vld [vmem:[%s1654_s8 + $0x58] sm:$0xf0] }
  0x62   : > { %805 = vmatpush.bf16.msra.mxu1 %v1393_v46  ;;  %v1251_v39 = vor.u32 %v1379_v32, %v1248_v33  ;;  %v1371_v42 = vld [vmem:[%s1654_s8 + $0x68] sm:$0xf0]  ;;  %v1378_v45 = vld [vmem:[%s1654_s8 + $0xa0] sm:$0xf0]  ;;  %v1254_v57 = vld [vmem:[%s1654_s8 + $0xb0] sm:$0xf] }
  0x63   : > { %854 = vmatpush.bf16.msra.mxu2 %v1690_v47  ;;  %v1224_v58 = vld [vmem:[%s1654_s8 + $0x84] sm:$0xf0]  ;;  %v1230_v59 = vld [vmem:[%s1654_s8 + $0x80] sm:$0xf]  ;;  %v1375_v60 = vld [vmem:[%s1654_s8 + $0x88] sm:$0xf0] }
  0x64   : > { %v1231_v0 = vor.u32 %v1375_v60, %v1230_v59  ;;  %v384_v5 = vld [vmem:[#allocation2 + $0x30] sm:$0xff]  ;;  %v386_v21 = vld [vmem:[#allocation2 + $0x58] sm:$0xff] }
  0x65   : > { %757 = vmatpush.bf16.msra.mxu0 %v1384_v48  ;;  %1411 = vmatpush.bf16.msra.mxu3 %v1384_v48  ;;  %v1372_v48 = vld [vmem:[%s1654_s8 + $0x70] sm:$0xf0] }
  0x66   : > { %806 = vmatpush.bf16.msra.mxu1 %v1392_v49 }
  0x67   : > { %855 = vmatpush.bf16.msra.mxu2 %v1696_v50 }
  0x69   : > { %758 = vmatpush.bf16.msra.mxu0 %v1383_v51  ;;  %1412 = vmatpush.bf16.msra.mxu3 %v1383_v51 }
  0x6a   : > { %807 = vmatpush.bf16.msra.mxu1 %v1391_v52 }
  0x6b   : > { %856 = vmatpush.bf16.msra.mxu2 %v1702_v53 }
  0x6d   : > { %759 = vmatpush.bf16.msra.mxu0 %v1382_v54  ;;  %1413 = vmatpush.bf16.msra.mxu3 %v1382_v54  ;;  %v1374_v54 = vld [vmem:[%s1654_s8 + $0x80] sm:$0xf0] }
  0x6e   : > { %808 = vmatpush.bf16.msra.mxu1 %v1390_v55 }
  0x6f   : > { %857 = vmatpush.bf16.msra.mxu2 %v1707_v56 }
  0x70   : > { %760 = vmatmul.bf16.vlgmr.msra.gmra.mxu0 %v1163_v1  ;;  %790 = vmatmul.bf16.vlgmr.msra.gmra.mxu3 %v1235_v2 }
  0x71   : > { %1414 = vmatpush.bf16.msrb.mxu3 %v1659_v34  ;;  %809 = vmatmul.bf16.vlgmr.msra.gmra.mxu1 %v1167_v3  ;;  %v1200_v34 = vld [vmem:[%s1654_s8 + $0x54] sm:$0xf0] }
  0x72   : > { %858 = vmatmul.bf16.vlgmr.msra.gmra.mxu2 %v1171_v4 }
  0x75   : > { %1415 = vmatpush.bf16.msrb.mxu3 %v1668_v37  ;;  %v1199_v37 = vor.u32 %v1368_v30, %v1198_v29  ;;  %v387_v29 = vld [vmem:[#allocation2 + $0x18] sm:$0xff] }
  0x79   : > { %1416 = vmatpush.bf16.msrb.mxu3 %v1395_v40 }
  0x7d   : > { %1417 = vmatpush.bf16.msrb.mxu3 %v1394_v43  ;;  %v1370_v43 = vld [vmem:[%s1654_s8 + $0x64] sm:$0xf] }
  0x80   : > { %765 = vmatmul.bf16.gmra.mxu0 %v1175_v13  ;;  %795 = vmatmul.bf16.gmra.mxu3 %v1247_v14  ;;  %v385_v13 = vld [vmem:[#allocation2] sm:$0xff] }
  0x81   : > { %1418 = vmatpush.bf16.msrb.mxu3 %v1393_v46  ;;  %814 = vmatmul.bf16.gmra.mxu1 %v1179_v15  ;;  %v1212_v46 = vld [vmem:[%s1654_s8 + $0x6c] sm:$0xf0] }
  0x82   : > { %863 = vmatmul.bf16.gmra.mxu2 %v1183_v16  ;;  %v1215_v51 = vor.u32 %v1370_v43, %v1212_v46 }
  0x85   : > { %1419 = vmatpush.bf16.msrb.mxu3 %v1392_v49 }
  0x89   : > { %1420 = vmatpush.bf16.msrb.mxu3 %v1391_v52 }
  0x8d   : > { %1421 = vmatpush.bf16.msrb.mxu3 %v1390_v55  ;;  %v1373_v55 = vld [vmem:[%s1654_s8 + $0x7c] sm:$0xf] }
  0x8e   : > { %v1227_v63 = vor.u32 %v1373_v55, %v1224_v58 }
  0x90   : > { %770 = vmatmul.bf16.gmra.mxu0 %v1187_v25  ;;  %839 = vmatmul.bf16.vlgmr.msrb.gmra.mxu3 %v1239_v26 }
  0x91   : > { %1422 = vmatpush.bf16.msra.mxu3 %v1662_v35  ;;  %819 = vmatmul.bf16.gmra.mxu1 %v1191_v27  ;;  %v1206_v35 = vld [vmem:[%s1654_s8 + $0x50] sm:$0xf] }
  0x92   : > { %868 = vmatmul.bf16.gmra.mxu2 %v1195_v28  ;;  %v1207_v40 = vor.u32 %v1369_v36, %v1206_v35 }
  0x95   : > { %1423 = vmatpush.bf16.msra.mxu3 %v1671_v38  ;;  %v1203_v38 = vor.u32 %v1367_v31, %v1200_v34 }
  0x99   : > { %1424 = vmatpush.bf16.msra.mxu3 %v1678_v41  ;;  %v1210_v41 = vld [vmem:[%s1654_s8 + $0x60] sm:$0xf] }
  0x9a   : > { %v1211_v49 = vor.u32 %v1371_v42, %v1210_v41 }
  0x9d   : > { %1425 = vmatpush.bf16.msra.mxu3 %v1684_v44  ;;  %v1242_v44 = vld [vmem:[%s1654_s8 + $0x98] sm:$0xf] }
  0xa0   : > { %775 = vmatmul.bf16.gmra.mxu0 %v1199_v37  ;;  %844 = vmatmul.bf16.gmra.mxu3 %v1251_v39  ;;  %v388_v37 = vld [vmem:[#allocation2 + $0x50] sm:$0xff] }
  0xa1   : > { %1426 = vmatpush.bf16.msra.mxu3 %v1690_v47  ;;  %824 = vmatmul.bf16.gmra.mxu1 %v1203_v38  ;;  %v1218_v47 = vld [vmem:[%s1654_s8 + $0x68] sm:$0xf] }
  0xa2   : > { %873 = vmatmul.bf16.gmra.mxu2 %v1207_v40  ;;  %v1219_v52 = vor.u32 %v1372_v48, %v1218_v47 }
  0xa5   : > { %1427 = vmatpush.bf16.msra.mxu3 %v1696_v50  ;;  %v1243_v50 = vor.u32 %v1378_v45, %v1242_v44  ;;  %v389_v45 = vld [vmem:[#allocation2 + $0x68] sm:$0xff] }
  0xa9   : > { %1428 = vmatpush.bf16.msra.mxu3 %v1702_v53  ;;  %v1222_v53 = vld [vmem:[%s1654_s8 + $0x78] sm:$0xf] }
  0xaa   : > { %v1223_v61 = vor.u32 %v1374_v54, %v1222_v53  ;;  %v390_v53 = vld [vmem:[#allocation2 + $0x8] sm:$0xff] }
  0xad   : > { %1429 = vmatpush.bf16.msra.mxu3 %v1707_v56  ;;  %v1381_v56 = vld [vmem:[%s1654_s8 + $0xb8] sm:$0xf0] }
  0xae   : > { %v1255_v62 = vor.u32 %v1381_v56, %v1254_v57 }
  0xb0   : > { %780 = vmatmul.bf16.gmra.mxu0 %v1211_v49  ;;  %888 = vmatmul.bf16.vlgmr.msra.gmra.mxu3 %v1243_v50 }
  0xb1   : > { %829 = vmatmul.bf16.gmra.mxu1 %v1215_v51 }
  0xb2   : > { %878 = vmatmul.bf16.gmra.mxu2 %v1219_v52 }
  0xc0   : > { %785 = vmatmul.bf16.gmra.mxu0 %v1223_v61  ;;  %893 = vmatmul.bf16.gmra.mxu3 %v1255_v62  ;;  %v391_v61 = vld [vmem:[#allocation2 + $0x48] sm:$0xff] }
  0xc1   : > { %834 = vmatmul.bf16.gmra.mxu1 %v1227_v63 }
  0xc2   : > { %883 = vmatmul.bf16.gmra.mxu2 %v1231_v0 }
  0xed   : > { %v761_v1 = vpop.f32.mrf.mxu0 }
  0xee   : > { %v810_v2 = vpop.f32.mrf.mxu1 }
  0xef   : > { %v811_v3 = vadd.f32 %v810_v2, %v761_v1 }
  0xf3   : > { %v1769_v4 = vpop.f32.mrf.mxu3 }
  0xf5   : > { %v859_v6 = vpop.f32.mrf.mxu2  ;;  %v763_v8 = vpop.f32.mrf.mxu0 }
  0xf6   : > { %v860_v7 = vadd.f32 %v859_v6, %v811_v3  ;;  %v812_v9 = vpop.f32.mrf.mxu1  ;;  %v396_v6 = vld [vmem:[#allocation2 + $0x60] sm:$0xff] }
  0xf7   : > { %v813_v11 = vadd.f32 %v812_v9, %v763_v8  ;;  %v392_v8 = vld [vmem:[#allocation2 + $0x40] sm:$0xff] }
  0xf8   : > { %v899_v10 = vadd.f32 %v860_v7, %v384_v5 }
  0xfa   : > { %915 = vst [vmem:[#allocation2 + $0x30] sm:$0xff] %v899_v10 }
  0xfb   : > { %v1771_v12 = vpop.f32.mrf.mxu3 }
  0xfd   : > { %v861_v14 = vpop.f32.mrf.mxu2  ;;  %v766_v16 = vpop.f32.mrf.mxu0 }
  0xfe   : > { %v862_v15 = vadd.f32 %v861_v14, %v813_v11  ;;  %v815_v17 = vpop.f32.mrf.mxu1 }
  0xff   : > { %v816_v19 = vadd.f32 %v815_v17, %v766_v16 }
 0x100   : > { %v900_v18 = vadd.f32 %v862_v15, %v385_v13 }
 0x102   : > { %916 = vst [vmem:[#allocation2] sm:$0xff] %v900_v18 }
 0x103   : > { %v1773_v20 = vpop.f32.mrf.mxu3 }
 0x105   : > { %v864_v22 = vpop.f32.mrf.mxu2  ;;  %v768_v24 = vpop.f32.mrf.mxu0 }
 0x106   : > { %v865_v23 = vadd.f32 %v864_v22, %v816_v19  ;;  %v817_v25 = vpop.f32.mrf.mxu1  ;;  %v397_v19 = vld [vmem:[#allocation2 + $0x70] sm:$0xff]  ;;  %v393_v22 = vld [vmem:[#allocation2 + $0x20] sm:$0xff] }
 0x107   : > { %v818_v27 = vadd.f32 %v817_v25, %v768_v24 }
 0x108   : > { %v901_v26 = vadd.f32 %v865_v23, %v386_v21 }
 0x10a   : > { %917 = vst [vmem:[#allocation2 + $0x58] sm:$0xff] %v901_v26 }
 0x10b   : > { %v1775_v28 = vpop.f32.mrf.mxu3 }
 0x10d   : > { %v866_v30 = vpop.f32.mrf.mxu2  ;;  %v771_v32 = vpop.f32.mrf.mxu0 }
 0x10e   : > { %v867_v31 = vadd.f32 %v866_v30, %v818_v27  ;;  %v820_v33 = vpop.f32.mrf.mxu1 }
 0x10f   : > { %v821_v35 = vadd.f32 %v820_v33, %v771_v32  ;;  %v398_v32 = vld [vmem:[#allocation2 + $0x78] sm:$0xff] }
 0x110   : > { %v902_v34 = vadd.f32 %v867_v31, %v387_v29 }
 0x112   : > { %918 = vst [vmem:[#allocation2 + $0x18] sm:$0xff] %v902_v34  ;;  %v394_v34 = vld [vmem:[#allocation2 + $0x10] sm:$0xff] }
 0x113   : > { %v840_v36 = vpop.f32.mrf.mxu3 }
 0x114   : > { %v841_v5 = vadd.f32 %v840_v36, %v1769_v4 }
 0x115   : > { %v869_v39 = vpop.f32.mrf.mxu2  ;;  %v773_v40 = vpop.f32.mrf.mxu0 }
 0x116   : > { %v870_v38 = vadd.f32 %v869_v39, %v821_v35  ;;  %v822_v41 = vpop.f32.mrf.mxu1 }
 0x117   : > { %v823_v43 = vadd.f32 %v822_v41, %v773_v40 }
 0x118   : > { %v903_v42 = vadd.f32 %v870_v38, %v388_v37 }
 0x11a   : > { %919 = vst [vmem:[#allocation2 + $0x50] sm:$0xff] %v903_v42 }
 0x11b   : > { %v842_v44 = vpop.f32.mrf.mxu3 }
 0x11c   : > { %v843_v17 = vadd.f32 %v842_v44, %v1771_v12 }
 0x11d   : > { %v871_v46 = vpop.f32.mrf.mxu2  ;;  %v776_v48 = vpop.f32.mrf.mxu0 }
 0x11e   : > { %v872_v47 = vadd.f32 %v871_v46, %v823_v43  ;;  %v825_v49 = vpop.f32.mrf.mxu1  ;;  %v399_v43 = vld [vmem:[#allocation2 + $0x28] sm:$0xff] }
 0x11f   : > { %v826_v51 = vadd.f32 %v825_v49, %v776_v48 }
 0x120   : > { %v904_v50 = vadd.f32 %v872_v47, %v389_v45  ;;  %v395_v45 = vld [vmem:[#allocation2 + $0x38] sm:$0xff] }
 0x122   : > { %920 = vst [vmem:[#allocation2 + $0x68] sm:$0xff] %v904_v50 }
 0x123   : > { %v845_v52 = vpop.f32.mrf.mxu3 }
 0x124   : > { %v846_v31 = vadd.f32 %v845_v52, %v1773_v20 }
 0x125   : > { %v874_v54 = vpop.f32.mrf.mxu2  ;;  %v778_v57 = vpop.f32.mrf.mxu0 }
 0x126   : > { %v875_v55 = vadd.f32 %v874_v54, %v826_v51  ;;  %v827_v56 = vpop.f32.mrf.mxu1 }
 0x127   : > { %v828_v59 = vadd.f32 %v827_v56, %v778_v57 }
 0x128   : > { %v905_v58 = vadd.f32 %v875_v55, %v390_v53 }
 0x12a   : > { %921 = vst [vmem:[#allocation2 + $0x8] sm:$0xff] %v905_v58 }
 0x12b   : > { %v847_v60 = vpop.f32.mrf.mxu3 }
 0x12c   : > { %v848_v41 = vadd.f32 %v847_v60, %v1775_v28 }
 0x12d   : > { %v876_v62 = vpop.f32.mrf.mxu2  ;;  %v781_v0 = vpop.f32.mrf.mxu0 }
 0x12e   : > { %v877_v63 = vadd.f32 %v876_v62, %v828_v59  ;;  %v830_v1 = vpop.f32.mrf.mxu1 }
 0x12f   : > { %v831_v3 = vadd.f32 %v830_v1, %v781_v0 }
 0x130   : > { %v906_v2 = vadd.f32 %v877_v63, %v391_v61 }
 0x132   : > { %922 = vst [vmem:[#allocation2 + $0x48] sm:$0xff] %v906_v2 }
 0x133   : > { %v889_v7 = vpop.f32.mrf.mxu3 }
 0x134   : > { %v890_v10 = vadd.f32 %v889_v7, %v841_v5 }
 0x135   : > { %v879_v9 = vpop.f32.mrf.mxu2  ;;  %v783_v13 = vpop.f32.mrf.mxu0 }
 0x136   : > { %v880_v11 = vadd.f32 %v879_v9, %v831_v3  ;;  %v911_v14 = vadd.f32 %v890_v10, %v396_v6  ;;  %v832_v15 = vpop.f32.mrf.mxu1 }
 0x137   : > { %v833_v18 = vadd.f32 %v832_v15, %v783_v13 }
 0x138   : > { %v907_v16 = vadd.f32 %v880_v11, %v392_v8  ;;  %927 = vst [vmem:[#allocation2 + $0x60] sm:$0xff] %v911_v14 }
 0x13a   : > { %923 = vst [vmem:[#allocation2 + $0x40] sm:$0xff] %v907_v16 }
 0x13b   : > { %v891_v21 = vpop.f32.mrf.mxu3 }
 0x13c   : > { %v892_v4 = vadd.f32 %v891_v21, %v843_v17 }
 0x13d   : > { %v881_v23 = vpop.f32.mrf.mxu2  ;;  %v786_v26 = vpop.f32.mrf.mxu0 }
 0x13e   : > { %v882_v24 = vadd.f32 %v881_v23, %v833_v18  ;;  %v912_v25 = vadd.f32 %v892_v4, %v397_v19  ;;  %v835_v27 = vpop.f32.mrf.mxu1 }
 0x13f   : > { %v836_v30 = vadd.f32 %v835_v27, %v786_v26 }
 0x140   : > { %v908_v29 = vadd.f32 %v882_v24, %v393_v22  ;;  %928 = vst [vmem:[#allocation2 + $0x70] sm:$0xff] %v912_v25 }
 0x142   : > { %924 = vst [vmem:[#allocation2 + $0x20] sm:$0xff] %v908_v29 }
 0x143   : > { %v894_v33 = vpop.f32.mrf.mxu3 }
 0x144   : > { %v895_v35 = vadd.f32 %v894_v33, %v846_v31 }
 0x145   : > { %v884_v12 = vpop.f32.mrf.mxu2  ;;  %v788_v38 = vpop.f32.mrf.mxu0 }
 0x146   : > { %v885_v36 = vadd.f32 %v884_v12, %v836_v30  ;;  %v913_v37 = vadd.f32 %v895_v35, %v398_v32  ;;  %v837_v40 = vpop.f32.mrf.mxu1 }
 0x147   : > { %v838_v42 = vadd.f32 %v837_v40, %v788_v38 }
 0x148   : > { %v909_v39 = vadd.f32 %v885_v36, %v394_v34  ;;  %929 = vst [vmem:[#allocation2 + $0x78] sm:$0xff] %v913_v37 }
 0x14a   : > { %925 = vst [vmem:[#allocation2 + $0x10] sm:$0xff] %v909_v39 }
 0x14b   : > { %v896_v44 = vpop.f32.mrf.mxu3 }
 0x14c   : > { %v897_v20 = vadd.f32 %v896_v44, %v848_v41 }
 0x14d   : > { %v886_v46 = vpop.f32.mrf.mxu2 }
 0x14e   : > { %v887_v47 = vadd.f32 %v886_v46, %v838_v42  ;;  %v914_v48 = vadd.f32 %v897_v20, %v399_v43  ;;  %934 = sbr.rel (%p1352_p11) target bundleno = 422 (0x1a6), region = 66 }
 0x150   : > { %v910_v49 = vadd.f32 %v887_v47, %v395_v45  ;;  %930 = vst [vmem:[#allocation2 + $0x28] sm:$0xff] %v914_v48 }
 0x152   : > { %926 = vst [vmem:[#allocation2 + $0x38] sm:$0xff] %v910_v49 }
 0x153   : > { %v935_v50 = vld [vmem:[#allocation2 + $0x30] sm:$0xff]  ;;  %v951_v51 = vld [vmem:[%s1895_s2] sm:$0xff]  ;;  %v952_v53 = vld [vmem:[%s1895_s2 + $0x8] sm:$0xff] }
 0x154   : > { %v936_v28 = vld [vmem:[#allocation2] sm:$0xff]  ;;  %v967_v52 = vadd.f32 %v951_v51, %v935_v50  ;;  %v937_v54 = vld [vmem:[#allocation2 + $0x58] sm:$0xff]  ;;  %v953_v55 = vld [vmem:[%s1895_s2 + $0x10] sm:$0xff] }
 0x155   : > { %v968_v57 = vadd.f32 %v952_v53, %v936_v28  ;;  %v969_v56 = vadd.f32 %v953_v55, %v937_v54  ;;  %v938_v58 = vld [vmem:[#allocation2 + $0x18] sm:$0xff]  ;;  %v939_v60 = vld [vmem:[#allocation2 + $0x50] sm:$0xff]  ;;  %v940_v63 = vld [vmem:[#allocation2 + $0x68] sm:$0xff] }
 0x156   : > { %v954_v59 = vld [vmem:[%s1895_s2 + $0x18] sm:$0xff]  ;;  %v941_v3 = vld [vmem:[#allocation2 + $0x8] sm:$0xff]  ;;  %v943_v9 = vld [vmem:[#allocation2 + $0x40] sm:$0xff] }
 0x157   : > { %983 = vst [vmem:[%s1896_s3] sm:$0xff] %v967_v52  ;;  %v970_v61 = vadd.f32 %v954_v59, %v938_v58  ;;  %v942_v6 = vld [vmem:[#allocation2 + $0x48] sm:$0xff]  ;;  %v944_v13 = vld [vmem:[#allocation2 + $0x20] sm:$0xff]  ;;  %v945_v15 = vld [vmem:[#allocation2 + $0x10] sm:$0xff] }
 0x158   : > { %v947_v22 = vld [vmem:[#allocation2 + $0x60] sm:$0xff]  ;;  %v948_v24 = vld [vmem:[#allocation2 + $0x70] sm:$0xff]  ;;  %v949_v27 = vld [vmem:[#allocation2 + $0x78] sm:$0xff] }
 0x159   : > { %v946_v18 = vld [vmem:[#allocation2 + $0x38] sm:$0xff]  ;;  %v950_v31 = vld [vmem:[#allocation2 + $0x28] sm:$0xff] }
 0x15e   : > { %v955_v62 = vld [vmem:[%s1895_s2 + $0x20] sm:$0xff]  ;;  %v956_v0 = vld [vmem:[%s1895_s2 + $0x28] sm:$0xff] }
 0x15f   : > { %984 = vst [vmem:[%s1896_s3 + $0x8] sm:$0xff] %v968_v57  ;;  %v971_v1 = vadd.f32 %v955_v62, %v939_v60  ;;  %v972_v2 = vadd.f32 %v956_v0, %v940_v63 }
 0x166   : > { %v957_v5 = vld [vmem:[%s1895_s2 + $0x30] sm:$0xff] }
 0x167   : > { %985 = vst [vmem:[%s1896_s3 + $0x10] sm:$0xff] %v969_v56  ;;  %v973_v7 = vadd.f32 %v957_v5, %v941_v3 }
 0x16e   : > { %v958_v8 = vld [vmem:[%s1895_s2 + $0x38] sm:$0xff]  ;;  %v959_v10 = vld [vmem:[%s1895_s2 + $0x40] sm:$0xff] }
 0x16f   : > { %986 = vst [vmem:[%s1896_s3 + $0x18] sm:$0xff] %v970_v61  ;;  %v974_v11 = vadd.f32 %v958_v8, %v942_v6  ;;  %v975_v16 = vadd.f32 %v959_v10, %v943_v9 }
 0x176   : > { %v960_v14 = vld [vmem:[%s1895_s2 + $0x48] sm:$0xff] }
 0x177   : > { %987 = vst [vmem:[%s1896_s3 + $0x20] sm:$0xff] %v971_v1  ;;  %v976_v21 = vadd.f32 %v960_v14, %v944_v13 }
 0x17e   : > { %v961_v17 = vld [vmem:[%s1895_s2 + $0x50] sm:$0xff]  ;;  %v962_v19 = vld [vmem:[%s1895_s2 + $0x58] sm:$0xff] }
 0x17f   : > { %988 = vst [vmem:[%s1896_s3 + $0x28] sm:$0xff] %v972_v2  ;;  %v977_v4 = vadd.f32 %v961_v17, %v945_v15  ;;  %v978_v26 = vadd.f32 %v962_v19, %v946_v18 }
 0x186   : > { %v963_v23 = vld [vmem:[%s1895_s2 + $0x60] sm:$0xff] }
 0x187   : > { %989 = vst [vmem:[%s1896_s3 + $0x30] sm:$0xff] %v973_v7  ;;  %v979_v30 = vadd.f32 %v963_v23, %v947_v22 }
 0x18e   : > { %v964_v25 = vld [vmem:[%s1895_s2 + $0x68] sm:$0xff] }
 0x18f   : > { %990 = vst [vmem:[%s1896_s3 + $0x38] sm:$0xff] %v974_v11  ;;  %v980_v33 = vadd.f32 %v964_v25, %v948_v24 }
 0x196   : > { %v965_v29 = vld [vmem:[%s1895_s2 + $0x70] sm:$0xff] }
 0x197   : > { %991 = vst [vmem:[%s1896_s3 + $0x40] sm:$0xff] %v975_v16  ;;  %v981_v34 = vadd.f32 %v965_v29, %v949_v27 }
 0x19e   : > { %v966_v32 = vld [vmem:[%s1895_s2 + $0x78] sm:$0xff] }
 0x19f   : > { %992 = vst [vmem:[%s1896_s3 + $0x48] sm:$0xff] %v976_v21  ;;  %v982_v12 = vadd.f32 %v966_v32, %v950_v31 }
 0x1a0   : > { %993 = vst [vmem:[%s1896_s3 + $0x50] sm:$0xff] %v977_v4 }
 0x1a1   : > { %994 = vst [vmem:[%s1896_s3 + $0x58] sm:$0xff] %v978_v26 }
 0x1a2   : > { %995 = vst [vmem:[%s1896_s3 + $0x60] sm:$0xff] %v979_v30 }
 0x1a3   : > { %996 = vst [vmem:[%s1896_s3 + $0x68] sm:$0xff] %v980_v33 }
 0x1a4   : > { %997 = vst [vmem:[%s1896_s3 + $0x70] sm:$0xff] %v981_v34 }
 0x1a5   : > { %998 = vst [vmem:[%s1896_s3 + $0x78] sm:$0xff] %v982_v12 }
 0x1a6 PF: > { %s13_s16 = sadd.s32 1, %s1511_s16   ;;  %s1897_s12 = smov %s1499_s13 }
 0x1a7   : > { %p10_p12 = scmp.ge.s32.totalorder %s13_s16, 5   ;;  %s1898_s13 = smov %s1569_s20 }
 0x1a8   : > { %s1899_s14 = smov %s1507_s15  ;;  %s1900_s15 = smov %s1902_s17 }
 0x1a9   :  { %12 = sbr.rel (!%p10_p12) target bundleno = 3 (0x3), region = 113 }

</bundles_post_ra>
